<compile_context>
chip_gen: v5e
topology: v5e:2x2
jax: 0.10.0
libtpu: 0.0.40
codegen_flags: <defaults>
</compile_context>

<pallas_src>
import functools

import jax
import jax.numpy as jnp
from jax.experimental import pallas as pl
from jax.experimental.pallas import tpu as pltpu

_LANE = 128


# --------------------------------------------------------------------------
# small helpers
# --------------------------------------------------------------------------
def _round_up(x, m):
    return (x + m - 1) // m * m


def _pad_last(a, target, value=0.0):
    cur = a.shape[-1]
    if cur == target:
        return a
    widths = [(0, 0)] * (a.ndim - 1) + [(0, target - cur)]
    return jnp.pad(a, widths, constant_values=value)


@functools.lru_cache(maxsize=1)
def _chip_defaults():
    """(vmem_limit_bytes, tm) chosen per TPU generation."""
    try:
        vmem_cap = int(pltpu.get_tpu_info().vmem_capacity_bytes)
    except Exception:                       # query unavailable -> conservative
        vmem_cap = 64 * 1024 * 1024
    if vmem_cap >= 100 * 1024 * 1024:       # v5e / v6e: 128 MiB VMEM
        return 88 * 1024 * 1024, 1024
    return 44 * 1024 * 1024, 512            # v7x: 64 MiB VMEM per TC


def _bn_scale_shift(ch_sum, ch_ssq, count, gamma, beta, eps):
    # Training-mode BatchNorm: biased variance over the batch.
    mean = ch_sum / count
    var = jnp.maximum(ch_ssq / count - mean * mean, 0.0)
    inv = jax.lax.rsqrt(var + eps)
    scale = gamma * inv
    shift = beta - mean * scale
    return scale, shift


def _unit_strides(channels, first_stage_stride):
    strides = []
    for i, stage in enumerate(channels[1:]):
        strides.append([2 if (j == 0 and (i != 0 or first_stage_stride)) else 1
                        for j in range(len(stage))])
    return strides


def _pick_row_tile(h_out, cap=32):
    """Largest divisor of h_out that is <= cap (keeps acc/act slabs small)."""
    th = 1
    for d in range(1, min(h_out, cap) + 1):
        if h_out % d == 0:
            th = d
    return th


# --------------------------------------------------------------------------
# Pallas kernels
# --------------------------------------------------------------------------
def _matmul_fused_kernel(x_ref, s_ref, b_ref, w_ref, o_ref, sum_ref, ssq_ref, *,
                         apply_in_act, need_row_mask, tm, m_true):
    """Fused: (previous layer BN+ReLU on the x tile) -> MXU matmul ->
    raw conv bf16 store + per-tile per-channel BN statistics."""
    x = x_ref[...]
    if apply_in_act:
        act = jnp.maximum(x.astype(jnp.float32) * s_ref[...] + b_ref[...], 0.0)
        if need_row_mask:
            # zero out M-padding rows so they do not pollute the stats
            row = (pl.program_id(0) * tm
                   + jax.lax.broadcasted_iota(jnp.int32, (tm, 1), 0))
            act = jnp.where(row < m_true, act, 0.0)
        x = act.astype(w_ref.dtype)
    acc = jnp.dot(x, w_ref[...], preferred_element_type=jnp.float32)
    o_ref[...] = acc.astype(o_ref.dtype)
    sum_ref[...] = jnp.sum(acc, axis=0, keepdims=True)[None]           # (1,1,C)
    ssq_ref[...] = jnp.sum(acc * acc, axis=0, keepdims=True)[None]     # (1,1,C)


def _dw_fused_kernel(x_ref, s_ref, b_ref, w_ref, o_ref, sum_ref, ssq_ref, *,
                     kh, kw, stride, dilation, padding, th, w_out, c,
                     h_in, w_in):
    """Depthwise conv on the VPU, fused with the previous layer's BN+ReLU.

    x_ref holds the RAW (pre-BN) previous-layer output, zero-padded spatially
    (and phase-decomposed on the channel axis when stride > 1).  Padding
    positions are masked to the post-activation value 0.  Grid = (batch,
    output-row tiles); the image block stays resident across row tiles."""
    t = pl.program_id(1)
    halo = ((kh - 1) * dilation) // stride
    hq_t = th + halo
    row0 = t * th
    wq = x_ref.shape[2]

    # Activated slabs, one per stride phase, only the rows this tile needs.
    acts = []
    for p in range(stride * stride):
        a, bb = p // stride, p % stride
        slab = x_ref[0, pl.ds(row0, hq_t), :, p * c:(p + 1) * c]
        act = jnp.maximum(slab.astype(jnp.float32) * s_ref[...] + b_ref[...],
                          0.0)
        rloc = jax.lax.broadcasted_iota(jnp.int32, (hq_t, wq, 1), 0)
        qloc = jax.lax.broadcasted_iota(jnp.int32, (hq_t, wq, 1), 1)
        prow = a + stride * (row0 + rloc)        # row in the padded image
        pcol = bb + stride * qloc                # col in the padded image
        valid = ((prow >= padding) & (prow < h_in + padding)
                 & (pcol >= padding) & (pcol < w_in + padding))
        acts.append(jnp.where(valid, act, 0.0))

    # kh*kw shifted multiply-adds (all math f32 on the VPU).
    acc = jnp.zeros((th, w_out, c), jnp.float32)
    for i in range(kh):
        for j in range(kw):
            ri, cj = i * dilation, j * dilation
            p = (ri % stride) * stride + (cj % stride)
            r0, c0 = ri // stride, cj // stride
            tap = acts[p][r0:r0 + th, c0:c0 + w_out, :]
            acc = acc + tap * w_ref[i * kw + j, :]

    o_ref[...] = acc[None].astype(o_ref.dtype)
    sum_ref[...] = jnp.sum(acc, axis=(0, 1))[None, None, :]
    ssq_ref[...] = jnp.sum(acc * acc, axis=(0, 1))[None, None, :]


def _avgpool_fused_kernel(x_ref, s_ref, b_ref, o_ref):
    # Fused: last BN + ReLU + global average pool.
    x = x_ref[...].astype(jnp.float32)
    act = jnp.maximum(x * s_ref[...] + b_ref[...], 0.0)
    o_ref[...] = jnp.mean(act, axis=(1, 2))


def _linear_kernel(x_ref, w_ref, b_ref, o_ref):
    o_ref[...] = jnp.dot(x_ref[...], w_ref[...],
                         preferred_element_type=jnp.float32) + b_ref[...]


# --------------------------------------------------------------------------
# kernel wrappers
# --------------------------------------------------------------------------
def _tiled_matmul_stats_fused(x2d, in_scale, in_shift, w2d, *, apply_in_act,
                              tm, vmem_limit, out_dtype=jnp.bfloat16,
                              compute_dtype=jnp.bfloat16):
    """y_raw = (relu(in_scale*x + in_shift) if apply_in_act else x) @ w,
    tiled over M.  Returns raw conv (M, Cpad) bf16 and per-channel BN sums."""
    m, k = x2d.shape
    c = w2d.shape[1]
    tm_eff = min(tm, _round_up(m, 8))
    m_pad = _round_up(m, tm_eff)
    if m_pad != m:
        x2d = jnp.pad(x2d, ((0, m_pad - m), (0, 0)))
    grid_m = m_pad // tm_eff

    x2d = x2d.astype(compute_dtype)
    w2d = w2d.astype(compute_dtype)
    if in_scale is None:
        in_scale = jnp.ones((k,), jnp.float32)
        in_shift = jnp.zeros((k,), jnp.float32)
    s2d = in_scale.reshape(1, k).astype(jnp.float32)
    b2d = in_shift.reshape(1, k).astype(jnp.float32)

    kernel = functools.partial(
        _matmul_fused_kernel, apply_in_act=apply_in_act,
        need_row_mask=(apply_in_act and m_pad != m), tm=tm_eff, m_true=m)

    cost = pl.CostEstimate(
        flops=2 * m_pad * k * c,
        transcendentals=0,
        bytes_accessed=int(m_pad * k * x2d.dtype.itemsize
                           + k * c * w2d.dtype.itemsize
                           + m_pad * c * jnp.dtype(out_dtype).itemsize))

    conv, psum, pssq = pl.pallas_call(
        kernel,
        grid=(grid_m,),
        in_specs=[pl.BlockSpec((tm_eff, k), lambda i: (i, 0)),
                  pl.BlockSpec((1, k), lambda i: (0, 0)),
                  pl.BlockSpec((1, k), lambda i: (0, 0)),
                  pl.BlockSpec((k, c), lambda i: (0, 0))],
        out_specs=[pl.BlockSpec((tm_eff, c), lambda i: (i, 0)),
                   pl.BlockSpec((1, 1, c), lambda i: (i, 0, 0)),
                   pl.BlockSpec((1, 1, c), lambda i: (i, 0, 0))],
        out_shape=[jax.ShapeDtypeStruct((m_pad, c), out_dtype),
                   jax.ShapeDtypeStruct((grid_m, 1, c), jnp.float32),
                   jax.ShapeDtypeStruct((grid_m, 1, c), jnp.float32)],
        compiler_params=pltpu.CompilerParams(
            dimension_semantics=("parallel",),
            vmem_limit_bytes=vmem_limit),
        cost_estimate=cost,
    )(x2d, s2d, b2d, w2d)

    ch_sum = jnp.sum(psum[:, 0, :], axis=0)
    ch_ssq = jnp.sum(pssq[:, 0, :], axis=0)
    return conv[:m], ch_sum, ch_ssq


def _conv3x3_init(x, weight, gamma, beta, *, stride, padding, eps, tm,
                  vmem_limit, act_dtype=jnp.bfloat16, dilation=1):
    """Init KxK conv block via im2col (tiny Cin=3) + tiled MXU matmul.
    Returns raw conv output (NHWC bf16, padded channels) and BN scale/shift."""
    n, h, w, cin = x.shape
    cout, cin_w, kh, kw = weight.shape
    assert cin == cin_w
    h_out = (h + 2 * padding - dilation * (kh - 1) - 1) // stride + 1
    w_out = (w + 2 * padding - dilation * (kw - 1) - 1) // stride + 1

    xp = jnp.pad(x, ((0, 0), (padding, padding), (padding, padding), (0, 0)))
    cols = []
    for i in range(kh):
        for j in range(kw):
            hi, wi = i * dilation, j * dilation
            cols.append(xp[:, hi:hi + stride * h_out:stride,
                           wi:wi + stride * w_out:stride, :])
    # K ordered as (cin, kh, kw) to match weight.reshape(cout, cin*kh*kw).
    patches = jnp.stack(cols, axis=-1).reshape(n * h_out * w_out, cin * kh * kw)

    c_out_pad = _round_up(cout, _LANE)
    w2d = _pad_last(weight.reshape(cout, cin * kh * kw).T, c_out_pad)
    gp = _pad_last(gamma.astype(jnp.float32), c_out_pad, 1.0)
    bp = _pad_last(beta.astype(jnp.float32), c_out_pad)

    raw, ch_sum, ch_ssq = _tiled_matmul_stats_fused(
        patches, None, None, w2d, apply_in_act=False,
        tm=tm, vmem_limit=vmem_limit, out_dtype=act_dtype)
    scale, shift = _bn_scale_shift(ch_sum, ch_ssq, n * h_out * w_out,
                                   gp, bp, eps)
    return raw.reshape(n, h_out, w_out, c_out_pad), scale, shift


def _pwconv_bn_fused(x_raw, in_scale, in_shift, weight, gamma, beta, *,
                     eps, tm, vmem_limit, act_dtype=jnp.bfloat16):
    """Pointwise conv block: previous BN+ReLU fused into the matmul kernel."""
    n, h, w, cin_pad = x_raw.shape
    cout, cin_true = weight.shape[0], weight.shape[1]
    c_out_pad = _round_up(cout, _LANE)
    w2d = weight.reshape(cout, cin_true).T                        # (Cin, Cout)
    w2d = jnp.pad(w2d, ((0, cin_pad - cin_true), (0, c_out_pad - cout)))
    gp = _pad_last(gamma.astype(jnp.float32), c_out_pad, 1.0)
    bp = _pad_last(beta.astype(jnp.float32), c_out_pad)

    x2d = x_raw.reshape(n * h * w, cin_pad)
    raw2d, ch_sum, ch_ssq = _tiled_matmul_stats_fused(
        x2d, in_scale, in_shift, w2d, apply_in_act=True,
        tm=tm, vmem_limit=vmem_limit, out_dtype=act_dtype)
    scale, shift = _bn_scale_shift(ch_sum, ch_ssq, n * h * w, gp, bp, eps)
    return raw2d.reshape(n, h, w, c_out_pad), scale, shift


def _dwconv_bn_fused(x_raw, in_scale, in_shift, w_dw, gamma, beta, *,
                     stride, padding, dilation, eps, vmem_limit,
                     act_dtype=jnp.bfloat16):
    """Depthwise conv block on the VPU, previous BN+ReLU fused in-kernel."""
    n, h, w, c_pad = x_raw.shape
    c_true, _, kh, kw = w_dw.shape
    h_out = (h + 2 * padding - dilation * (kh - 1) - 1) // stride + 1
    w_out = (w + 2 * padding - dilation * (kw - 1) - 1) // stride + 1
    halo = ((kh - 1) * dilation) // stride
    hq = h_out + halo
    wq = w_out + ((kw - 1) * dilation) // stride

    # Zero-pad the RAW bf16 input; padded positions are masked in-kernel.
    xp = jnp.pad(x_raw, ((0, 0), (padding, padding), (padding, padding), (0, 0)))
    if stride == 1:
        xph = xp                                   # no phase copies needed
    else:
        phases = []
        for a in range(stride):
            for b in range(stride):
                ph = xp[:, a::stride, b::stride, :][:, :hq, :wq, :]
                if ph.shape[1] != hq or ph.shape[2] != wq:
                    ph = jnp.pad(ph, ((0, 0), (0, hq - ph.shape[1]),
                                      (0, wq - ph.shape[2]), (0, 0)))
                phases.append(ph)
        xph = jnp.concatenate(phases, axis=-1)
    c_ph = xph.shape[-1]

    # dw weights -> (kh*kw, C_pad) f32, zero in padded channels.
    w_flat = jnp.transpose(w_dw[:, 0, :, :], (1, 2, 0)).reshape(kh * kw, c_true)
    w_flat = _pad_last(w_flat.astype(jnp.float32), c_pad)
    s2d = in_scale.reshape(1, c_pad).astype(jnp.float32)
    b2d = in_shift.reshape(1, c_pad).astype(jnp.float32)

    th = _pick_row_tile(h_out)
    n_row_tiles = h_out // th

    kernel = functools.partial(
        _dw_fused_kernel, kh=kh, kw=kw, stride=stride, dilation=dilation,
        padding=padding, th=th, w_out=w_out, c=c_pad, h_in=h, w_in=w)

    raw, psum, pssq = pl.pallas_call(
        kernel,
        grid=(n, n_row_tiles),
        in_specs=[pl.BlockSpec((1, hq, wq, c_ph), lambda b, t: (b, 0, 0, 0)),
                  pl.BlockSpec((1, c_pad), lambda b, t: (0, 0)),
                  pl.BlockSpec((1, c_pad), lambda b, t: (0, 0)),
                  pl.BlockSpec((kh * kw, c_pad), lambda b, t: (0, 0))],
        out_specs=[pl.BlockSpec((1, th, w_out, c_pad),
                                lambda b, t: (b, t, 0, 0)),
                   pl.BlockSpec((1, 1, c_pad),
                                lambda b, t: (b * n_row_tiles + t, 0, 0)),
                   pl.BlockSpec((1, 1, c_pad),
                                lambda b, t: (b * n_row_tiles + t, 0, 0))],
        out_shape=[jax.ShapeDtypeStruct((n, h_out, w_out, c_pad), act_dtype),
                   jax.ShapeDtypeStruct((n * n_row_tiles, 1, c_pad),
                                        jnp.float32),
                   jax.ShapeDtypeStruct((n * n_row_tiles, 1, c_pad),
                                        jnp.float32)],
        compiler_params=pltpu.CompilerParams(
            dimension_semantics=("parallel", "parallel"),
            vmem_limit_bytes=vmem_limit),
    )(xph, s2d, b2d, w_flat)

    gp = _pad_last(gamma.astype(jnp.float32), c_pad, 1.0)
    bp = _pad_last(beta.astype(jnp.float32), c_pad)
    count = n * h_out * w_out
    scale, shift = _bn_scale_shift(jnp.sum(psum[:, 0, :], axis=0),
                                   jnp.sum(pssq[:, 0, :], axis=0),
                                   count, gp, bp, eps)
    return raw, scale, shift


def _global_avgpool_fused(x_raw, scale, shift):
    n, h, w, c = x_raw.shape
    return pl.pallas_call(
        _avgpool_fused_kernel,
        out_shape=jax.ShapeDtypeStruct((n, c), jnp.float32),
    )(x_raw,
      scale.reshape(1, 1, 1, c).astype(jnp.float32),
      shift.reshape(1, 1, 1, c).astype(jnp.float32))


def _linear(feats, weight, bias):
    n, c_pad = feats.shape
    ncls, c_true = weight.shape
    cls_pad = _round_up(ncls, _LANE)
    w2d = jnp.pad(weight.T, ((0, c_pad - c_true), (0, cls_pad - ncls)))
    b2d = jnp.pad(bias, (0, cls_pad - ncls)).reshape(1, cls_pad)
    out = pl.pallas_call(
        _linear_kernel,
        out_shape=jax.ShapeDtypeStruct((n, cls_pad), jnp.float32),
    )(feats, w2d.astype(jnp.float32), b2d.astype(jnp.float32))
    return out[:, :ncls]


# --------------------------------------------------------------------------
# MobileNet forward (Pallas) and parameter construction
# --------------------------------------------------------------------------
def mobilenet_forward(x_nchw, params, *, channels, first_stage_stride,
                      bn_eps=1e-5, act_dtype=jnp.bfloat16):
    vmem_limit, tm = _chip_defaults()
    strides = _unit_strides(channels, first_stage_stride)
    # Single layout change at the boundary: NCHW -> NHWC (channels -> lanes).
    x = jnp.transpose(x_nchw, (0, 2, 3, 1))

    p = params["init"]
    raw, scale, shift = _conv3x3_init(
        x, p["w"], p["gamma"], p["beta"], stride=2, padding=1, eps=bn_eps,
        tm=tm, vmem_limit=vmem_limit, act_dtype=act_dtype)

    for stage, st_strides in zip(params["stages"], strides):
        for unit, stride in zip(stage, st_strides):
            raw, scale, shift = _dwconv_bn_fused(
                raw, scale, shift, unit["dw_w"], unit["dw_gamma"],
                unit["dw_beta"], stride=stride, padding=1, dilation=1,
                eps=bn_eps, vmem_limit=vmem_limit, act_dtype=act_dtype)
            raw, scale, shift = _pwconv_bn_fused(
                raw, scale, shift, unit["pw_w"], unit["pw_gamma"],
                unit["pw_beta"], eps=bn_eps, tm=tm, vmem_limit=vmem_limit,
                act_dtype=act_dtype)

    feats = _global_avgpool_fused(raw, scale, shift)              # (N, C_pad)
    logits = _linear(feats, params["out"]["w"], params["out"]["b"])
    return logits


def init_params(key, channels, first_stage_stride, in_channels, num_classes):
    def normal(k, shape, scale):
        return scale * jax.random.normal(k, shape, jnp.float32)

    n_keys = 3 + 6 * sum(len(s) for s in channels[1:]) + 2
    keys = iter(jax.random.split(key, n_keys))
    c0 = channels[0][0]
    params = {
        "init": {
            "w": normal(next(keys), (c0, in_channels, 3, 3),
                        (2.0 / (in_channels * 9)) ** 0.5),
            "gamma": 1.0 + 0.1 * jax.random.normal(next(keys), (c0,), jnp.float32),
            "beta": 0.1 * jax.random.normal(next(keys), (c0,), jnp.float32),
        },
        "stages": [],
    }
    in_c = c0
    for stage_channels in channels[1:]:
        stage = []
        for out_c in stage_channels:
            stage.append({
                "dw_w": normal(next(keys), (in_c, 1, 3, 3), (2.0 / 9) ** 0.5),
                "dw_gamma": 1.0 + 0.1 * jax.random.normal(next(keys), (in_c,), jnp.float32),
                "dw_beta": 0.1 * jax.random.normal(next(keys), (in_c,), jnp.float32),
                "pw_w": normal(next(keys), (out_c, in_c, 1, 1), (2.0 / in_c) ** 0.5),
                "pw_gamma": 1.0 + 0.1 * jax.random.normal(next(keys), (out_c,), jnp.float32),
                "pw_beta": 0.1 * jax.random.normal(next(keys), (out_c,), jnp.float32),
            })
            in_c = out_c
        params["stages"].append(stage)
    params["out"] = {
        "w": normal(next(keys), (num_classes, in_c), (2.0 / in_c) ** 0.5),
        "b": 0.1 * jax.random.normal(next(keys), (num_classes,), jnp.float32),
    }
    return params


# --------------------------------------------------------------------------
# pure-JAX reference (f32) for correctness checking
# --------------------------------------------------------------------------
def _ref_conv_bn_relu(x, w, gamma, beta, *, stride, padding, groups, eps):
    conv = jax.lax.conv_general_dilated(
        x, w, window_strides=(stride, stride),
        padding=((padding, padding), (padding, padding)),
        dimension_numbers=("NCHW", "OIHW", "NCHW"),
        feature_group_count=groups)
    mean = jnp.mean(conv, axis=(0, 2, 3), keepdims=True)
    var = jnp.mean((conv - mean) ** 2, axis=(0, 2, 3), keepdims=True)
    y = gamma.reshape(1, -1, 1, 1) * (conv - mean) * jax.lax.rsqrt(var + eps) \
        + beta.reshape(1, -1, 1, 1)
    return jnp.maximum(y, 0.0)


def mobilenet_reference(x, params, *, channels, first_stage_stride, eps):
    strides = _unit_strides(channels, first_stage_stride)
    p = params["init"]
    y = _ref_conv_bn_relu(x, p["w"], p["gamma"], p["beta"],
                          stride=2, padding=1, groups=1, eps=eps)
    for stage, st_strides in zip(params["stages"], strides):
        for unit, stride in zip(stage, st_strides):
            c = y.shape[1]
            y = _ref_conv_bn_relu(y, unit["dw_w"], unit["dw_gamma"],
                                  unit["dw_beta"], stride=stride, padding=1,
                                  groups=c, eps=eps)
            y = _ref_conv_bn_relu(y, unit["pw_w"], unit["pw_gamma"],
                                  unit["pw_beta"], stride=1, padding=0,
                                  groups=1, eps=eps)
    feats = jnp.mean(y, axis=(2, 3))   # AvgPool2d(kernel = final spatial)
    return feats @ params["out"]["w"].T + params["out"]["b"]


# --------------------------------------------------------------------------
if __name__ == "__main__":
    # Reduced MobileNet config (same structure as the spec, small shapes).
    CHANNELS = [[8], [16], [32, 32]]
    FIRST_STAGE_STRIDE = False
    IN_CHANNELS = 3
    IN_SIZE = (16, 16)
    NUM_CLASSES = 16
    BATCH = 2
    EPS = 1e-5

    key = jax.random.PRNGKey(0)
    kp, kx = jax.random.split(key)
    params = init_params(kp, CHANNELS, FIRST_STAGE_STRIDE, IN_CHANNELS,
                         NUM_CLASSES)
    x = jax.random.normal(kx, (BATCH, IN_CHANNELS) + IN_SIZE, jnp.float32)

    fwd = jax.jit(functools.partial(
        mobilenet_forward, channels=CHANNELS,
        first_stage_stride=FIRST_STAGE_STRIDE, bn_eps=EPS))
    logits = jax.block_until_ready(fwd(x, params))

    ref = mobilenet_reference(x, params, channels=CHANNELS,
                              first_stage_stride=FIRST_STAGE_STRIDE, eps=EPS)

    assert logits.shape == (BATCH, NUM_CLASSES)
    # bf16 MXU operands + bf16 inter-layer raw-conv storage -> loose tolerance.
    assert jnp.allclose(logits, ref, atol=1e-1, rtol=1e-1), \
        float(jnp.max(jnp.abs(logits - ref)))
    print("KERNEL_OK")
</pallas_src>

<mosaic_0001>
module attributes {stable_mosaic.version = 11 : i64} {
  func.func @_matmul_fused_kernel(%arg0: i32, %arg1: memref<128x27xbf16, #tpu.memory_space<vmem>>, %arg2: memref<1x27xf32, #tpu.memory_space<vmem>>, %arg3: memref<1x27xf32, #tpu.memory_space<vmem>>, %arg4: memref<27x128xbf16, #tpu.memory_space<vmem>>, %arg5: memref<128x128xbf16, #tpu.memory_space<vmem>>, %arg6: memref<1x1x128xf32, #tpu.memory_space<vmem>>, %arg7: memref<1x1x128xf32, #tpu.memory_space<vmem>>) attributes {dimension_semantics = [#tpu.dimension_semantics<parallel>], iteration_bounds = array<i64: 1>, scalar_prefetch = 0 : i64, scratch_operands = 0 : i64, tpu.core_type = #tpu.core_type<tc>, window_params = [{transform_indices = @transform_0, window_bounds = array<i64: 128, 27>}, {pipeline_mode = #tpu.pipeline_mode<synchronous>, transform_indices = @transform_1, window_bounds = array<i64: 1, 27>}, {pipeline_mode = #tpu.pipeline_mode<synchronous>, transform_indices = @transform_2, window_bounds = array<i64: 1, 27>}, {pipeline_mode = #tpu.pipeline_mode<synchronous>, transform_indices = @transform_3, window_bounds = array<i64: 27, 128>}, {transform_indices = @transform_4, window_bounds = array<i64: 128, 128>}, {transform_indices = @transform_5, window_bounds = array<i64: 1, 1, 128>}, {transform_indices = @transform_6, window_bounds = array<i64: 1, 1, 128>}]} {
    %c0 = arith.constant 0 : index
    %c0_0 = arith.constant 0 : index
    %0 = vector.load %arg1[%c0, %c0_0] : memref<128x27xbf16, #tpu.memory_space<vmem>>, vector<128x27xbf16>
    %c0_1 = arith.constant 0 : index
    %c0_2 = arith.constant 0 : index
    %1 = vector.load %arg4[%c0_1, %c0_2] : memref<27x128xbf16, #tpu.memory_space<vmem>>, vector<27x128xbf16>
    %cst = arith.constant dense<0.000000e+00> : vector<128x128xf32>
    %2 = tpu.matmul %0, %1, %cst {dimension_numbers = #tpu.dot_dimension_numbers<[1], [0], [0], [1], [0, 0, 1, 1], [], []>} : vector<128x27xbf16>, vector<27x128xbf16>, vector<128x128xf32> -> vector<128x128xf32>
    %3 = arith.truncf %2 : vector<128x128xf32> to vector<128x128xbf16>
    %c0_3 = arith.constant 0 : index
    %c0_4 = arith.constant 0 : index
    %4 = vector.load %arg5[%c0_3, %c0_4] : memref<128x128xbf16, #tpu.memory_space<vmem>>, vector<128x128xbf16>
    tpu.vector_store %arg5[%c0_3, %c0_4], %3 {strides = array<i32>} : memref<128x128xbf16, #tpu.memory_space<vmem>>, vector<128x128xbf16>,
    %cst_5 = arith.constant dense<0.000000e+00> : vector<128xf32>
    %5 = vector.multi_reduction <add>, %2, %cst_5 [0] : vector<128x128xf32> to vector<128xf32>
    %6 = vector.shape_cast %5 : vector<128xf32> to vector<1x128xf32>
    %7 = vector.shape_cast %6 : vector<1x128xf32> to vector<1x1x128xf32>
    %c0_6 = arith.constant 0 : index
    %c0_7 = arith.constant 0 : index
    %c0_8 = arith.constant 0 : index
    %8 = vector.load %arg6[%c0_6, %c0_7, %c0_8] : memref<1x1x128xf32, #tpu.memory_space<vmem>>, vector<1x1x128xf32>
    tpu.vector_store %arg6[%c0_6, %c0_7, %c0_8], %7 {strides = array<i32>} : memref<1x1x128xf32, #tpu.memory_space<vmem>>, vector<1x1x128xf32>,
    %9 = arith.mulf %2, %2 : vector<128x128xf32>
    %cst_9 = arith.constant dense<0.000000e+00> : vector<128xf32>
    %10 = vector.multi_reduction <add>, %9, %cst_9 [0] : vector<128x128xf32> to vector<128xf32>
    %11 = vector.shape_cast %10 : vector<128xf32> to vector<1x128xf32>
    %12 = vector.shape_cast %11 : vector<1x128xf32> to vector<1x1x128xf32>
    %c0_10 = arith.constant 0 : index
    %c0_11 = arith.constant 0 : index
    %c0_12 = arith.constant 0 : index
    %13 = vector.load %arg7[%c0_10, %c0_11, %c0_12] : memref<1x1x128xf32, #tpu.memory_space<vmem>>, vector<1x1x128xf32>
    tpu.vector_store %arg7[%c0_10, %c0_11, %c0_12], %12 {strides = array<i32>} : memref<1x1x128xf32, #tpu.memory_space<vmem>>, vector<1x1x128xf32>,
    return
  }
  func.func @transform_0(%arg0: i32) -> (i32, i32) {
    %c0_i32 = arith.constant 0 : i32
    %c0_i32_0 = arith.constant 0 : i32
    return %arg0, %c0_i32 : i32, i32
  }
  func.func @transform_1(%arg0: i32) -> (i32, i32) {
    %c0_i32 = arith.constant 0 : i32
    %c0_i32_0 = arith.constant 0 : i32
    %c0_i32_1 = arith.constant 0 : i32
    return %c0_i32, %c0_i32_0 : i32, i32
  }
  func.func @transform_2(%arg0: i32) -> (i32, i32) {
    %c0_i32 = arith.constant 0 : i32
    %c0_i32_0 = arith.constant 0 : i32
    %c0_i32_1 = arith.constant 0 : i32
    return %c0_i32, %c0_i32_0 : i32, i32
  }
  func.func @transform_3(%arg0: i32) -> (i32, i32) {
    %c0_i32 = arith.constant 0 : i32
    %c0_i32_0 = arith.constant 0 : i32
    %c0_i32_1 = arith.constant 0 : i32
    return %c0_i32, %c0_i32_0 : i32, i32
  }
  func.func @transform_4(%arg0: i32) -> (i32, i32) {
    %c0_i32 = arith.constant 0 : i32
    %c0_i32_0 = arith.constant 0 : i32
    return %arg0, %c0_i32 : i32, i32
  }
  func.func @transform_5(%arg0: i32) -> (i32, i32, i32) {
    %c0_i32 = arith.constant 0 : i32
    %c0_i32_0 = arith.constant 0 : i32
    %c0_i32_1 = arith.constant 0 : i32
    return %arg0, %c0_i32, %c0_i32_0 : i32, i32, i32
  }
  func.func @transform_6(%arg0: i32) -> (i32, i32, i32) {
    %c0_i32 = arith.constant 0 : i32
    %c0_i32_0 = arith.constant 0 : i32
    %c0_i32_1 = arith.constant 0 : i32
    return %arg0, %c0_i32, %c0_i32_0 : i32, i32, i32
  }
}

module attributes {stable_mosaic.version = 11 : i64} {
  func.func @_dw_fused_kernel(%arg0: i32, %arg1: i32, %arg2: memref<1x10x10x128xbf16, #tpu.memory_space<vmem>>, %arg3: memref<1x128xf32, #tpu.memory_space<vmem>>, %arg4: memref<1x128xf32, #tpu.memory_space<vmem>>, %arg5: memref<9x128xf32, #tpu.memory_space<vmem>>, %arg6: memref<1x8x8x128xbf16, #tpu.memory_space<vmem>>, %arg7: memref<1x1x128xf32, #tpu.memory_space<vmem>>, %arg8: memref<1x1x128xf32, #tpu.memory_space<vmem>>) attributes {dimension_semantics = [#tpu.dimension_semantics<parallel>, #tpu.dimension_semantics<parallel>], iteration_bounds = array<i64: 2, 1>, scalar_prefetch = 0 : i64, scratch_operands = 0 : i64, tpu.core_type = #tpu.core_type<tc>, window_params = [{transform_indices = @transform_0, window_bounds = array<i64: 1, 10, 10, 128>}, {pipeline_mode = #tpu.pipeline_mode<synchronous>, transform_indices = @transform_1, window_bounds = array<i64: 1, 128>}, {pipeline_mode = #tpu.pipeline_mode<synchronous>, transform_indices = @transform_2, window_bounds = array<i64: 1, 128>}, {pipeline_mode = #tpu.pipeline_mode<synchronous>, transform_indices = @transform_3, window_bounds = array<i64: 9, 128>}, {transform_indices = @transform_4, window_bounds = array<i64: 1, 8, 8, 128>}, {transform_indices = @transform_5, window_bounds = array<i64: 1, 1, 128>}, {transform_indices = @transform_6, window_bounds = array<i64: 1, 1, 128>}]} {
    %c8_i32 = arith.constant 8 : i32
    %0 = arith.muli %arg1, %c8_i32 : i32
    %c0 = arith.constant 0 : index
    %1 = arith.index_cast %0 : i32 to index
    %c0_0 = arith.constant 0 : index
    %c0_1 = arith.constant 0 : index
    %2 = vector.load %arg2[%c0, %1, %c0_0, %c0_1] : memref<1x10x10x128xbf16, #tpu.memory_space<vmem>>, vector<1x10x10x128xbf16>
    %3 = vector.shape_cast %2 : vector<1x10x10x128xbf16> to vector<10x10x128xbf16>
    %4 = arith.extf %3 : vector<10x10x128xbf16> to vector<10x10x128xf32>
    %c0_2 = arith.constant 0 : index
    %c0_3 = arith.constant 0 : index
    %5 = vector.load %arg3[%c0_2, %c0_3] : memref<1x128xf32, #tpu.memory_space<vmem>>, vector<1x128xf32>
    %6 = vector.shape_cast %5 : vector<1x128xf32> to vector<1x1x128xf32>
    %7 = vector.broadcast %6 : vector<1x1x128xf32> to vector<10x10x128xf32>
    %8 = arith.mulf %4, %7 : vector<10x10x128xf32>
    %c0_4 = arith.constant 0 : index
    %c0_5 = arith.constant 0 : index
    %9 = vector.load %arg4[%c0_4, %c0_5] : memref<1x128xf32, #tpu.memory_space<vmem>>, vector<1x128xf32>
    %10 = vector.shape_cast %9 : vector<1x128xf32> to vector<1x1x128xf32>
    %11 = vector.broadcast %10 : vector<1x1x128xf32> to vector<10x10x128xf32>
    %12 = arith.addf %8, %11 : vector<10x10x128xf32>
    %cst = arith.constant 0.000000e+00 : f32
    %13 = vector.broadcast %cst : f32 to vector<10x10x128xf32>
    %14 = arith.maximumf %12, %13 : vector<10x10x128xf32>
    %15 = tpu.iota {dimensions = array<i32: 0>} : vector<10x10x1xi32>
    %16 = tpu.iota {dimensions = array<i32: 1>} : vector<10x10x1xi32>
    %17 = vector.broadcast %0 : i32 to vector<10x10x1xi32>
    %18 = arith.addi %17, %15 : vector<10x10x1xi32>
    %c1_i32 = arith.constant 1 : i32
    %19 = vector.broadcast %c1_i32 : i32 to vector<10x10x1xi32>
    %20 = arith.muli %19, %18 : vector<10x10x1xi32>
    %c0_i32 = arith.constant 0 : i32
    %21 = vector.broadcast %c0_i32 : i32 to vector<10x10x1xi32>
    %22 = arith.addi %21, %20 : vector<10x10x1xi32>
    %c1_i32_6 = arith.constant 1 : i32
    %23 = vector.broadcast %c1_i32_6 : i32 to vector<10x10x1xi32>
    %24 = arith.muli %23, %16 : vector<10x10x1xi32>
    %c0_i32_7 = arith.constant 0 : i32
    %25 = vector.broadcast %c0_i32_7 : i32 to vector<10x10x1xi32>
    %26 = arith.addi %25, %24 : vector<10x10x1xi32>
    %c1_i32_8 = arith.constant 1 : i32
    %27 = vector.broadcast %c1_i32_8 : i32 to vector<10x10x1xi32>
    %28 = arith.cmpi sge, %22, %27 : vector<10x10x1xi32>
    %c9_i32 = arith.constant 9 : i32
    %29 = vector.broadcast %c9_i32 : i32 to vector<10x10x1xi32>
    %30 = arith.cmpi slt, %22, %29 : vector<10x10x1xi32>
    %31 = arith.andi %28, %30 : vector<10x10x1xi1>
    %c1_i32_9 = arith.constant 1 : i32
    %32 = vector.broadcast %c1_i32_9 : i32 to vector<10x10x1xi32>
    %33 = arith.cmpi sge, %26, %32 : vector<10x10x1xi32>
    %34 = arith.andi %31, %33 : vector<10x10x1xi1>
    %c9_i32_10 = arith.constant 9 : i32
    %35 = vector.broadcast %c9_i32_10 : i32 to vector<10x10x1xi32>
    %36 = arith.cmpi slt, %26, %35 : vector<10x10x1xi32>
    %37 = arith.andi %34, %36 : vector<10x10x1xi1>
    %cst_11 = arith.constant 0.000000e+00 : f32
    %38 = vector.shape_cast %37 : vector<10x10x1xi1> to vector<10x10x1xi1>
    %39 = vector.broadcast %38 : vector<10x10x1xi1> to vector<10x10x128xi1>
    %40 = vector.broadcast %cst_11 : f32 to vector<10x10x128xf32>
    %41 = arith.select %39, %14, %40 : vector<10x10x128xi1>, vector<10x10x128xf32>
    %cst_12 = arith.constant 0.000000e+00 : f32
    %42 = vector.broadcast %cst_12 : f32 to vector<8x8x128xf32>
    %43 = vector.extract_strided_slice %41 {offsets = [0, 0, 0], sizes = [8, 8, 128], strides = [1, 1, 1]} : vector<10x10x128xf32> to vector<8x8x128xf32>
    %c0_13 = arith.constant 0 : index
    %c0_14 = arith.constant 0 : index
    %44 = vector.load %arg5[%c0_13, %c0_14] : memref<9x128xf32, #tpu.memory_space<vmem>>, vector<1x128xf32>
    %45 = vector.shape_cast %44 : vector<1x128xf32> to vector<128xf32>
    %46 = vector.shape_cast %45 : vector<128xf32> to vector<1x1x128xf32>
    %47 = vector.broadcast %46 : vector<1x1x128xf32> to vector<8x8x128xf32>
    %48 = arith.mulf %43, %47 : vector<8x8x128xf32>
    %49 = arith.addf %42, %48 : vector<8x8x128xf32>
    %50 = vector.extract_strided_slice %41 {offsets = [0, 1, 0], sizes = [8, 8, 128], strides = [1, 1, 1]} : vector<10x10x128xf32> to vector<8x8x128xf32>
    %c1 = arith.constant 1 : index
    %c0_15 = arith.constant 0 : index
    %51 = vector.load %arg5[%c1, %c0_15] : memref<9x128xf32, #tpu.memory_space<vmem>>, vector<1x128xf32>
    %52 = vector.shape_cast %51 : vector<1x128xf32> to vector<128xf32>
    %53 = vector.shape_cast %52 : vector<128xf32> to vector<1x1x128xf32>
    %54 = vector.broadcast %53 : vector<1x1x128xf32> to vector<8x8x128xf32>
    %55 = arith.mulf %50, %54 : vector<8x8x128xf32>
    %56 = arith.addf %49, %55 : vector<8x8x128xf32>
    %57 = vector.extract_strided_slice %41 {offsets = [0, 2, 0], sizes = [8, 8, 128], strides = [1, 1, 1]} : vector<10x10x128xf32> to vector<8x8x128xf32>
    %c2 = arith.constant 2 : index
    %c0_16 = arith.constant 0 : index
    %58 = vector.load %arg5[%c2, %c0_16] : memref<9x128xf32, #tpu.memory_space<vmem>>, vector<1x128xf32>
    %59 = vector.shape_cast %58 : vector<1x128xf32> to vector<128xf32>
    %60 = vector.shape_cast %59 : vector<128xf32> to vector<1x1x128xf32>
    %61 = vector.broadcast %60 : vector<1x1x128xf32> to vector<8x8x128xf32>
    %62 = arith.mulf %57, %61 : vector<8x8x128xf32>
    %63 = arith.addf %56, %62 : vector<8x8x128xf32>
    %64 = vector.extract_strided_slice %41 {offsets = [1, 0, 0], sizes = [8, 8, 128], strides = [1, 1, 1]} : vector<10x10x128xf32> to vector<8x8x128xf32>
    %c3 = arith.constant 3 : index
    %c0_17 = arith.constant 0 : index
    %65 = vector.load %arg5[%c3, %c0_17] : memref<9x128xf32, #tpu.memory_space<vmem>>, vector<1x128xf32>
    %66 = vector.shape_cast %65 : vector<1x128xf32> to vector<128xf32>
    %67 = vector.shape_cast %66 : vector<128xf32> to vector<1x1x128xf32>
    %68 = vector.broadcast %67 : vector<1x1x128xf32> to vector<8x8x128xf32>
    %69 = arith.mulf %64, %68 : vector<8x8x128xf32>
    %70 = arith.addf %63, %69 : vector<8x8x128xf32>
    %71 = vector.extract_strided_slice %41 {offsets = [1, 1, 0], sizes = [8, 8, 128], strides = [1, 1, 1]} : vector<10x10x128xf32> to vector<8x8x128xf32>
    %c4 = arith.constant 4 : index
    %c0_18 = arith.constant 0 : index
    %72 = vector.load %arg5[%c4, %c0_18] : memref<9x128xf32, #tpu.memory_space<vmem>>, vector<1x128xf32>
    %73 = vector.shape_cast %72 : vector<1x128xf32> to vector<128xf32>
    %74 = vector.shape_cast %73 : vector<128xf32> to vector<1x1x128xf32>
    %75 = vector.broadcast %74 : vector<1x1x128xf32> to vector<8x8x128xf32>
    %76 = arith.mulf %71, %75 : vector<8x8x128xf32>
    %77 = arith.addf %70, %76 : vector<8x8x128xf32>
    %78 = vector.extract_strided_slice %41 {offsets = [1, 2, 0], sizes = [8, 8, 128], strides = [1, 1, 1]} : vector<10x10x128xf32> to vector<8x8x128xf32>
    %c5 = arith.constant 5 : index
    %c0_19 = arith.constant 0 : index
    %79 = vector.load %arg5[%c5, %c0_19] : memref<9x128xf32, #tpu.memory_space<vmem>>, vector<1x128xf32>
    %80 = vector.shape_cast %79 : vector<1x128xf32> to vector<128xf32>
    %81 = vector.shape_cast %80 : vector<128xf32> to vector<1x1x128xf32>
    %82 = vector.broadcast %81 : vector<1x1x128xf32> to vector<8x8x128xf32>
    %83 = arith.mulf %78, %82 : vector<8x8x128xf32>
    %84 = arith.addf %77, %83 : vector<8x8x128xf32>
    %85 = vector.extract_strided_slice %41 {offsets = [2, 0, 0], sizes = [8, 8, 128], strides = [1, 1, 1]} : vector<10x10x128xf32> to vector<8x8x128xf32>
    %c6 = arith.constant 6 : index
    %c0_20 = arith.constant 0 : index
    %86 = vector.load %arg5[%c6, %c0_20] : memref<9x128xf32, #tpu.memory_space<vmem>>, vector<1x128xf32>
    %87 = vector.shape_cast %86 : vector<1x128xf32> to vector<128xf32>
    %88 = vector.shape_cast %87 : vector<128xf32> to vector<1x1x128xf32>
    %89 = vector.broadcast %88 : vector<1x1x128xf32> to vector<8x8x128xf32>
    %90 = arith.mulf %85, %89 : vector<8x8x128xf32>
    %91 = arith.addf %84, %90 : vector<8x8x128xf32>
    %92 = vector.extract_strided_slice %41 {offsets = [2, 1, 0], sizes = [8, 8, 128], strides = [1, 1, 1]} : vector<10x10x128xf32> to vector<8x8x128xf32>
    %c7 = arith.constant 7 : index
    %c0_21 = arith.constant 0 : index
    %93 = vector.load %arg5[%c7, %c0_21] : memref<9x128xf32, #tpu.memory_space<vmem>>, vector<1x128xf32>
    %94 = vector.shape_cast %93 : vector<1x128xf32> to vector<128xf32>
    %95 = vector.shape_cast %94 : vector<128xf32> to vector<1x1x128xf32>
    %96 = vector.broadcast %95 : vector<1x1x128xf32> to vector<8x8x128xf32>
    %97 = arith.mulf %92, %96 : vector<8x8x128xf32>
    %98 = arith.addf %91, %97 : vector<8x8x128xf32>
    %99 = vector.extract_strided_slice %41 {offsets = [2, 2, 0], sizes = [8, 8, 128], strides = [1, 1, 1]} : vector<10x10x128xf32> to vector<8x8x128xf32>
    %c8 = arith.constant 8 : index
    %c0_22 = arith.constant 0 : index
    %100 = vector.load %arg5[%c8, %c0_22] : memref<9x128xf32, #tpu.memory_space<vmem>>, vector<1x128xf32>
    %101 = vector.shape_cast %100 : vector<1x128xf32> to vector<128xf32>
    %102 = vector.shape_cast %101 : vector<128xf32> to vector<1x1x128xf32>
    %103 = vector.broadcast %102 : vector<1x1x128xf32> to vector<8x8x128xf32>
    %104 = arith.mulf %99, %103 : vector<8x8x128xf32>
    %105 = arith.addf %98, %104 : vector<8x8x128xf32>
    %106 = vector.shape_cast %105 : vector<8x8x128xf32> to vector<1x8x8x128xf32>
    %107 = arith.truncf %106 : vector<1x8x8x128xf32> to vector<1x8x8x128xbf16>
    %c0_23 = arith.constant 0 : index
    %c0_24 = arith.constant 0 : index
    %c0_25 = arith.constant 0 : index
    %c0_26 = arith.constant 0 : index
    %108 = vector.load %arg6[%c0_23, %c0_24, %c0_25, %c0_26] : memref<1x8x8x128xbf16, #tpu.memory_space<vmem>>, vector<1x8x8x128xbf16>
    tpu.vector_store %arg6[%c0_23, %c0_24, %c0_25, %c0_26], %107 {strides = array<i32>} : memref<1x8x8x128xbf16, #tpu.memory_space<vmem>>, vector<1x8x8x128xbf16>,
    %cst_27 = arith.constant dense<0.000000e+00> : vector<128xf32>
    %109 = vector.multi_reduction <add>, %105, %cst_27 [0, 1] : vector<8x8x128xf32> to vector<128xf32>
    %110 = vector.shape_cast %109 : vector<128xf32> to vector<1x1x128xf32>
    %c0_28 = arith.constant 0 : index
    %c0_29 = arith.constant 0 : index
    %c0_30 = arith.constant 0 : index
    %111 = vector.load %arg7[%c0_28, %c0_29, %c0_30] : memref<1x1x128xf32, #tpu.memory_space<vmem>>, vector<1x1x128xf32>
    tpu.vector_store %arg7[%c0_28, %c0_29, %c0_30], %110 {strides = array<i32>} : memref<1x1x128xf32, #tpu.memory_space<vmem>>, vector<1x1x128xf32>,
    %112 = arith.mulf %105, %105 : vector<8x8x128xf32>
    %cst_31 = arith.constant dense<0.000000e+00> : vector<128xf32>
    %113 = vector.multi_reduction <add>, %112, %cst_31 [0, 1] : vector<8x8x128xf32> to vector<128xf32>
    %114 = vector.shape_cast %113 : vector<128xf32> to vector<1x1x128xf32>
    %c0_32 = arith.constant 0 : index
    %c0_33 = arith.constant 0 : index
    %c0_34 = arith.constant 0 : index
    %115 = vector.load %arg8[%c0_32, %c0_33, %c0_34] : memref<1x1x128xf32, #tpu.memory_space<vmem>>, vector<1x1x128xf32>
    tpu.vector_store %arg8[%c0_32, %c0_33, %c0_34], %114 {strides = array<i32>} : memref<1x1x128xf32, #tpu.memory_space<vmem>>, vector<1x1x128xf32>,
    return
  }
  func.func @transform_0(%arg0: i32, %arg1: i32) -> (i32, i32, i32, i32) {
    %c0_i32 = arith.constant 0 : i32
    %c0_i32_0 = arith.constant 0 : i32
    %c0_i32_1 = arith.constant 0 : i32
    %c0_i32_2 = arith.constant 0 : i32
    return %arg0, %c0_i32, %c0_i32_0, %c0_i32_1 : i32, i32, i32, i32
  }
  func.func @transform_1(%arg0: i32, %arg1: i32) -> (i32, i32) {
    %c0_i32 = arith.constant 0 : i32
    %c0_i32_0 = arith.constant 0 : i32
    %c0_i32_1 = arith.constant 0 : i32
    return %c0_i32, %c0_i32_0 : i32, i32
  }
  func.func @transform_2(%arg0: i32, %arg1: i32) -> (i32, i32) {
    %c0_i32 = arith.constant 0 : i32
    %c0_i32_0 = arith.constant 0 : i32
    %c0_i32_1 = arith.constant 0 : i32
    return %c0_i32, %c0_i32_0 : i32, i32
  }
  func.func @transform_3(%arg0: i32, %arg1: i32) -> (i32, i32) {
    %c0_i32 = arith.constant 0 : i32
    %c0_i32_0 = arith.constant 0 : i32
    %c0_i32_1 = arith.constant 0 : i32
    return %c0_i32, %c0_i32_0 : i32, i32
  }
  func.func @transform_4(%arg0: i32, %arg1: i32) -> (i32, i32, i32, i32) {
    %c0_i32 = arith.constant 0 : i32
    %c0_i32_0 = arith.constant 0 : i32
    %c0_i32_1 = arith.constant 0 : i32
    return %arg0, %arg1, %c0_i32, %c0_i32_0 : i32, i32, i32, i32
  }
  func.func @transform_5(%arg0: i32, %arg1: i32) -> (i32, i32, i32) {
    %c1_i32 = arith.constant 1 : i32
    %0 = arith.muli %arg0, %c1_i32 : i32
    %1 = arith.addi %0, %arg1 : i32
    %c0_i32 = arith.constant 0 : i32
    %c0_i32_0 = arith.constant 0 : i32
    %c0_i32_1 = arith.constant 0 : i32
    return %1, %c0_i32, %c0_i32_0 : i32, i32, i32
  }
  func.func @transform_6(%arg0: i32, %arg1: i32) -> (i32, i32, i32) {
    %c1_i32 = arith.constant 1 : i32
    %0 = arith.muli %arg0, %c1_i32 : i32
    %1 = arith.addi %0, %arg1 : i32
    %c0_i32 = arith.constant 0 : i32
    %c0_i32_0 = arith.constant 0 : i32
    %c0_i32_1 = arith.constant 0 : i32
    return %1, %c0_i32, %c0_i32_0 : i32, i32, i32
  }
}

module attributes {stable_mosaic.version = 11 : i64} {
  func.func @_matmul_fused_kernel(%arg0: i32, %arg1: memref<128x128xbf16, #tpu.memory_space<vmem>>, %arg2: memref<1x128xf32, #tpu.memory_space<vmem>>, %arg3: memref<1x128xf32, #tpu.memory_space<vmem>>, %arg4: memref<128x128xbf16, #tpu.memory_space<vmem>>, %arg5: memref<128x128xbf16, #tpu.memory_space<vmem>>, %arg6: memref<1x1x128xf32, #tpu.memory_space<vmem>>, %arg7: memref<1x1x128xf32, #tpu.memory_space<vmem>>) attributes {dimension_semantics = [#tpu.dimension_semantics<parallel>], iteration_bounds = array<i64: 1>, scalar_prefetch = 0 : i64, scratch_operands = 0 : i64, tpu.core_type = #tpu.core_type<tc>, window_params = [{transform_indices = @transform_0, window_bounds = array<i64: 128, 128>}, {pipeline_mode = #tpu.pipeline_mode<synchronous>, transform_indices = @transform_1, window_bounds = array<i64: 1, 128>}, {pipeline_mode = #tpu.pipeline_mode<synchronous>, transform_indices = @transform_2, window_bounds = array<i64: 1, 128>}, {pipeline_mode = #tpu.pipeline_mode<synchronous>, transform_indices = @transform_3, window_bounds = array<i64: 128, 128>}, {transform_indices = @transform_4, window_bounds = array<i64: 128, 128>}, {transform_indices = @transform_5, window_bounds = array<i64: 1, 1, 128>}, {transform_indices = @transform_6, window_bounds = array<i64: 1, 1, 128>}]} {
    %c0 = arith.constant 0 : index
    %c0_0 = arith.constant 0 : index
    %0 = vector.load %arg1[%c0, %c0_0] : memref<128x128xbf16, #tpu.memory_space<vmem>>, vector<128x128xbf16>
    %1 = arith.extf %0 : vector<128x128xbf16> to vector<128x128xf32>
    %c0_1 = arith.constant 0 : index
    %c0_2 = arith.constant 0 : index
    %2 = vector.load %arg2[%c0_1, %c0_2] : memref<1x128xf32, #tpu.memory_space<vmem>>, vector<1x128xf32>
    %3 = vector.broadcast %2 : vector<1x128xf32> to vector<128x128xf32>
    %4 = arith.mulf %1, %3 : vector<128x128xf32>
    %c0_3 = arith.constant 0 : index
    %c0_4 = arith.constant 0 : index
    %5 = vector.load %arg3[%c0_3, %c0_4] : memref<1x128xf32, #tpu.memory_space<vmem>>, vector<1x128xf32>
    %6 = vector.broadcast %5 : vector<1x128xf32> to vector<128x128xf32>
    %7 = arith.addf %4, %6 : vector<128x128xf32>
    %cst = arith.constant 0.000000e+00 : f32
    %8 = vector.broadcast %cst : f32 to vector<128x128xf32>
    %9 = arith.maximumf %7, %8 : vector<128x128xf32>
    %10 = arith.truncf %9 : vector<128x128xf32> to vector<128x128xbf16>
    %c0_5 = arith.constant 0 : index
    %c0_6 = arith.constant 0 : index
    %11 = vector.load %arg4[%c0_5, %c0_6] : memref<128x128xbf16, #tpu.memory_space<vmem>>, vector<128x128xbf16>
    %cst_7 = arith.constant dense<0.000000e+00> : vector<128x128xf32>
    %12 = tpu.matmul %10, %11, %cst_7 {dimension_numbers = #tpu.dot_dimension_numbers<[1], [0], [0], [1], [0, 0, 1, 1], [], []>} : vector<128x128xbf16>, vector<128x128xbf16>, vector<128x128xf32> -> vector<128x128xf32>
    %13 = arith.truncf %12 : vector<128x128xf32> to vector<128x128xbf16>
    %c0_8 = arith.constant 0 : index
    %c0_9 = arith.constant 0 : index
    %14 = vector.load %arg5[%c0_8, %c0_9] : memref<128x128xbf16, #tpu.memory_space<vmem>>, vector<128x128xbf16>
    tpu.vector_store %arg5[%c0_8, %c0_9], %13 {strides = array<i32>} : memref<128x128xbf16, #tpu.memory_space<vmem>>, vector<128x128xbf16>,
    %cst_10 = arith.constant dense<0.000000e+00> : vector<128xf32>
    %15 = vector.multi_reduction <add>, %12, %cst_10 [0] : vector<128x128xf32> to vector<128xf32>
    %16 = vector.shape_cast %15 : vector<128xf32> to vector<1x128xf32>
    %17 = vector.shape_cast %16 : vector<1x128xf32> to vector<1x1x128xf32>
    %c0_11 = arith.constant 0 : index
    %c0_12 = arith.constant 0 : index
    %c0_13 = arith.constant 0 : index
    %18 = vector.load %arg6[%c0_11, %c0_12, %c0_13] : memref<1x1x128xf32, #tpu.memory_space<vmem>>, vector<1x1x128xf32>
    tpu.vector_store %arg6[%c0_11, %c0_12, %c0_13], %17 {strides = array<i32>} : memref<1x1x128xf32, #tpu.memory_space<vmem>>, vector<1x1x128xf32>,
    %19 = arith.mulf %12, %12 : vector<128x128xf32>
    %cst_14 = arith.constant dense<0.000000e+00> : vector<128xf32>
    %20 = vector.multi_reduction <add>, %19, %cst_14 [0] : vector<128x128xf32> to vector<128xf32>
    %21 = vector.shape_cast %20 : vector<128xf32> to vector<1x128xf32>
    %22 = vector.shape_cast %21 : vector<1x128xf32> to vector<1x1x128xf32>
    %c0_15 = arith.constant 0 : index
    %c0_16 = arith.constant 0 : index
    %c0_17 = arith.constant 0 : index
    %23 = vector.load %arg7[%c0_15, %c0_16, %c0_17] : memref<1x1x128xf32, #tpu.memory_space<vmem>>, vector<1x1x128xf32>
    tpu.vector_store %arg7[%c0_15, %c0_16, %c0_17], %22 {strides = array<i32>} : memref<1x1x128xf32, #tpu.memory_space<vmem>>, vector<1x1x128xf32>,
    return
  }
  func.func @transform_0(%arg0: i32) -> (i32, i32) {
    %c0_i32 = arith.constant 0 : i32
    %c0_i32_0 = arith.constant 0 : i32
    return %arg0, %c0_i32 : i32, i32
  }
  func.func @transform_1(%arg0: i32) -> (i32, i32) {
    %c0_i32 = arith.constant 0 : i32
    %c0_i32_0 = arith.constant 0 : i32
    %c0_i32_1 = arith.constant 0 : i32
    return %c0_i32, %c0_i32_0 : i32, i32
  }
  func.func @transform_2(%arg0: i32) -> (i32, i32) {
    %c0_i32 = arith.constant 0 : i32
    %c0_i32_0 = arith.constant 0 : i32
    %c0_i32_1 = arith.constant 0 : i32
    return %c0_i32, %c0_i32_0 : i32, i32
  }
  func.func @transform_3(%arg0: i32) -> (i32, i32) {
    %c0_i32 = arith.constant 0 : i32
    %c0_i32_0 = arith.constant 0 : i32
    %c0_i32_1 = arith.constant 0 : i32
    return %c0_i32, %c0_i32_0 : i32, i32
  }
  func.func @transform_4(%arg0: i32) -> (i32, i32) {
    %c0_i32 = arith.constant 0 : i32
    %c0_i32_0 = arith.constant 0 : i32
    return %arg0, %c0_i32 : i32, i32
  }
  func.func @transform_5(%arg0: i32) -> (i32, i32, i32) {
    %c0_i32 = arith.constant 0 : i32
    %c0_i32_0 = arith.constant 0 : i32
    %c0_i32_1 = arith.constant 0 : i32
    return %arg0, %c0_i32, %c0_i32_0 : i32, i32, i32
  }
  func.func @transform_6(%arg0: i32) -> (i32, i32, i32) {
    %c0_i32 = arith.constant 0 : i32
    %c0_i32_0 = arith.constant 0 : i32
    %c0_i32_1 = arith.constant 0 : i32
    return %arg0, %c0_i32, %c0_i32_0 : i32, i32, i32
  }
}

module attributes {stable_mosaic.version = 11 : i64} {
  func.func @_dw_fused_kernel(%arg0: i32, %arg1: i32, %arg2: memref<1x5x5x512xbf16, #tpu.memory_space<vmem>>, %arg3: memref<1x128xf32, #tpu.memory_space<vmem>>, %arg4: memref<1x128xf32, #tpu.memory_space<vmem>>, %arg5: memref<9x128xf32, #tpu.memory_space<vmem>>, %arg6: memref<1x4x4x128xbf16, #tpu.memory_space<vmem>>, %arg7: memref<1x1x128xf32, #tpu.memory_space<vmem>>, %arg8: memref<1x1x128xf32, #tpu.memory_space<vmem>>) attributes {dimension_semantics = [#tpu.dimension_semantics<parallel>, #tpu.dimension_semantics<parallel>], iteration_bounds = array<i64: 2, 1>, scalar_prefetch = 0 : i64, scratch_operands = 0 : i64, tpu.core_type = #tpu.core_type<tc>, window_params = [{transform_indices = @transform_0, window_bounds = array<i64: 1, 5, 5, 512>}, {pipeline_mode = #tpu.pipeline_mode<synchronous>, transform_indices = @transform_1, window_bounds = array<i64: 1, 128>}, {pipeline_mode = #tpu.pipeline_mode<synchronous>, transform_indices = @transform_2, window_bounds = array<i64: 1, 128>}, {pipeline_mode = #tpu.pipeline_mode<synchronous>, transform_indices = @transform_3, window_bounds = array<i64: 9, 128>}, {transform_indices = @transform_4, window_bounds = array<i64: 1, 4, 4, 128>}, {transform_indices = @transform_5, window_bounds = array<i64: 1, 1, 128>}, {transform_indices = @transform_6, window_bounds = array<i64: 1, 1, 128>}]} {
    %c4_i32 = arith.constant 4 : i32
    %0 = arith.muli %arg1, %c4_i32 : i32
    %c0 = arith.constant 0 : index
    %1 = arith.index_cast %0 : i32 to index
    %c0_0 = arith.constant 0 : index
    %c0_1 = arith.constant 0 : index
    %2 = vector.load %arg2[%c0, %1, %c0_0, %c0_1] : memref<1x5x5x512xbf16, #tpu.memory_space<vmem>>, vector<1x5x5x128xbf16>
    %3 = vector.shape_cast %2 : vector<1x5x5x128xbf16> to vector<5x5x128xbf16>
    %4 = arith.extf %3 : vector<5x5x128xbf16> to vector<5x5x128xf32>
    %c0_2 = arith.constant 0 : index
    %c0_3 = arith.constant 0 : index
    %5 = vector.load %arg3[%c0_2, %c0_3] : memref<1x128xf32, #tpu.memory_space<vmem>>, vector<1x128xf32>
    %6 = vector.shape_cast %5 : vector<1x128xf32> to vector<1x1x128xf32>
    %7 = vector.broadcast %6 : vector<1x1x128xf32> to vector<5x5x128xf32>
    %8 = arith.mulf %4, %7 : vector<5x5x128xf32>
    %c0_4 = arith.constant 0 : index
    %c0_5 = arith.constant 0 : index
    %9 = vector.load %arg4[%c0_4, %c0_5] : memref<1x128xf32, #tpu.memory_space<vmem>>, vector<1x128xf32>
    %10 = vector.shape_cast %9 : vector<1x128xf32> to vector<1x1x128xf32>
    %11 = vector.broadcast %10 : vector<1x1x128xf32> to vector<5x5x128xf32>
    %12 = arith.addf %8, %11 : vector<5x5x128xf32>
    %cst = arith.constant 0.000000e+00 : f32
    %13 = vector.broadcast %cst : f32 to vector<5x5x128xf32>
    %14 = arith.maximumf %12, %13 : vector<5x5x128xf32>
    %15 = tpu.iota {dimensions = array<i32: 0>} : vector<5x5x1xi32>
    %16 = tpu.iota {dimensions = array<i32: 1>} : vector<5x5x1xi32>
    %17 = vector.broadcast %0 : i32 to vector<5x5x1xi32>
    %18 = arith.addi %17, %15 : vector<5x5x1xi32>
    %c2_i32 = arith.constant 2 : i32
    %19 = vector.broadcast %c2_i32 : i32 to vector<5x5x1xi32>
    %20 = arith.muli %19, %18 : vector<5x5x1xi32>
    %c0_i32 = arith.constant 0 : i32
    %21 = vector.broadcast %c0_i32 : i32 to vector<5x5x1xi32>
    %22 = arith.addi %21, %20 : vector<5x5x1xi32>
    %c2_i32_6 = arith.constant 2 : i32
    %23 = vector.broadcast %c2_i32_6 : i32 to vector<5x5x1xi32>
    %24 = arith.muli %23, %16 : vector<5x5x1xi32>
    %c0_i32_7 = arith.constant 0 : i32
    %25 = vector.broadcast %c0_i32_7 : i32 to vector<5x5x1xi32>
    %26 = arith.addi %25, %24 : vector<5x5x1xi32>
    %c1_i32 = arith.constant 1 : i32
    %27 = vector.broadcast %c1_i32 : i32 to vector<5x5x1xi32>
    %28 = arith.cmpi sge, %22, %27 : vector<5x5x1xi32>
    %c9_i32 = arith.constant 9 : i32
    %29 = vector.broadcast %c9_i32 : i32 to vector<5x5x1xi32>
    %30 = arith.cmpi slt, %22, %29 : vector<5x5x1xi32>
    %31 = arith.andi %28, %30 : vector<5x5x1xi1>
    %c1_i32_8 = arith.constant 1 : i32
    %32 = vector.broadcast %c1_i32_8 : i32 to vector<5x5x1xi32>
    %33 = arith.cmpi sge, %26, %32 : vector<5x5x1xi32>
    %34 = arith.andi %31, %33 : vector<5x5x1xi1>
    %c9_i32_9 = arith.constant 9 : i32
    %35 = vector.broadcast %c9_i32_9 : i32 to vector<5x5x1xi32>
    %36 = arith.cmpi slt, %26, %35 : vector<5x5x1xi32>
    %37 = arith.andi %34, %36 : vector<5x5x1xi1>
    %cst_10 = arith.constant 0.000000e+00 : f32
    %38 = vector.shape_cast %37 : vector<5x5x1xi1> to vector<5x5x1xi1>
    %39 = vector.broadcast %38 : vector<5x5x1xi1> to vector<5x5x128xi1>
    %40 = vector.broadcast %cst_10 : f32 to vector<5x5x128xf32>
    %41 = arith.select %39, %14, %40 : vector<5x5x128xi1>, vector<5x5x128xf32>
    %c0_11 = arith.constant 0 : index
    %42 = arith.index_cast %0 : i32 to index
    %c0_12 = arith.constant 0 : index
    %c128 = arith.constant 128 : index
    %43 = vector.load %arg2[%c0_11, %42, %c0_12, %c128] : memref<1x5x5x512xbf16, #tpu.memory_space<vmem>>, vector<1x5x5x128xbf16>
    %44 = vector.shape_cast %43 : vector<1x5x5x128xbf16> to vector<5x5x128xbf16>
    %45 = arith.extf %44 : vector<5x5x128xbf16> to vector<5x5x128xf32>
    %c0_13 = arith.constant 0 : index
    %c0_14 = arith.constant 0 : index
    %46 = vector.load %arg3[%c0_13, %c0_14] : memref<1x128xf32, #tpu.memory_space<vmem>>, vector<1x128xf32>
    %47 = vector.shape_cast %46 : vector<1x128xf32> to vector<1x1x128xf32>
    %48 = vector.broadcast %47 : vector<1x1x128xf32> to vector<5x5x128xf32>
    %49 = arith.mulf %45, %48 : vector<5x5x128xf32>
    %c0_15 = arith.constant 0 : index
    %c0_16 = arith.constant 0 : index
    %50 = vector.load %arg4[%c0_15, %c0_16] : memref<1x128xf32, #tpu.memory_space<vmem>>, vector<1x128xf32>
    %51 = vector.shape_cast %50 : vector<1x128xf32> to vector<1x1x128xf32>
    %52 = vector.broadcast %51 : vector<1x1x128xf32> to vector<5x5x128xf32>
    %53 = arith.addf %49, %52 : vector<5x5x128xf32>
    %cst_17 = arith.constant 0.000000e+00 : f32
    %54 = vector.broadcast %cst_17 : f32 to vector<5x5x128xf32>
    %55 = arith.maximumf %53, %54 : vector<5x5x128xf32>
    %56 = tpu.iota {dimensions = array<i32: 0>} : vector<5x5x1xi32>
    %57 = tpu.iota {dimensions = array<i32: 1>} : vector<5x5x1xi32>
    %58 = vector.broadcast %0 : i32 to vector<5x5x1xi32>
    %59 = arith.addi %58, %56 : vector<5x5x1xi32>
    %c2_i32_18 = arith.constant 2 : i32
    %60 = vector.broadcast %c2_i32_18 : i32 to vector<5x5x1xi32>
    %61 = arith.muli %60, %59 : vector<5x5x1xi32>
    %c0_i32_19 = arith.constant 0 : i32
    %62 = vector.broadcast %c0_i32_19 : i32 to vector<5x5x1xi32>
    %63 = arith.addi %62, %61 : vector<5x5x1xi32>
    %c2_i32_20 = arith.constant 2 : i32
    %64 = vector.broadcast %c2_i32_20 : i32 to vector<5x5x1xi32>
    %65 = arith.muli %64, %57 : vector<5x5x1xi32>
    %c1_i32_21 = arith.constant 1 : i32
    %66 = vector.broadcast %c1_i32_21 : i32 to vector<5x5x1xi32>
    %67 = arith.addi %66, %65 : vector<5x5x1xi32>
    %c1_i32_22 = arith.constant 1 : i32
    %68 = vector.broadcast %c1_i32_22 : i32 to vector<5x5x1xi32>
    %69 = arith.cmpi sge, %63, %68 : vector<5x5x1xi32>
    %c9_i32_23 = arith.constant 9 : i32
    %70 = vector.broadcast %c9_i32_23 : i32 to vector<5x5x1xi32>
    %71 = arith.cmpi slt, %63, %70 : vector<5x5x1xi32>
    %72 = arith.andi %69, %71 : vector<5x5x1xi1>
    %c1_i32_24 = arith.constant 1 : i32
    %73 = vector.broadcast %c1_i32_24 : i32 to vector<5x5x1xi32>
    %74 = arith.cmpi sge, %67, %73 : vector<5x5x1xi32>
    %75 = arith.andi %72, %74 : vector<5x5x1xi1>
    %c9_i32_25 = arith.constant 9 : i32
    %76 = vector.broadcast %c9_i32_25 : i32 to vector<5x5x1xi32>
    %77 = arith.cmpi slt, %67, %76 : vector<5x5x1xi32>
    %78 = arith.andi %75, %77 : vector<5x5x1xi1>
    %cst_26 = arith.constant 0.000000e+00 : f32
    %79 = vector.shape_cast %78 : vector<5x5x1xi1> to vector<5x5x1xi1>
    %80 = vector.broadcast %79 : vector<5x5x1xi1> to vector<5x5x128xi1>
    %81 = vector.broadcast %cst_26 : f32 to vector<5x5x128xf32>
    %82 = arith.select %80, %55, %81 : vector<5x5x128xi1>, vector<5x5x128xf32>
    %c0_27 = arith.constant 0 : index
    %83 = arith.index_cast %0 : i32 to index
    %c0_28 = arith.constant 0 : index
    %c256 = arith.constant 256 : index
    %84 = vector.load %arg2[%c0_27, %83, %c0_28, %c256] : memref<1x5x5x512xbf16, #tpu.memory_space<vmem>>, vector<1x5x5x128xbf16>
    %85 = vector.shape_cast %84 : vector<1x5x5x128xbf16> to vector<5x5x128xbf16>
    %86 = arith.extf %85 : vector<5x5x128xbf16> to vector<5x5x128xf32>
    %c0_29 = arith.constant 0 : index
    %c0_30 = arith.constant 0 : index
    %87 = vector.load %arg3[%c0_29, %c0_30] : memref<1x128xf32, #tpu.memory_space<vmem>>, vector<1x128xf32>
    %88 = vector.shape_cast %87 : vector<1x128xf32> to vector<1x1x128xf32>
    %89 = vector.broadcast %88 : vector<1x1x128xf32> to vector<5x5x128xf32>
    %90 = arith.mulf %86, %89 : vector<5x5x128xf32>
    %c0_31 = arith.constant 0 : index
    %c0_32 = arith.constant 0 : index
    %91 = vector.load %arg4[%c0_31, %c0_32] : memref<1x128xf32, #tpu.memory_space<vmem>>, vector<1x128xf32>
    %92 = vector.shape_cast %91 : vector<1x128xf32> to vector<1x1x128xf32>
    %93 = vector.broadcast %92 : vector<1x1x128xf32> to vector<5x5x128xf32>
    %94 = arith.addf %90, %93 : vector<5x5x128xf32>
    %cst_33 = arith.constant 0.000000e+00 : f32
    %95 = vector.broadcast %cst_33 : f32 to vector<5x5x128xf32>
    %96 = arith.maximumf %94, %95 : vector<5x5x128xf32>
    %97 = tpu.iota {dimensions = array<i32: 0>} : vector<5x5x1xi32>
    %98 = tpu.iota {dimensions = array<i32: 1>} : vector<5x5x1xi32>
    %99 = vector.broadcast %0 : i32 to vector<5x5x1xi32>
    %100 = arith.addi %99, %97 : vector<5x5x1xi32>
    %c2_i32_34 = arith.constant 2 : i32
    %101 = vector.broadcast %c2_i32_34 : i32 to vector<5x5x1xi32>
    %102 = arith.muli %101, %100 : vector<5x5x1xi32>
    %c1_i32_35 = arith.constant 1 : i32
    %103 = vector.broadcast %c1_i32_35 : i32 to vector<5x5x1xi32>
    %104 = arith.addi %103, %102 : vector<5x5x1xi32>
    %c2_i32_36 = arith.constant 2 : i32
    %105 = vector.broadcast %c2_i32_36 : i32 to vector<5x5x1xi32>
    %106 = arith.muli %105, %98 : vector<5x5x1xi32>
    %c0_i32_37 = arith.constant 0 : i32
    %107 = vector.broadcast %c0_i32_37 : i32 to vector<5x5x1xi32>
    %108 = arith.addi %107, %106 : vector<5x5x1xi32>
    %c1_i32_38 = arith.constant 1 : i32
    %109 = vector.broadcast %c1_i32_38 : i32 to vector<5x5x1xi32>
    %110 = arith.cmpi sge, %104, %109 : vector<5x5x1xi32>
    %c9_i32_39 = arith.constant 9 : i32
    %111 = vector.broadcast %c9_i32_39 : i32 to vector<5x5x1xi32>
    %112 = arith.cmpi slt, %104, %111 : vector<5x5x1xi32>
    %113 = arith.andi %110, %112 : vector<5x5x1xi1>
    %c1_i32_40 = arith.constant 1 : i32
    %114 = vector.broadcast %c1_i32_40 : i32 to vector<5x5x1xi32>
    %115 = arith.cmpi sge, %108, %114 : vector<5x5x1xi32>
    %116 = arith.andi %113, %115 : vector<5x5x1xi1>
    %c9_i32_41 = arith.constant 9 : i32
    %117 = vector.broadcast %c9_i32_41 : i32 to vector<5x5x1xi32>
    %118 = arith.cmpi slt, %108, %117 : vector<5x5x1xi32>
    %119 = arith.andi %116, %118 : vector<5x5x1xi1>
    %cst_42 = arith.constant 0.000000e+00 : f32
    %120 = vector.shape_cast %119 : vector<5x5x1xi1> to vector<5x5x1xi1>
    %121 = vector.broadcast %120 : vector<5x5x1xi1> to vector<5x5x128xi1>
    %122 = vector.broadcast %cst_42 : f32 to vector<5x5x128xf32>
    %123 = arith.select %121, %96, %122 : vector<5x5x128xi1>, vector<5x5x128xf32>
    %c0_43 = arith.constant 0 : index
    %124 = arith.index_cast %0 : i32 to index
    %c0_44 = arith.constant 0 : index
    %c384 = arith.constant 384 : index
    %125 = vector.load %arg2[%c0_43, %124, %c0_44, %c384] : memref<1x5x5x512xbf16, #tpu.memory_space<vmem>>, vector<1x5x5x128xbf16>
    %126 = vector.shape_cast %125 : vector<1x5x5x128xbf16> to vector<5x5x128xbf16>
    %127 = arith.extf %126 : vector<5x5x128xbf16> to vector<5x5x128xf32>
    %c0_45 = arith.constant 0 : index
    %c0_46 = arith.constant 0 : index
    %128 = vector.load %arg3[%c0_45, %c0_46] : memref<1x128xf32, #tpu.memory_space<vmem>>, vector<1x128xf32>
    %129 = vector.shape_cast %128 : vector<1x128xf32> to vector<1x1x128xf32>
    %130 = vector.broadcast %129 : vector<1x1x128xf32> to vector<5x5x128xf32>
    %131 = arith.mulf %127, %130 : vector<5x5x128xf32>
    %c0_47 = arith.constant 0 : index
    %c0_48 = arith.constant 0 : index
    %132 = vector.load %arg4[%c0_47, %c0_48] : memref<1x128xf32, #tpu.memory_space<vmem>>, vector<1x128xf32>
    %133 = vector.shape_cast %132 : vector<1x128xf32> to vector<1x1x128xf32>
    %134 = vector.broadcast %133 : vector<1x1x128xf32> to vector<5x5x128xf32>
    %135 = arith.addf %131, %134 : vector<5x5x128xf32>
    %cst_49 = arith.constant 0.000000e+00 : f32
    %136 = vector.broadcast %cst_49 : f32 to vector<5x5x128xf32>
    %137 = arith.maximumf %135, %136 : vector<5x5x128xf32>
    %138 = tpu.iota {dimensions = array<i32: 0>} : vector<5x5x1xi32>
    %139 = tpu.iota {dimensions = array<i32: 1>} : vector<5x5x1xi32>
    %140 = vector.broadcast %0 : i32 to vector<5x5x1xi32>
    %141 = arith.addi %140, %138 : vector<5x5x1xi32>
    %c2_i32_50 = arith.constant 2 : i32
    %142 = vector.broadcast %c2_i32_50 : i32 to vector<5x5x1xi32>
    %143 = arith.muli %142, %141 : vector<5x5x1xi32>
    %c1_i32_51 = arith.constant 1 : i32
    %144 = vector.broadcast %c1_i32_51 : i32 to vector<5x5x1xi32>
    %145 = arith.addi %144, %143 : vector<5x5x1xi32>
    %c2_i32_52 = arith.constant 2 : i32
    %146 = vector.broadcast %c2_i32_52 : i32 to vector<5x5x1xi32>
    %147 = arith.muli %146, %139 : vector<5x5x1xi32>
    %c1_i32_53 = arith.constant 1 : i32
    %148 = vector.broadcast %c1_i32_53 : i32 to vector<5x5x1xi32>
    %149 = arith.addi %148, %147 : vector<5x5x1xi32>
    %c1_i32_54 = arith.constant 1 : i32
    %150 = vector.broadcast %c1_i32_54 : i32 to vector<5x5x1xi32>
    %151 = arith.cmpi sge, %145, %150 : vector<5x5x1xi32>
    %c9_i32_55 = arith.constant 9 : i32
    %152 = vector.broadcast %c9_i32_55 : i32 to vector<5x5x1xi32>
    %153 = arith.cmpi slt, %145, %152 : vector<5x5x1xi32>
    %154 = arith.andi %151, %153 : vector<5x5x1xi1>
    %c1_i32_56 = arith.constant 1 : i32
    %155 = vector.broadcast %c1_i32_56 : i32 to vector<5x5x1xi32>
    %156 = arith.cmpi sge, %149, %155 : vector<5x5x1xi32>
    %157 = arith.andi %154, %156 : vector<5x5x1xi1>
    %c9_i32_57 = arith.constant 9 : i32
    %158 = vector.broadcast %c9_i32_57 : i32 to vector<5x5x1xi32>
    %159 = arith.cmpi slt, %149, %158 : vector<5x5x1xi32>
    %160 = arith.andi %157, %159 : vector<5x5x1xi1>
    %cst_58 = arith.constant 0.000000e+00 : f32
    %161 = vector.shape_cast %160 : vector<5x5x1xi1> to vector<5x5x1xi1>
    %162 = vector.broadcast %161 : vector<5x5x1xi1> to vector<5x5x128xi1>
    %163 = vector.broadcast %cst_58 : f32 to vector<5x5x128xf32>
    %164 = arith.select %162, %137, %163 : vector<5x5x128xi1>, vector<5x5x128xf32>
    %cst_59 = arith.constant 0.000000e+00 : f32
    %165 = vector.broadcast %cst_59 : f32 to vector<4x4x128xf32>
    %166 = vector.extract_strided_slice %41 {offsets = [0, 0, 0], sizes = [4, 4, 128], strides = [1, 1, 1]} : vector<5x5x128xf32> to vector<4x4x128xf32>
    %c0_60 = arith.constant 0 : index
    %c0_61 = arith.constant 0 : index
    %167 = vector.load %arg5[%c0_60, %c0_61] : memref<9x128xf32, #tpu.memory_space<vmem>>, vector<1x128xf32>
    %168 = vector.shape_cast %167 : vector<1x128xf32> to vector<128xf32>
    %169 = vector.shape_cast %168 : vector<128xf32> to vector<1x1x128xf32>
    %170 = vector.broadcast %169 : vector<1x1x128xf32> to vector<4x4x128xf32>
    %171 = arith.mulf %166, %170 : vector<4x4x128xf32>
    %172 = arith.addf %165, %171 : vector<4x4x128xf32>
    %173 = vector.extract_strided_slice %82 {offsets = [0, 0, 0], sizes = [4, 4, 128], strides = [1, 1, 1]} : vector<5x5x128xf32> to vector<4x4x128xf32>
    %c1 = arith.constant 1 : index
    %c0_62 = arith.constant 0 : index
    %174 = vector.load %arg5[%c1, %c0_62] : memref<9x128xf32, #tpu.memory_space<vmem>>, vector<1x128xf32>
    %175 = vector.shape_cast %174 : vector<1x128xf32> to vector<128xf32>
    %176 = vector.shape_cast %175 : vector<128xf32> to vector<1x1x128xf32>
    %177 = vector.broadcast %176 : vector<1x1x128xf32> to vector<4x4x128xf32>
    %178 = arith.mulf %173, %177 : vector<4x4x128xf32>
    %179 = arith.addf %172, %178 : vector<4x4x128xf32>
    %180 = vector.extract_strided_slice %41 {offsets = [0, 1, 0], sizes = [4, 4, 128], strides = [1, 1, 1]} : vector<5x5x128xf32> to vector<4x4x128xf32>
    %c2 = arith.constant 2 : index
    %c0_63 = arith.constant 0 : index
    %181 = vector.load %arg5[%c2, %c0_63] : memref<9x128xf32, #tpu.memory_space<vmem>>, vector<1x128xf32>
    %182 = vector.shape_cast %181 : vector<1x128xf32> to vector<128xf32>
    %183 = vector.shape_cast %182 : vector<128xf32> to vector<1x1x128xf32>
    %184 = vector.broadcast %183 : vector<1x1x128xf32> to vector<4x4x128xf32>
    %185 = arith.mulf %180, %184 : vector<4x4x128xf32>
    %186 = arith.addf %179, %185 : vector<4x4x128xf32>
    %187 = vector.extract_strided_slice %123 {offsets = [0, 0, 0], sizes = [4, 4, 128], strides = [1, 1, 1]} : vector<5x5x128xf32> to vector<4x4x128xf32>
    %c3 = arith.constant 3 : index
    %c0_64 = arith.constant 0 : index
    %188 = vector.load %arg5[%c3, %c0_64] : memref<9x128xf32, #tpu.memory_space<vmem>>, vector<1x128xf32>
    %189 = vector.shape_cast %188 : vector<1x128xf32> to vector<128xf32>
    %190 = vector.shape_cast %189 : vector<128xf32> to vector<1x1x128xf32>
    %191 = vector.broadcast %190 : vector<1x1x128xf32> to vector<4x4x128xf32>
    %192 = arith.mulf %187, %191 : vector<4x4x128xf32>
    %193 = arith.addf %186, %192 : vector<4x4x128xf32>
    %194 = vector.extract_strided_slice %164 {offsets = [0, 0, 0], sizes = [4, 4, 128], strides = [1, 1, 1]} : vector<5x5x128xf32> to vector<4x4x128xf32>
    %c4 = arith.constant 4 : index
    %c0_65 = arith.constant 0 : index
    %195 = vector.load %arg5[%c4, %c0_65] : memref<9x128xf32, #tpu.memory_space<vmem>>, vector<1x128xf32>
    %196 = vector.shape_cast %195 : vector<1x128xf32> to vector<128xf32>
    %197 = vector.shape_cast %196 : vector<128xf32> to vector<1x1x128xf32>
    %198 = vector.broadcast %197 : vector<1x1x128xf32> to vector<4x4x128xf32>
    %199 = arith.mulf %194, %198 : vector<4x4x128xf32>
    %200 = arith.addf %193, %199 : vector<4x4x128xf32>
    %201 = vector.extract_strided_slice %123 {offsets = [0, 1, 0], sizes = [4, 4, 128], strides = [1, 1, 1]} : vector<5x5x128xf32> to vector<4x4x128xf32>
    %c5 = arith.constant 5 : index
    %c0_66 = arith.constant 0 : index
    %202 = vector.load %arg5[%c5, %c0_66] : memref<9x128xf32, #tpu.memory_space<vmem>>, vector<1x128xf32>
    %203 = vector.shape_cast %202 : vector<1x128xf32> to vector<128xf32>
    %204 = vector.shape_cast %203 : vector<128xf32> to vector<1x1x128xf32>
    %205 = vector.broadcast %204 : vector<1x1x128xf32> to vector<4x4x128xf32>
    %206 = arith.mulf %201, %205 : vector<4x4x128xf32>
    %207 = arith.addf %200, %206 : vector<4x4x128xf32>
    %208 = vector.extract_strided_slice %41 {offsets = [1, 0, 0], sizes = [4, 4, 128], strides = [1, 1, 1]} : vector<5x5x128xf32> to vector<4x4x128xf32>
    %c6 = arith.constant 6 : index
    %c0_67 = arith.constant 0 : index
    %209 = vector.load %arg5[%c6, %c0_67] : memref<9x128xf32, #tpu.memory_space<vmem>>, vector<1x128xf32>
    %210 = vector.shape_cast %209 : vector<1x128xf32> to vector<128xf32>
    %211 = vector.shape_cast %210 : vector<128xf32> to vector<1x1x128xf32>
    %212 = vector.broadcast %211 : vector<1x1x128xf32> to vector<4x4x128xf32>
    %213 = arith.mulf %208, %212 : vector<4x4x128xf32>
    %214 = arith.addf %207, %213 : vector<4x4x128xf32>
    %215 = vector.extract_strided_slice %82 {offsets = [1, 0, 0], sizes = [4, 4, 128], strides = [1, 1, 1]} : vector<5x5x128xf32> to vector<4x4x128xf32>
    %c7 = arith.constant 7 : index
    %c0_68 = arith.constant 0 : index
    %216 = vector.load %arg5[%c7, %c0_68] : memref<9x128xf32, #tpu.memory_space<vmem>>, vector<1x128xf32>
    %217 = vector.shape_cast %216 : vector<1x128xf32> to vector<128xf32>
    %218 = vector.shape_cast %217 : vector<128xf32> to vector<1x1x128xf32>
    %219 = vector.broadcast %218 : vector<1x1x128xf32> to vector<4x4x128xf32>
    %220 = arith.mulf %215, %219 : vector<4x4x128xf32>
    %221 = arith.addf %214, %220 : vector<4x4x128xf32>
    %222 = vector.extract_strided_slice %41 {offsets = [1, 1, 0], sizes = [4, 4, 128], strides = [1, 1, 1]} : vector<5x5x128xf32> to vector<4x4x128xf32>
    %c8 = arith.constant 8 : index
    %c0_69 = arith.constant 0 : index
    %223 = vector.load %arg5[%c8, %c0_69] : memref<9x128xf32, #tpu.memory_space<vmem>>, vector<1x128xf32>
    %224 = vector.shape_cast %223 : vector<1x128xf32> to vector<128xf32>
    %225 = vector.shape_cast %224 : vector<128xf32> to vector<1x1x128xf32>
    %226 = vector.broadcast %225 : vector<1x1x128xf32> to vector<4x4x128xf32>
    %227 = arith.mulf %222, %226 : vector<4x4x128xf32>
    %228 = arith.addf %221, %227 : vector<4x4x128xf32>
    %229 = vector.shape_cast %228 : vector<4x4x128xf32> to vector<1x4x4x128xf32>
    %230 = arith.truncf %229 : vector<1x4x4x128xf32> to vector<1x4x4x128xbf16>
    %c0_70 = arith.constant 0 : index
    %c0_71 = arith.constant 0 : index
    %c0_72 = arith.constant 0 : index
    %c0_73 = arith.constant 0 : index
    %231 = vector.load %arg6[%c0_70, %c0_71, %c0_72, %c0_73] : memref<1x4x4x128xbf16, #tpu.memory_space<vmem>>, vector<1x4x4x128xbf16>
    tpu.vector_store %arg6[%c0_70, %c0_71, %c0_72, %c0_73], %230 {strides = array<i32>} : memref<1x4x4x128xbf16, #tpu.memory_space<vmem>>, vector<1x4x4x128xbf16>,
    %cst_74 = arith.constant dense<0.000000e+00> : vector<128xf32>
    %232 = vector.multi_reduction <add>, %228, %cst_74 [0, 1] : vector<4x4x128xf32> to vector<128xf32>
    %233 = vector.shape_cast %232 : vector<128xf32> to vector<1x1x128xf32>
    %c0_75 = arith.constant 0 : index
    %c0_76 = arith.constant 0 : index
    %c0_77 = arith.constant 0 : index
    %234 = vector.load %arg7[%c0_75, %c0_76, %c0_77] : memref<1x1x128xf32, #tpu.memory_space<vmem>>, vector<1x1x128xf32>
    tpu.vector_store %arg7[%c0_75, %c0_76, %c0_77], %233 {strides = array<i32>} : memref<1x1x128xf32, #tpu.memory_space<vmem>>, vector<1x1x128xf32>,
    %235 = arith.mulf %228, %228 : vector<4x4x128xf32>
    %cst_78 = arith.constant dense<0.000000e+00> : vector<128xf32>
    %236 = vector.multi_reduction <add>, %235, %cst_78 [0, 1] : vector<4x4x128xf32> to vector<128xf32>
    %237 = vector.shape_cast %236 : vector<128xf32> to vector<1x1x128xf32>
    %c0_79 = arith.constant 0 : index
    %c0_80 = arith.constant 0 : index
    %c0_81 = arith.constant 0 : index
    %238 = vector.load %arg8[%c0_79, %c0_80, %c0_81] : memref<1x1x128xf32, #tpu.memory_space<vmem>>, vector<1x1x128xf32>
    tpu.vector_store %arg8[%c0_79, %c0_80, %c0_81], %237 {strides = array<i32>} : memref<1x1x128xf32, #tpu.memory_space<vmem>>, vector<1x1x128xf32>,
    return
  }
  func.func @transform_0(%arg0: i32, %arg1: i32) -> (i32, i32, i32, i32) {
    %c0_i32 = arith.constant 0 : i32
    %c0_i32_0 = arith.constant 0 : i32
    %c0_i32_1 = arith.constant 0 : i32
    %c0_i32_2 = arith.constant 0 : i32
    return %arg0, %c0_i32, %c0_i32_0, %c0_i32_1 : i32, i32, i32, i32
  }
  func.func @transform_1(%arg0: i32, %arg1: i32) -> (i32, i32) {
    %c0_i32 = arith.constant 0 : i32
    %c0_i32_0 = arith.constant 0 : i32
    %c0_i32_1 = arith.constant 0 : i32
    return %c0_i32, %c0_i32_0 : i32, i32
  }
  func.func @transform_2(%arg0: i32, %arg1: i32) -> (i32, i32) {
    %c0_i32 = arith.constant 0 : i32
    %c0_i32_0 = arith.constant 0 : i32
    %c0_i32_1 = arith.constant 0 : i32
    return %c0_i32, %c0_i32_0 : i32, i32
  }
  func.func @transform_3(%arg0: i32, %arg1: i32) -> (i32, i32) {
    %c0_i32 = arith.constant 0 : i32
    %c0_i32_0 = arith.constant 0 : i32
    %c0_i32_1 = arith.constant 0 : i32
    return %c0_i32, %c0_i32_0 : i32, i32
  }
  func.func @transform_4(%arg0: i32, %arg1: i32) -> (i32, i32, i32, i32) {
    %c0_i32 = arith.constant 0 : i32
    %c0_i32_0 = arith.constant 0 : i32
    %c0_i32_1 = arith.constant 0 : i32
    return %arg0, %arg1, %c0_i32, %c0_i32_0 : i32, i32, i32, i32
  }
  func.func @transform_5(%arg0: i32, %arg1: i32) -> (i32, i32, i32) {
    %c1_i32 = arith.constant 1 : i32
    %0 = arith.muli %arg0, %c1_i32 : i32
    %1 = arith.addi %0, %arg1 : i32
    %c0_i32 = arith.constant 0 : i32
    %c0_i32_0 = arith.constant 0 : i32
    %c0_i32_1 = arith.constant 0 : i32
    return %1, %c0_i32, %c0_i32_0 : i32, i32, i32
  }
  func.func @transform_6(%arg0: i32, %arg1: i32) -> (i32, i32, i32) {
    %c1_i32 = arith.constant 1 : i32
    %0 = arith.muli %arg0, %c1_i32 : i32
    %1 = arith.addi %0, %arg1 : i32
    %c0_i32 = arith.constant 0 : i32
    %c0_i32_0 = arith.constant 0 : i32
    %c0_i32_1 = arith.constant 0 : i32
    return %1, %c0_i32, %c0_i32_0 : i32, i32, i32
  }
}

module attributes {stable_mosaic.version = 11 : i64} {
  func.func @_matmul_fused_kernel(%arg0: i32, %arg1: memref<32x128xbf16, #tpu.memory_space<vmem>>, %arg2: memref<1x128xf32, #tpu.memory_space<vmem>>, %arg3: memref<1x128xf32, #tpu.memory_space<vmem>>, %arg4: memref<128x128xbf16, #tpu.memory_space<vmem>>, %arg5: memref<32x128xbf16, #tpu.memory_space<vmem>>, %arg6: memref<1x1x128xf32, #tpu.memory_space<vmem>>, %arg7: memref<1x1x128xf32, #tpu.memory_space<vmem>>) attributes {dimension_semantics = [#tpu.dimension_semantics<parallel>], iteration_bounds = array<i64: 1>, scalar_prefetch = 0 : i64, scratch_operands = 0 : i64, tpu.core_type = #tpu.core_type<tc>, window_params = [{transform_indices = @transform_0, window_bounds = array<i64: 32, 128>}, {pipeline_mode = #tpu.pipeline_mode<synchronous>, transform_indices = @transform_1, window_bounds = array<i64: 1, 128>}, {pipeline_mode = #tpu.pipeline_mode<synchronous>, transform_indices = @transform_2, window_bounds = array<i64: 1, 128>}, {pipeline_mode = #tpu.pipeline_mode<synchronous>, transform_indices = @transform_3, window_bounds = array<i64: 128, 128>}, {transform_indices = @transform_4, window_bounds = array<i64: 32, 128>}, {transform_indices = @transform_5, window_bounds = array<i64: 1, 1, 128>}, {transform_indices = @transform_6, window_bounds = array<i64: 1, 1, 128>}]} {
    %c0 = arith.constant 0 : index
    %c0_0 = arith.constant 0 : index
    %0 = vector.load %arg1[%c0, %c0_0] : memref<32x128xbf16, #tpu.memory_space<vmem>>, vector<32x128xbf16>
    %1 = arith.extf %0 : vector<32x128xbf16> to vector<32x128xf32>
    %c0_1 = arith.constant 0 : index
    %c0_2 = arith.constant 0 : index
    %2 = vector.load %arg2[%c0_1, %c0_2] : memref<1x128xf32, #tpu.memory_space<vmem>>, vector<1x128xf32>
    %3 = vector.broadcast %2 : vector<1x128xf32> to vector<32x128xf32>
    %4 = arith.mulf %1, %3 : vector<32x128xf32>
    %c0_3 = arith.constant 0 : index
    %c0_4 = arith.constant 0 : index
    %5 = vector.load %arg3[%c0_3, %c0_4] : memref<1x128xf32, #tpu.memory_space<vmem>>, vector<1x128xf32>
    %6 = vector.broadcast %5 : vector<1x128xf32> to vector<32x128xf32>
    %7 = arith.addf %4, %6 : vector<32x128xf32>
    %cst = arith.constant 0.000000e+00 : f32
    %8 = vector.broadcast %cst : f32 to vector<32x128xf32>
    %9 = arith.maximumf %7, %8 : vector<32x128xf32>
    %10 = arith.truncf %9 : vector<32x128xf32> to vector<32x128xbf16>
    %c0_5 = arith.constant 0 : index
    %c0_6 = arith.constant 0 : index
    %11 = vector.load %arg4[%c0_5, %c0_6] : memref<128x128xbf16, #tpu.memory_space<vmem>>, vector<128x128xbf16>
    %cst_7 = arith.constant dense<0.000000e+00> : vector<32x128xf32>
    %12 = tpu.matmul %10, %11, %cst_7 {dimension_numbers = #tpu.dot_dimension_numbers<[1], [0], [0], [1], [0, 0, 1, 1], [], []>} : vector<32x128xbf16>, vector<128x128xbf16>, vector<32x128xf32> -> vector<32x128xf32>
    %13 = arith.truncf %12 : vector<32x128xf32> to vector<32x128xbf16>
    %c0_8 = arith.constant 0 : index
    %c0_9 = arith.constant 0 : index
    %14 = vector.load %arg5[%c0_8, %c0_9] : memref<32x128xbf16, #tpu.memory_space<vmem>>, vector<32x128xbf16>
    tpu.vector_store %arg5[%c0_8, %c0_9], %13 {strides = array<i32>} : memref<32x128xbf16, #tpu.memory_space<vmem>>, vector<32x128xbf16>,
    %cst_10 = arith.constant dense<0.000000e+00> : vector<128xf32>
    %15 = vector.multi_reduction <add>, %12, %cst_10 [0] : vector<32x128xf32> to vector<128xf32>
    %16 = vector.shape_cast %15 : vector<128xf32> to vector<1x128xf32>
    %17 = vector.shape_cast %16 : vector<1x128xf32> to vector<1x1x128xf32>
    %c0_11 = arith.constant 0 : index
    %c0_12 = arith.constant 0 : index
    %c0_13 = arith.constant 0 : index
    %18 = vector.load %arg6[%c0_11, %c0_12, %c0_13] : memref<1x1x128xf32, #tpu.memory_space<vmem>>, vector<1x1x128xf32>
    tpu.vector_store %arg6[%c0_11, %c0_12, %c0_13], %17 {strides = array<i32>} : memref<1x1x128xf32, #tpu.memory_space<vmem>>, vector<1x1x128xf32>,
    %19 = arith.mulf %12, %12 : vector<32x128xf32>
    %cst_14 = arith.constant dense<0.000000e+00> : vector<128xf32>
    %20 = vector.multi_reduction <add>, %19, %cst_14 [0] : vector<32x128xf32> to vector<128xf32>
    %21 = vector.shape_cast %20 : vector<128xf32> to vector<1x128xf32>
    %22 = vector.shape_cast %21 : vector<1x128xf32> to vector<1x1x128xf32>
    %c0_15 = arith.constant 0 : index
    %c0_16 = arith.constant 0 : index
    %c0_17 = arith.constant 0 : index
    %23 = vector.load %arg7[%c0_15, %c0_16, %c0_17] : memref<1x1x128xf32, #tpu.memory_space<vmem>>, vector<1x1x128xf32>
    tpu.vector_store %arg7[%c0_15, %c0_16, %c0_17], %22 {strides = array<i32>} : memref<1x1x128xf32, #tpu.memory_space<vmem>>, vector<1x1x128xf32>,
    return
  }
  func.func @transform_0(%arg0: i32) -> (i32, i32) {
    %c0_i32 = arith.constant 0 : i32
    %c0_i32_0 = arith.constant 0 : i32
    return %arg0, %c0_i32 : i32, i32
  }
  func.func @transform_1(%arg0: i32) -> (i32, i32) {
    %c0_i32 = arith.constant 0 : i32
    %c0_i32_0 = arith.constant 0 : i32
    %c0_i32_1 = arith.constant 0 : i32
    return %c0_i32, %c0_i32_0 : i32, i32
  }
  func.func @transform_2(%arg0: i32) -> (i32, i32) {
    %c0_i32 = arith.constant 0 : i32
    %c0_i32_0 = arith.constant 0 : i32
    %c0_i32_1 = arith.constant 0 : i32
    return %c0_i32, %c0_i32_0 : i32, i32
  }
  func.func @transform_3(%arg0: i32) -> (i32, i32) {
    %c0_i32 = arith.constant 0 : i32
    %c0_i32_0 = arith.constant 0 : i32
    %c0_i32_1 = arith.constant 0 : i32
    return %c0_i32, %c0_i32_0 : i32, i32
  }
  func.func @transform_4(%arg0: i32) -> (i32, i32) {
    %c0_i32 = arith.constant 0 : i32
    %c0_i32_0 = arith.constant 0 : i32
    return %arg0, %c0_i32 : i32, i32
  }
  func.func @transform_5(%arg0: i32) -> (i32, i32, i32) {
    %c0_i32 = arith.constant 0 : i32
    %c0_i32_0 = arith.constant 0 : i32
    %c0_i32_1 = arith.constant 0 : i32
    return %arg0, %c0_i32, %c0_i32_0 : i32, i32, i32
  }
  func.func @transform_6(%arg0: i32) -> (i32, i32, i32) {
    %c0_i32 = arith.constant 0 : i32
    %c0_i32_0 = arith.constant 0 : i32
    %c0_i32_1 = arith.constant 0 : i32
    return %arg0, %c0_i32, %c0_i32_0 : i32, i32, i32
  }
}

module attributes {stable_mosaic.version = 11 : i64} {
  func.func @_dw_fused_kernel(%arg0: i32, %arg1: i32, %arg2: memref<1x6x6x128xbf16, #tpu.memory_space<vmem>>, %arg3: memref<1x128xf32, #tpu.memory_space<vmem>>, %arg4: memref<1x128xf32, #tpu.memory_space<vmem>>, %arg5: memref<9x128xf32, #tpu.memory_space<vmem>>, %arg6: memref<1x4x4x128xbf16, #tpu.memory_space<vmem>>, %arg7: memref<1x1x128xf32, #tpu.memory_space<vmem>>, %arg8: memref<1x1x128xf32, #tpu.memory_space<vmem>>) attributes {dimension_semantics = [#tpu.dimension_semantics<parallel>, #tpu.dimension_semantics<parallel>], iteration_bounds = array<i64: 2, 1>, scalar_prefetch = 0 : i64, scratch_operands = 0 : i64, tpu.core_type = #tpu.core_type<tc>, window_params = [{transform_indices = @transform_0, window_bounds = array<i64: 1, 6, 6, 128>}, {pipeline_mode = #tpu.pipeline_mode<synchronous>, transform_indices = @transform_1, window_bounds = array<i64: 1, 128>}, {pipeline_mode = #tpu.pipeline_mode<synchronous>, transform_indices = @transform_2, window_bounds = array<i64: 1, 128>}, {pipeline_mode = #tpu.pipeline_mode<synchronous>, transform_indices = @transform_3, window_bounds = array<i64: 9, 128>}, {transform_indices = @transform_4, window_bounds = array<i64: 1, 4, 4, 128>}, {transform_indices = @transform_5, window_bounds = array<i64: 1, 1, 128>}, {transform_indices = @transform_6, window_bounds = array<i64: 1, 1, 128>}]} {
    %c4_i32 = arith.constant 4 : i32
    %0 = arith.muli %arg1, %c4_i32 : i32
    %c0 = arith.constant 0 : index
    %1 = arith.index_cast %0 : i32 to index
    %c0_0 = arith.constant 0 : index
    %c0_1 = arith.constant 0 : index
    %2 = vector.load %arg2[%c0, %1, %c0_0, %c0_1] : memref<1x6x6x128xbf16, #tpu.memory_space<vmem>>, vector<1x6x6x128xbf16>
    %3 = vector.shape_cast %2 : vector<1x6x6x128xbf16> to vector<6x6x128xbf16>
    %4 = arith.extf %3 : vector<6x6x128xbf16> to vector<6x6x128xf32>
    %c0_2 = arith.constant 0 : index
    %c0_3 = arith.constant 0 : index
    %5 = vector.load %arg3[%c0_2, %c0_3] : memref<1x128xf32, #tpu.memory_space<vmem>>, vector<1x128xf32>
    %6 = vector.shape_cast %5 : vector<1x128xf32> to vector<1x1x128xf32>
    %7 = vector.broadcast %6 : vector<1x1x128xf32> to vector<6x6x128xf32>
    %8 = arith.mulf %4, %7 : vector<6x6x128xf32>
    %c0_4 = arith.constant 0 : index
    %c0_5 = arith.constant 0 : index
    %9 = vector.load %arg4[%c0_4, %c0_5] : memref<1x128xf32, #tpu.memory_space<vmem>>, vector<1x128xf32>
    %10 = vector.shape_cast %9 : vector<1x128xf32> to vector<1x1x128xf32>
    %11 = vector.broadcast %10 : vector<1x1x128xf32> to vector<6x6x128xf32>
    %12 = arith.addf %8, %11 : vector<6x6x128xf32>
    %cst = arith.constant 0.000000e+00 : f32
    %13 = vector.broadcast %cst : f32 to vector<6x6x128xf32>
    %14 = arith.maximumf %12, %13 : vector<6x6x128xf32>
    %15 = tpu.iota {dimensions = array<i32: 0>} : vector<6x6x1xi32>
    %16 = tpu.iota {dimensions = array<i32: 1>} : vector<6x6x1xi32>
    %17 = vector.broadcast %0 : i32 to vector<6x6x1xi32>
    %18 = arith.addi %17, %15 : vector<6x6x1xi32>
    %c1_i32 = arith.constant 1 : i32
    %19 = vector.broadcast %c1_i32 : i32 to vector<6x6x1xi32>
    %20 = arith.muli %19, %18 : vector<6x6x1xi32>
    %c0_i32 = arith.constant 0 : i32
    %21 = vector.broadcast %c0_i32 : i32 to vector<6x6x1xi32>
    %22 = arith.addi %21, %20 : vector<6x6x1xi32>
    %c1_i32_6 = arith.constant 1 : i32
    %23 = vector.broadcast %c1_i32_6 : i32 to vector<6x6x1xi32>
    %24 = arith.muli %23, %16 : vector<6x6x1xi32>
    %c0_i32_7 = arith.constant 0 : i32
    %25 = vector.broadcast %c0_i32_7 : i32 to vector<6x6x1xi32>
    %26 = arith.addi %25, %24 : vector<6x6x1xi32>
    %c1_i32_8 = arith.constant 1 : i32
    %27 = vector.broadcast %c1_i32_8 : i32 to vector<6x6x1xi32>
    %28 = arith.cmpi sge, %22, %27 : vector<6x6x1xi32>
    %c5_i32 = arith.constant 5 : i32
    %29 = vector.broadcast %c5_i32 : i32 to vector<6x6x1xi32>
    %30 = arith.cmpi slt, %22, %29 : vector<6x6x1xi32>
    %31 = arith.andi %28, %30 : vector<6x6x1xi1>
    %c1_i32_9 = arith.constant 1 : i32
    %32 = vector.broadcast %c1_i32_9 : i32 to vector<6x6x1xi32>
    %33 = arith.cmpi sge, %26, %32 : vector<6x6x1xi32>
    %34 = arith.andi %31, %33 : vector<6x6x1xi1>
    %c5_i32_10 = arith.constant 5 : i32
    %35 = vector.broadcast %c5_i32_10 : i32 to vector<6x6x1xi32>
    %36 = arith.cmpi slt, %26, %35 : vector<6x6x1xi32>
    %37 = arith.andi %34, %36 : vector<6x6x1xi1>
    %cst_11 = arith.constant 0.000000e+00 : f32
    %38 = vector.shape_cast %37 : vector<6x6x1xi1> to vector<6x6x1xi1>
    %39 = vector.broadcast %38 : vector<6x6x1xi1> to vector<6x6x128xi1>
    %40 = vector.broadcast %cst_11 : f32 to vector<6x6x128xf32>
    %41 = arith.select %39, %14, %40 : vector<6x6x128xi1>, vector<6x6x128xf32>
    %cst_12 = arith.constant 0.000000e+00 : f32
    %42 = vector.broadcast %cst_12 : f32 to vector<4x4x128xf32>
    %43 = vector.extract_strided_slice %41 {offsets = [0, 0, 0], sizes = [4, 4, 128], strides = [1, 1, 1]} : vector<6x6x128xf32> to vector<4x4x128xf32>
    %c0_13 = arith.constant 0 : index
    %c0_14 = arith.constant 0 : index
    %44 = vector.load %arg5[%c0_13, %c0_14] : memref<9x128xf32, #tpu.memory_space<vmem>>, vector<1x128xf32>
    %45 = vector.shape_cast %44 : vector<1x128xf32> to vector<128xf32>
    %46 = vector.shape_cast %45 : vector<128xf32> to vector<1x1x128xf32>
    %47 = vector.broadcast %46 : vector<1x1x128xf32> to vector<4x4x128xf32>
    %48 = arith.mulf %43, %47 : vector<4x4x128xf32>
    %49 = arith.addf %42, %48 : vector<4x4x128xf32>
    %50 = vector.extract_strided_slice %41 {offsets = [0, 1, 0], sizes = [4, 4, 128], strides = [1, 1, 1]} : vector<6x6x128xf32> to vector<4x4x128xf32>
    %c1 = arith.constant 1 : index
    %c0_15 = arith.constant 0 : index
    %51 = vector.load %arg5[%c1, %c0_15] : memref<9x128xf32, #tpu.memory_space<vmem>>, vector<1x128xf32>
    %52 = vector.shape_cast %51 : vector<1x128xf32> to vector<128xf32>
    %53 = vector.shape_cast %52 : vector<128xf32> to vector<1x1x128xf32>
    %54 = vector.broadcast %53 : vector<1x1x128xf32> to vector<4x4x128xf32>
    %55 = arith.mulf %50, %54 : vector<4x4x128xf32>
    %56 = arith.addf %49, %55 : vector<4x4x128xf32>
    %57 = vector.extract_strided_slice %41 {offsets = [0, 2, 0], sizes = [4, 4, 128], strides = [1, 1, 1]} : vector<6x6x128xf32> to vector<4x4x128xf32>
    %c2 = arith.constant 2 : index
    %c0_16 = arith.constant 0 : index
    %58 = vector.load %arg5[%c2, %c0_16] : memref<9x128xf32, #tpu.memory_space<vmem>>, vector<1x128xf32>
    %59 = vector.shape_cast %58 : vector<1x128xf32> to vector<128xf32>
    %60 = vector.shape_cast %59 : vector<128xf32> to vector<1x1x128xf32>
    %61 = vector.broadcast %60 : vector<1x1x128xf32> to vector<4x4x128xf32>
    %62 = arith.mulf %57, %61 : vector<4x4x128xf32>
    %63 = arith.addf %56, %62 : vector<4x4x128xf32>
    %64 = vector.extract_strided_slice %41 {offsets = [1, 0, 0], sizes = [4, 4, 128], strides = [1, 1, 1]} : vector<6x6x128xf32> to vector<4x4x128xf32>
    %c3 = arith.constant 3 : index
    %c0_17 = arith.constant 0 : index
    %65 = vector.load %arg5[%c3, %c0_17] : memref<9x128xf32, #tpu.memory_space<vmem>>, vector<1x128xf32>
    %66 = vector.shape_cast %65 : vector<1x128xf32> to vector<128xf32>
    %67 = vector.shape_cast %66 : vector<128xf32> to vector<1x1x128xf32>
    %68 = vector.broadcast %67 : vector<1x1x128xf32> to vector<4x4x128xf32>
    %69 = arith.mulf %64, %68 : vector<4x4x128xf32>
    %70 = arith.addf %63, %69 : vector<4x4x128xf32>
    %71 = vector.extract_strided_slice %41 {offsets = [1, 1, 0], sizes = [4, 4, 128], strides = [1, 1, 1]} : vector<6x6x128xf32> to vector<4x4x128xf32>
    %c4 = arith.constant 4 : index
    %c0_18 = arith.constant 0 : index
    %72 = vector.load %arg5[%c4, %c0_18] : memref<9x128xf32, #tpu.memory_space<vmem>>, vector<1x128xf32>
    %73 = vector.shape_cast %72 : vector<1x128xf32> to vector<128xf32>
    %74 = vector.shape_cast %73 : vector<128xf32> to vector<1x1x128xf32>
    %75 = vector.broadcast %74 : vector<1x1x128xf32> to vector<4x4x128xf32>
    %76 = arith.mulf %71, %75 : vector<4x4x128xf32>
    %77 = arith.addf %70, %76 : vector<4x4x128xf32>
    %78 = vector.extract_strided_slice %41 {offsets = [1, 2, 0], sizes = [4, 4, 128], strides = [1, 1, 1]} : vector<6x6x128xf32> to vector<4x4x128xf32>
    %c5 = arith.constant 5 : index
    %c0_19 = arith.constant 0 : index
    %79 = vector.load %arg5[%c5, %c0_19] : memref<9x128xf32, #tpu.memory_space<vmem>>, vector<1x128xf32>
    %80 = vector.shape_cast %79 : vector<1x128xf32> to vector<128xf32>
    %81 = vector.shape_cast %80 : vector<128xf32> to vector<1x1x128xf32>
    %82 = vector.broadcast %81 : vector<1x1x128xf32> to vector<4x4x128xf32>
    %83 = arith.mulf %78, %82 : vector<4x4x128xf32>
    %84 = arith.addf %77, %83 : vector<4x4x128xf32>
    %85 = vector.extract_strided_slice %41 {offsets = [2, 0, 0], sizes = [4, 4, 128], strides = [1, 1, 1]} : vector<6x6x128xf32> to vector<4x4x128xf32>
    %c6 = arith.constant 6 : index
    %c0_20 = arith.constant 0 : index
    %86 = vector.load %arg5[%c6, %c0_20] : memref<9x128xf32, #tpu.memory_space<vmem>>, vector<1x128xf32>
    %87 = vector.shape_cast %86 : vector<1x128xf32> to vector<128xf32>
    %88 = vector.shape_cast %87 : vector<128xf32> to vector<1x1x128xf32>
    %89 = vector.broadcast %88 : vector<1x1x128xf32> to vector<4x4x128xf32>
    %90 = arith.mulf %85, %89 : vector<4x4x128xf32>
    %91 = arith.addf %84, %90 : vector<4x4x128xf32>
    %92 = vector.extract_strided_slice %41 {offsets = [2, 1, 0], sizes = [4, 4, 128], strides = [1, 1, 1]} : vector<6x6x128xf32> to vector<4x4x128xf32>
    %c7 = arith.constant 7 : index
    %c0_21 = arith.constant 0 : index
    %93 = vector.load %arg5[%c7, %c0_21] : memref<9x128xf32, #tpu.memory_space<vmem>>, vector<1x128xf32>
    %94 = vector.shape_cast %93 : vector<1x128xf32> to vector<128xf32>
    %95 = vector.shape_cast %94 : vector<128xf32> to vector<1x1x128xf32>
    %96 = vector.broadcast %95 : vector<1x1x128xf32> to vector<4x4x128xf32>
    %97 = arith.mulf %92, %96 : vector<4x4x128xf32>
    %98 = arith.addf %91, %97 : vector<4x4x128xf32>
    %99 = vector.extract_strided_slice %41 {offsets = [2, 2, 0], sizes = [4, 4, 128], strides = [1, 1, 1]} : vector<6x6x128xf32> to vector<4x4x128xf32>
    %c8 = arith.constant 8 : index
    %c0_22 = arith.constant 0 : index
    %100 = vector.load %arg5[%c8, %c0_22] : memref<9x128xf32, #tpu.memory_space<vmem>>, vector<1x128xf32>
    %101 = vector.shape_cast %100 : vector<1x128xf32> to vector<128xf32>
    %102 = vector.shape_cast %101 : vector<128xf32> to vector<1x1x128xf32>
    %103 = vector.broadcast %102 : vector<1x1x128xf32> to vector<4x4x128xf32>
    %104 = arith.mulf %99, %103 : vector<4x4x128xf32>
    %105 = arith.addf %98, %104 : vector<4x4x128xf32>
    %106 = vector.shape_cast %105 : vector<4x4x128xf32> to vector<1x4x4x128xf32>
    %107 = arith.truncf %106 : vector<1x4x4x128xf32> to vector<1x4x4x128xbf16>
    %c0_23 = arith.constant 0 : index
    %c0_24 = arith.constant 0 : index
    %c0_25 = arith.constant 0 : index
    %c0_26 = arith.constant 0 : index
    %108 = vector.load %arg6[%c0_23, %c0_24, %c0_25, %c0_26] : memref<1x4x4x128xbf16, #tpu.memory_space<vmem>>, vector<1x4x4x128xbf16>
    tpu.vector_store %arg6[%c0_23, %c0_24, %c0_25, %c0_26], %107 {strides = array<i32>} : memref<1x4x4x128xbf16, #tpu.memory_space<vmem>>, vector<1x4x4x128xbf16>,
    %cst_27 = arith.constant dense<0.000000e+00> : vector<128xf32>
    %109 = vector.multi_reduction <add>, %105, %cst_27 [0, 1] : vector<4x4x128xf32> to vector<128xf32>
    %110 = vector.shape_cast %109 : vector<128xf32> to vector<1x1x128xf32>
    %c0_28 = arith.constant 0 : index
    %c0_29 = arith.constant 0 : index
    %c0_30 = arith.constant 0 : index
    %111 = vector.load %arg7[%c0_28, %c0_29, %c0_30] : memref<1x1x128xf32, #tpu.memory_space<vmem>>, vector<1x1x128xf32>
    tpu.vector_store %arg7[%c0_28, %c0_29, %c0_30], %110 {strides = array<i32>} : memref<1x1x128xf32, #tpu.memory_space<vmem>>, vector<1x1x128xf32>,
    %112 = arith.mulf %105, %105 : vector<4x4x128xf32>
    %cst_31 = arith.constant dense<0.000000e+00> : vector<128xf32>
    %113 = vector.multi_reduction <add>, %112, %cst_31 [0, 1] : vector<4x4x128xf32> to vector<128xf32>
    %114 = vector.shape_cast %113 : vector<128xf32> to vector<1x1x128xf32>
    %c0_32 = arith.constant 0 : index
    %c0_33 = arith.constant 0 : index
    %c0_34 = arith.constant 0 : index
    %115 = vector.load %arg8[%c0_32, %c0_33, %c0_34] : memref<1x1x128xf32, #tpu.memory_space<vmem>>, vector<1x1x128xf32>
    tpu.vector_store %arg8[%c0_32, %c0_33, %c0_34], %114 {strides = array<i32>} : memref<1x1x128xf32, #tpu.memory_space<vmem>>, vector<1x1x128xf32>,
    return
  }
  func.func @transform_0(%arg0: i32, %arg1: i32) -> (i32, i32, i32, i32) {
    %c0_i32 = arith.constant 0 : i32
    %c0_i32_0 = arith.constant 0 : i32
    %c0_i32_1 = arith.constant 0 : i32
    %c0_i32_2 = arith.constant 0 : i32
    return %arg0, %c0_i32, %c0_i32_0, %c0_i32_1 : i32, i32, i32, i32
  }
  func.func @transform_1(%arg0: i32, %arg1: i32) -> (i32, i32) {
    %c0_i32 = arith.constant 0 : i32
    %c0_i32_0 = arith.constant 0 : i32
    %c0_i32_1 = arith.constant 0 : i32
    return %c0_i32, %c0_i32_0 : i32, i32
  }
  func.func @transform_2(%arg0: i32, %arg1: i32) -> (i32, i32) {
    %c0_i32 = arith.constant 0 : i32
    %c0_i32_0 = arith.constant 0 : i32
    %c0_i32_1 = arith.constant 0 : i32
    return %c0_i32, %c0_i32_0 : i32, i32
  }
  func.func @transform_3(%arg0: i32, %arg1: i32) -> (i32, i32) {
    %c0_i32 = arith.constant 0 : i32
    %c0_i32_0 = arith.constant 0 : i32
    %c0_i32_1 = arith.constant 0 : i32
    return %c0_i32, %c0_i32_0 : i32, i32
  }
  func.func @transform_4(%arg0: i32, %arg1: i32) -> (i32, i32, i32, i32) {
    %c0_i32 = arith.constant 0 : i32
    %c0_i32_0 = arith.constant 0 : i32
    %c0_i32_1 = arith.constant 0 : i32
    return %arg0, %arg1, %c0_i32, %c0_i32_0 : i32, i32, i32, i32
  }
  func.func @transform_5(%arg0: i32, %arg1: i32) -> (i32, i32, i32) {
    %c1_i32 = arith.constant 1 : i32
    %0 = arith.muli %arg0, %c1_i32 : i32
    %1 = arith.addi %0, %arg1 : i32
    %c0_i32 = arith.constant 0 : i32
    %c0_i32_0 = arith.constant 0 : i32
    %c0_i32_1 = arith.constant 0 : i32
    return %1, %c0_i32, %c0_i32_0 : i32, i32, i32
  }
  func.func @transform_6(%arg0: i32, %arg1: i32) -> (i32, i32, i32) {
    %c1_i32 = arith.constant 1 : i32
    %0 = arith.muli %arg0, %c1_i32 : i32
    %1 = arith.addi %0, %arg1 : i32
    %c0_i32 = arith.constant 0 : i32
    %c0_i32_0 = arith.constant 0 : i32
    %c0_i32_1 = arith.constant 0 : i32
    return %1, %c0_i32, %c0_i32_0 : i32, i32, i32
  }
}

module attributes {stable_mosaic.version = 11 : i64} {
  func.func @_avgpool_fused_kernel(%arg0: memref<2x4x4x128xbf16, #tpu.memory_space<vmem>>, %arg1: memref<1x1x1x128xf32, #tpu.memory_space<vmem>>, %arg2: memref<1x1x1x128xf32, #tpu.memory_space<vmem>>, %arg3: memref<2x128xf32, #tpu.memory_space<vmem>>) attributes {dimension_semantics = [], scalar_prefetch = 0 : i64, scratch_operands = 0 : i64, tpu.core_type = #tpu.core_type<tc>} {
    %c0 = arith.constant 0 : index
    %c0_0 = arith.constant 0 : index
    %c0_1 = arith.constant 0 : index
    %c0_2 = arith.constant 0 : index
    %0 = vector.load %arg0[%c0, %c0_0, %c0_1, %c0_2] : memref<2x4x4x128xbf16, #tpu.memory_space<vmem>>, vector<2x4x4x128xbf16>
    %1 = arith.extf %0 : vector<2x4x4x128xbf16> to vector<2x4x4x128xf32>
    %c0_3 = arith.constant 0 : index
    %c0_4 = arith.constant 0 : index
    %c0_5 = arith.constant 0 : index
    %c0_6 = arith.constant 0 : index
    %2 = vector.load %arg1[%c0_3, %c0_4, %c0_5, %c0_6] : memref<1x1x1x128xf32, #tpu.memory_space<vmem>>, vector<1x1x1x128xf32>
    %3 = vector.broadcast %2 : vector<1x1x1x128xf32> to vector<2x4x4x128xf32>
    %4 = arith.mulf %1, %3 : vector<2x4x4x128xf32>
    %c0_7 = arith.constant 0 : index
    %c0_8 = arith.constant 0 : index
    %c0_9 = arith.constant 0 : index
    %c0_10 = arith.constant 0 : index
    %5 = vector.load %arg2[%c0_7, %c0_8, %c0_9, %c0_10] : memref<1x1x1x128xf32, #tpu.memory_space<vmem>>, vector<1x1x1x128xf32>
    %6 = vector.broadcast %5 : vector<1x1x1x128xf32> to vector<2x4x4x128xf32>
    %7 = arith.addf %4, %6 : vector<2x4x4x128xf32>
    %cst = arith.constant 0.000000e+00 : f32
    %8 = vector.broadcast %cst : f32 to vector<2x4x4x128xf32>
    %9 = arith.maximumf %7, %8 : vector<2x4x4x128xf32>
    %cst_11 = arith.constant dense<0.000000e+00> : vector<2x128xf32>
    %10 = vector.multi_reduction <add>, %9, %cst_11 [1, 2] : vector<2x4x4x128xf32> to vector<2x128xf32>
    %cst_12 = arith.constant 1.600000e+01 : f32
    %11 = vector.broadcast %cst_12 : f32 to vector<2x128xf32>
    %12 = arith.divf %10, %11 : vector<2x128xf32>
    %c0_13 = arith.constant 0 : index
    %c0_14 = arith.constant 0 : index
    %13 = vector.load %arg3[%c0_13, %c0_14] : memref<2x128xf32, #tpu.memory_space<vmem>>, vector<2x128xf32>
    tpu.vector_store %arg3[%c0_13, %c0_14], %12 {strides = array<i32>} : memref<2x128xf32, #tpu.memory_space<vmem>>, vector<2x128xf32>,
    return
  }
}

module attributes {stable_mosaic.version = 11 : i64} {
  func.func @_linear_kernel(%arg0: memref<2x128xf32, #tpu.memory_space<vmem>>, %arg1: memref<128x128xf32, #tpu.memory_space<vmem>>, %arg2: memref<1x128xf32, #tpu.memory_space<vmem>>, %arg3: memref<2x128xf32, #tpu.memory_space<vmem>>) attributes {dimension_semantics = [], scalar_prefetch = 0 : i64, scratch_operands = 0 : i64, tpu.core_type = #tpu.core_type<tc>} {
    %c0 = arith.constant 0 : index
    %c0_0 = arith.constant 0 : index
    %0 = vector.load %arg0[%c0, %c0_0] : memref<2x128xf32, #tpu.memory_space<vmem>>, vector<2x128xf32>
    %c0_1 = arith.constant 0 : index
    %c0_2 = arith.constant 0 : index
    %1 = vector.load %arg1[%c0_1, %c0_2] : memref<128x128xf32, #tpu.memory_space<vmem>>, vector<128x128xf32>
    %cst = arith.constant dense<0.000000e+00> : vector<2x128xf32>
    %2 = tpu.matmul %0, %1, %cst {dimension_numbers = #tpu.dot_dimension_numbers<[1], [0], [0], [1], [0, 0, 1, 1], [], []>} : vector<2x128xf32>, vector<128x128xf32>, vector<2x128xf32> -> vector<2x128xf32>
    %c0_3 = arith.constant 0 : index
    %c0_4 = arith.constant 0 : index
    %3 = vector.load %arg2[%c0_3, %c0_4] : memref<1x128xf32, #tpu.memory_space<vmem>>, vector<1x128xf32>
    %4 = vector.broadcast %3 : vector<1x128xf32> to vector<2x128xf32>
    %5 = arith.addf %2, %4 : vector<2x128xf32>
    %c0_5 = arith.constant 0 : index
    %c0_6 = arith.constant 0 : index
    %6 = vector.load %arg3[%c0_5, %c0_6] : memref<2x128xf32, #tpu.memory_space<vmem>>, vector<2x128xf32>
    tpu.vector_store %arg3[%c0_5, %c0_6], %5 {strides = array<i32>} : memref<2x128xf32, #tpu.memory_space<vmem>>, vector<2x128xf32>,
    return
  }
}

</mosaic_0001>

<bundles_post_ra>
// kernel: mobilenet_forward.9
= control target key start
LH: loop header
LB: loop body
LE: loop exit
PB: predicated region body
PF: predicated region fallthrough
CT: control target
= control target key end

     0   :  { %vm117_vm0 = vcmask 1044480   ;;  %vm118_vm1 = vcmask 1045504   ;;  %v389_v2 = vmov 65535   ;;  %vm92_vm2 = vcmask 220160   ;;  %s502_s1 = inlined_call_operand.vmem [shape: f32[1,27], index: 1, kind: input, shape index: {}]   ;;  %s503_s2 = inlined_call_operand.vmem [shape: f32[1,27], index: 2, kind: input, shape index: {}]   ;;  %s504_s3 = inlined_call_operand.vmem [shape: bf16[27,128], index: 3, kind: input, shape index: {}]   ;;  %s505_s0 = inlined_call_operand.vmem [shape: bf16[128,27], index: 0, kind: input, shape index: {}]   ;;  %s506_s4 = inlined_call_operand.vmem [shape: bf16[128,128], index: 4, kind: output, shape index: {0}]   ;;  %s507_s5 = inlined_call_operand.vmem [shape: f32[1,1,128], index: 5, kind: output, shape index: {1}]   ;;  %s508_s6 = inlined_call_operand.vmem [shape: f32[1,1,128], index: 6, kind: output, shape index: {2}]  }
   0x1   :  { %v315_v0 = vld [vmem:[%s504_s3 + $0x8] sm:$0xf]  ;;  %v334_v1 = vld [vmem:[%s504_s3 + $0x8] sm:$0x30]  ;;  %v119_v3 = vsel %vm117_vm0, 4294967295, %v389_v2  ;;  %v333_v7 = vld [vmem:[%s504_s3] sm:$0xff] }
   0x2   :  { %v316_v4 = vor.u32 %v334_v1, %v315_v0  ;;  %v120_v5 = vsel %vm118_vm1, %v119_v3, 0  ;;  %v325_v8 = vld [vmem:[%s505_s0] sm:$0xff]  ;;  %v327_v9 = vld [vmem:[%s505_s0 + $0x10] sm:$0xff]  ;;  %v326_v12 = vld [vmem:[%s505_s0 + $0x8] sm:$0xff] }
   0x3   :  { %v329_v10 = vld [vmem:[%s505_s0 + $0x20] sm:$0xff]  ;;  %v331_v11 = vld [vmem:[%s505_s0 + $0x30] sm:$0xff]  ;;  %v328_v13 = vld [vmem:[%s505_s0 + $0x18] sm:$0xff] }
   0x4   :  { %v122_v6 = vand.u32 %v316_v4, %v120_v5  ;;  %v330_v14 = vld [vmem:[%s505_s0 + $0x28] sm:$0xff]  ;;  %v332_v15 = vld [vmem:[%s505_s0 + $0x38] sm:$0xff] }
   0x6   :  { %130 = vmatpush.bf16.msra.mxu0 %v122_v6  ;;  %382 = vmatpush.bf16.msra.mxu1 %v122_v6 }
   0x7   :  { %383 = vmatpush.bf16.msra.mxu2 %v122_v6  ;;  %384 = vmatpush.bf16.msra.mxu3 %v122_v6 }
   0xa   :  { %131 = vmatpush.bf16.msra.mxu0 %v333_v7  ;;  %385 = vmatpush.bf16.msra.mxu1 %v333_v7 }
   0xb   :  { %386 = vmatpush.bf16.msra.mxu2 %v333_v7  ;;  %387 = vmatpush.bf16.msra.mxu3 %v333_v7 }
   0xd   :  { %317 = vmatmul.msk.bf16.vlgmr.msra.gmra.mxu0 %vm92_vm2, %v325_v8  ;;  %319 = vmatmul.msk.bf16.vlgmr.msra.gmra.mxu1 %vm92_vm2, %v327_v9 }
   0xe   :  { %321 = vmatmul.msk.bf16.vlgmr.msra.gmra.mxu2 %vm92_vm2, %v329_v10  ;;  %323 = vmatmul.msk.bf16.vlgmr.msra.gmra.mxu3 %vm92_vm2, %v331_v11 }
  0x1d   :  { %318 = vmatmul.msk.bf16.gmra.mxu0 %vm92_vm2, %v326_v12  ;;  %320 = vmatmul.msk.bf16.gmra.mxu1 %vm92_vm2, %v328_v13 }
  0x1e   :  { %322 = vmatmul.msk.bf16.gmra.mxu2 %vm92_vm2, %v330_v14  ;;  %324 = vmatmul.msk.bf16.gmra.mxu3 %vm92_vm2, %v332_v15 }
  0x8a   :  { %v133_v16 = vpop.f32.mrf.mxu0  ;;  %v143_v17 = vpop.f32.mrf.mxu1 }
  0x8b   :  { %v227_v31 = vmul.f32 %v133_v16, %v133_v16  ;;  %v231_v45 = vmul.f32 %v143_v17, %v143_v17 }
  0x91   :  { %v153_v18 = vpop.f32.mrf.mxu2  ;;  %v466_v19 = vpop.f32.mrf.mxu3 }
  0x92   :  { %v135_v20 = vpop.f32.mrf.mxu0  ;;  %v145_v21 = vpop.f32.mrf.mxu1  ;;  %v235_v61 = vmul.f32 %v153_v18, %v153_v18  ;;  %v239_v9 = vmul.f32 %v466_v19, %v466_v19 }
  0x93   :  { %v338_v22 = vpack.c.bf16 %v135_v20, %v133_v16  ;;  %v348_v23 = vpack.c.bf16 %v145_v21, %v143_v17  ;;  %v228_v30 = vmul.f32 %v135_v20, %v135_v20  ;;  %v205_v33 = vadd.f32 %v135_v20, %v133_v16 }
  0x94   :  { %v232_v48 = vmul.f32 %v145_v21, %v145_v21 }
  0x95   :  { %339 = vst [vmem:[%s506_s4] sm:$0xff] %v338_v22   ;;  %v243_v34 = vadd.f32 %v228_v30, %v227_v31 }
  0x96   :  { %376 = vst [vmem:[%s506_s4 + $0x10] sm:$0xff] %v348_v23  }
  0x99   :  { %v155_v24 = vpop.f32.mrf.mxu2  ;;  %v165_v25 = vpop.f32.mrf.mxu3 }
  0x9a   :  { %v138_v26 = vpop.f32.mrf.mxu0  ;;  %v148_v27 = vpop.f32.mrf.mxu1  ;;  %v358_v28 = vpack.c.bf16 %v155_v24, %v153_v18  ;;  %v368_v29 = vpack.c.bf16 %v165_v25, %v466_v19  ;;  %v236_v0 = vmul.f32 %v155_v24, %v155_v24  ;;  %v240_v12 = vmul.f32 %v165_v25, %v165_v25 }
  0x9b   :  { %v229_v32 = vmul.f32 %v138_v26, %v138_v26  ;;  %v206_v35 = vadd.f32 %v205_v33, %v138_v26  ;;  %v233_v51 = vmul.f32 %v148_v27, %v148_v27 }
  0x9c   :  { %378 = vst [vmem:[%s506_s4 + $0x20] sm:$0xff] %v358_v28  }
  0x9d   :  { %380 = vst [vmem:[%s506_s4 + $0x30] sm:$0xff] %v368_v29   ;;  %v244_v38 = vadd.f32 %v243_v34, %v229_v32 }
  0xa1   :  { %v158_v36 = vpop.f32.mrf.mxu2  ;;  %v168_v37 = vpop.f32.mrf.mxu3 }
  0xa2   :  { %v140_v39 = vpop.f32.mrf.mxu0  ;;  %v150_v40 = vpop.f32.mrf.mxu1  ;;  %v237_v4 = vmul.f32 %v158_v36, %v158_v36  ;;  %v241_v16 = vmul.f32 %v168_v37, %v168_v37 }
  0xa3   :  { %v343_v41 = vpack.c.bf16 %v140_v39, %v138_v26  ;;  %v207_v42 = vadd.f32 %v206_v35, %v140_v39  ;;  %v230_v43 = vmul.f32 %v140_v39, %v140_v39  ;;  %v353_v44 = vpack.c.bf16 %v150_v40, %v148_v27 }
  0xa4   :  { %v234_v59 = vmul.f32 %v150_v40, %v150_v40 }
  0xa5   :  { %375 = vst [vmem:[%s506_s4 + $0x8] sm:$0xff] %v343_v41   ;;  %v208_v46 = vadd.f32 %v207_v42, %v143_v17  ;;  %v245_v47 = vadd.f32 %v244_v38, %v230_v43 }
  0xa6   :  { %377 = vst [vmem:[%s506_s4 + $0x18] sm:$0xff] %v353_v44  }
  0xa7   :  { %v246_v49 = vadd.f32 %v245_v47, %v231_v45  ;;  %v209_v50 = vadd.f32 %v208_v46, %v145_v21 }
  0xa9   :  { %v210_v52 = vadd.f32 %v209_v50, %v148_v27  ;;  %v247_v53 = vadd.f32 %v246_v49, %v232_v48  ;;  %v160_v54 = vpop.f32.mrf.mxu2  ;;  %v170_v55 = vpop.f32.mrf.mxu3 }
  0xaa   :  { %v363_v56 = vpack.c.bf16 %v160_v54, %v158_v36  ;;  %v373_v57 = vpack.c.bf16 %v170_v55, %v168_v37  ;;  %v238_v8 = vmul.f32 %v160_v54, %v160_v54  ;;  %v242_v21 = vmul.f32 %v170_v55, %v170_v55 }
  0xab   :  { %v211_v58 = vadd.f32 %v210_v52, %v150_v40  ;;  %v248_v60 = vadd.f32 %v247_v53, %v233_v51 }
  0xac   :  { %379 = vst [vmem:[%s506_s4 + $0x28] sm:$0xff] %v363_v56  }
  0xad   :  { %v212_v62 = vadd.f32 %v211_v58, %v153_v18  ;;  %v249_v63 = vadd.f32 %v248_v60, %v234_v59  ;;  %381 = vst [vmem:[%s506_s4 + $0x38] sm:$0xff] %v373_v57  }
  0xaf   :  { %v250_v1 = vadd.f32 %v249_v63, %v235_v61  ;;  %v213_v2 = vadd.f32 %v212_v62, %v155_v24 }
  0xb1   :  { %v214_v3 = vadd.f32 %v213_v2, %v158_v36  ;;  %v251_v5 = vadd.f32 %v250_v1, %v236_v0 }
  0xb3   :  { %v252_v6 = vadd.f32 %v251_v5, %v237_v4  ;;  %v215_v7 = vadd.f32 %v214_v3, %v160_v54 }
  0xb5   :  { %v216_v10 = vadd.f32 %v215_v7, %v466_v19  ;;  %v253_v11 = vadd.f32 %v252_v6, %v238_v8 }
  0xb7   :  { %v254_v13 = vadd.f32 %v253_v11, %v239_v9  ;;  %v217_v14 = vadd.f32 %v216_v10, %v165_v25 }
  0xb9   :  { %v218_v15 = vadd.f32 %v217_v14, %v168_v37  ;;  %v255_v17 = vadd.f32 %v254_v13, %v240_v12 }
  0xbb   :  { %v256_v18 = vadd.f32 %v255_v17, %v241_v16  ;;  %v219_v20 = vadd.f32 %v218_v15, %v170_v55 }
  0xbd   :  { %v220_v22 = vrot.slane %v219_v20, 4  ;;  %v257_v23 = vadd.f32 %v256_v18, %v242_v21 }
  0xbf   :  { %v221_v24 = vadd.f32 %v220_v22, %v219_v20  ;;  %v258_v26 = vrot.slane %v257_v23, 4 }
  0xc1   :  { %v222_v27 = vrot.slane %v221_v24, 2  ;;  %v259_v28 = vadd.f32 %v258_v26, %v257_v23 }
  0xc3   :  { %v223_v29 = vadd.f32 %v222_v27, %v221_v24  ;;  %v260_v30 = vrot.slane %v259_v28, 2 }
  0xc5   :  { %v224_v31 = vrot.slane %v223_v29, 1  ;;  %v261_v19 = vadd.f32 %v260_v30, %v259_v28 }
  0xc7   :  { %v225_v32 = vadd.f32 %v224_v31, %v223_v29  ;;  %v262_v33 = vrot.slane %v261_v19, 1 }
  0xc9   :  { %226 = vst [vmem:[%s507_s5] sm:$0x1] %v225_v32  ;;  %v263_v25 = vadd.f32 %v262_v33, %v261_v19 }
  0xcb   :  { %264 = vst [vmem:[%s508_s6] sm:$0x1] %v263_v25 }

// kernel: mobilenet_forward.11
= control target key start
LH: loop header
LB: loop body
LE: loop exit
PB: predicated region body
PF: predicated region fallthrough
CT: control target
= control target key end

     0   :  { %s646_s3 = inlined_call_operand.vmem [shape: bf16[128,128], index: 3, kind: input, shape index: {}]   ;;  %s647_s1 = inlined_call_operand.vmem [shape: f32[1,128], index: 1, kind: input, shape index: {}]   ;;  %s648_s2 = inlined_call_operand.vmem [shape: f32[1,128], index: 2, kind: input, shape index: {}]   ;;  %s649_s0 = inlined_call_operand.vmem [shape: bf16[128,128], index: 0, kind: input, shape index: {}]   ;;  %s650_s4 = inlined_call_operand.vmem [shape: bf16[128,128], index: 4, kind: output, shape index: {0}]   ;;  %s651_s5 = inlined_call_operand.vmem [shape: f32[1,1,128], index: 5, kind: output, shape index: {1}]   ;;  %s652_s6 = inlined_call_operand.vmem [shape: f32[1,1,128], index: 6, kind: output, shape index: {2}]  }
   0x1   :  { %v372_v0 = vld [vmem:[%s646_s3 + $0x38] sm:$0xff]  ;;  %v371_v1 = vld [vmem:[%s646_s3 + $0x30] sm:$0xff]  ;;  %v370_v2 = vld [vmem:[%s646_s3 + $0x28] sm:$0xff] }
   0x2   :  { %180 = vmatpush.bf16.msra.mxu0 %v372_v0  ;;  %459 = vmatpush.bf16.msra.mxu1 %v372_v0  ;;  %v374_v3 = vld [vmem:[%s649_s0] sm:$0xff]   ;;  %v446_v5 = vld [vmem:[%s649_s0 + $0x10] sm:$0xff]   ;;  %v368_v15 = vld [vmem:[%s646_s3 + $0x18] sm:$0xff] }
   0x3   :  { %460 = vmatpush.bf16.msra.mxu2 %v372_v0  ;;  %461 = vmatpush.bf16.msra.mxu3 %v372_v0  ;;  %v369_v4 = vld [vmem:[%s646_s3 + $0x20] sm:$0xff]  ;;  %v450_v7 = vld [vmem:[%s649_s0 + $0x30] sm:$0xff]   ;;  %v375_v8 = vunpack.c.l.bf16 %v374_v3  ;;  %v376_v9 = vunpack.c.h.bf16 %v374_v3  ;;  %v383_v11 = vunpack.c.l.bf16 %v446_v5  ;;  %v384_v12 = vunpack.c.h.bf16 %v446_v5  ;;  %v366_v34 = vld [vmem:[%s646_s3 + $0x8] sm:$0xff] }
   0x4   :  { %v448_v6 = vld [vmem:[%s649_s0 + $0x20] sm:$0xff]   ;;  %v399_v16 = vunpack.c.l.bf16 %v450_v7  ;;  %v400_v17 = vunpack.c.h.bf16 %v450_v7  ;;  %v367_v25 = vld [vmem:[%s646_s3 + $0x10] sm:$0xff]  ;;  %v445_v43 = vld [vmem:[%s649_s0 + $0x8] sm:$0xff]  }
   0x5   :  { %v547_v10 = vld [vmem:[%s647_s1] ss:$0 sm:$0xff]  ;;  %v391_v13 = vunpack.c.l.bf16 %v448_v6  ;;  %v392_v14 = vunpack.c.h.bf16 %v448_v6  ;;  %v447_v44 = vld [vmem:[%s649_s0 + $0x18] sm:$0xff]   ;;  %v449_v48 = vld [vmem:[%s649_s0 + $0x28] sm:$0xff]   ;;  %v379_v51 = vunpack.c.l.bf16 %v445_v43  ;;  %v380_v52 = vunpack.c.h.bf16 %v445_v43 }
   0x6   :  { %181 = vmatpush.bf16.msra.mxu0 %v371_v1  ;;  %462 = vmatpush.bf16.msra.mxu1 %v371_v1  ;;  %v56_v18 = vmul.f32 %v547_v10, %v375_v8  ;;  %v57_v19 = vmul.f32 %v547_v10, %v376_v9  ;;  %v557_v20 = vld [vmem:[%s648_s2] ss:$0 sm:$0xff]  ;;  %v60_v21 = vmul.f32 %v547_v10, %v383_v11  ;;  %v451_v49 = vld [vmem:[%s649_s0 + $0x38] sm:$0xff]   ;;  %v387_v53 = vunpack.c.l.bf16 %v447_v44 }
   0x7   :  { %463 = vmatpush.bf16.msra.mxu2 %v371_v1  ;;  %464 = vmatpush.bf16.msra.mxu3 %v371_v1  ;;  %v61_v22 = vmul.f32 %v547_v10, %v384_v12  ;;  %v64_v23 = vmul.f32 %v547_v10, %v391_v13  ;;  %v65_v24 = vmul.f32 %v547_v10, %v392_v14  ;;  %v365_v45 = vld [vmem:[%s646_s3] sm:$0xff]  ;;  %v388_v56 = vunpack.c.h.bf16 %v447_v44 }
   0x8   :  { %v68_v26 = vmul.f32 %v547_v10, %v399_v16  ;;  %v69_v27 = vmul.f32 %v547_v10, %v400_v17  ;;  %v76_v28 = vadd.f32 %v557_v20, %v56_v18  ;;  %v77_v29 = vadd.f32 %v557_v20, %v57_v19 }
   0x9   :  { %v80_v30 = vadd.f32 %v557_v20, %v60_v21  ;;  %v81_v31 = vadd.f32 %v557_v20, %v61_v22  ;;  %v84_v32 = vadd.f32 %v557_v20, %v64_v23  ;;  %v85_v33 = vadd.f32 %v557_v20, %v65_v24 }
   0xa   :  { %182 = vmatpush.bf16.msra.mxu0 %v370_v2  ;;  %465 = vmatpush.bf16.msra.mxu1 %v370_v2  ;;  %v88_v35 = vadd.f32 %v557_v20, %v68_v26  ;;  %v89_v36 = vadd.f32 %v557_v20, %v69_v27  ;;  %v92_v37 = vmax.f32 %v76_v28, 0.0  ;;  %v93_v38 = vmax.f32 %v77_v29, 0.0 }
   0xb   :  { %466 = vmatpush.bf16.msra.mxu2 %v370_v2  ;;  %467 = vmatpush.bf16.msra.mxu3 %v370_v2  ;;  %v96_v39 = vmax.f32 %v80_v30, 0.0  ;;  %v97_v40 = vmax.f32 %v81_v31, 0.0  ;;  %v100_v41 = vmax.f32 %v84_v32, 0.0  ;;  %v101_v42 = vmax.f32 %v85_v33, 0.0 }
   0xc   :  { %v104_v46 = vmax.f32 %v88_v35, 0.0  ;;  %v105_v47 = vmax.f32 %v89_v36, 0.0  ;;  %v108_v50 = vpack.c.bf16 %v93_v38, %v92_v37  ;;  %v395_v57 = vunpack.c.l.bf16 %v449_v48 }
   0xd   :  { %v110_v54 = vpack.c.bf16 %v97_v40, %v96_v39  ;;  %v112_v55 = vpack.c.bf16 %v101_v42, %v100_v41  ;;  %v396_v59 = vunpack.c.h.bf16 %v449_v48  ;;  %v403_v60 = vunpack.c.l.bf16 %v451_v49 }
   0xe   :  { %183 = vmatpush.bf16.msra.mxu0 %v369_v4  ;;  %468 = vmatpush.bf16.msra.mxu1 %v369_v4  ;;  %v114_v58 = vpack.c.bf16 %v105_v47, %v104_v46  ;;  %v404_v61 = vunpack.c.h.bf16 %v451_v49  ;;  %v58_v62 = vmul.f32 %v547_v10, %v379_v51  ;;  %v59_v63 = vmul.f32 %v547_v10, %v380_v52 }
   0xf   :  { %469 = vmatpush.bf16.msra.mxu2 %v369_v4  ;;  %470 = vmatpush.bf16.msra.mxu3 %v369_v4  ;;  %v62_v0 = vmul.f32 %v547_v10, %v387_v53  ;;  %v63_v1 = vmul.f32 %v547_v10, %v388_v56  ;;  %v66_v2 = vmul.f32 %v547_v10, %v395_v57 }
  0x10   :  { %v67_v3 = vmul.f32 %v547_v10, %v396_v59  ;;  %v70_v4 = vmul.f32 %v547_v10, %v403_v60  ;;  %v71_v5 = vmul.f32 %v547_v10, %v404_v61  ;;  %v78_v6 = vadd.f32 %v557_v20, %v58_v62 }
  0x11   :  { %v79_v7 = vadd.f32 %v557_v20, %v59_v63  ;;  %v82_v8 = vadd.f32 %v557_v20, %v62_v0  ;;  %v83_v9 = vadd.f32 %v557_v20, %v63_v1  ;;  %v86_v11 = vadd.f32 %v557_v20, %v66_v2 }
  0x12   :  { %184 = vmatpush.bf16.msra.mxu0 %v368_v15  ;;  %471 = vmatpush.bf16.msra.mxu1 %v368_v15  ;;  %v87_v12 = vadd.f32 %v557_v20, %v67_v3  ;;  %v90_v13 = vadd.f32 %v557_v20, %v70_v4  ;;  %v91_v14 = vadd.f32 %v557_v20, %v71_v5 }
  0x13   :  { %472 = vmatpush.bf16.msra.mxu2 %v368_v15  ;;  %473 = vmatpush.bf16.msra.mxu3 %v368_v15  ;;  %v94_v15 = vmax.f32 %v78_v6, 0.0  ;;  %v95_v16 = vmax.f32 %v79_v7, 0.0  ;;  %v98_v17 = vmax.f32 %v82_v8, 0.0  ;;  %v99_v10 = vmax.f32 %v83_v9, 0.0 }
  0x14   :  { %v102_v18 = vmax.f32 %v86_v11, 0.0  ;;  %v103_v19 = vmax.f32 %v87_v12, 0.0  ;;  %v106_v21 = vmax.f32 %v90_v13, 0.0  ;;  %v107_v22 = vmax.f32 %v91_v14, 0.0 }
  0x15   :  { %v109_v23 = vpack.c.bf16 %v95_v16, %v94_v15  ;;  %v111_v24 = vpack.c.bf16 %v99_v10, %v98_v17 }
  0x16   :  { %185 = vmatpush.bf16.msra.mxu0 %v367_v25  ;;  %474 = vmatpush.bf16.msra.mxu1 %v367_v25  ;;  %v115_v26 = vpack.c.bf16 %v107_v22, %v106_v21 }
  0x17   :  { %475 = vmatpush.bf16.msra.mxu2 %v367_v25  ;;  %476 = vmatpush.bf16.msra.mxu3 %v367_v25  ;;  %v113_v25 = vpack.c.bf16 %v103_v19, %v102_v18 }
  0x1a   :  { %186 = vmatpush.bf16.msra.mxu0 %v366_v34  ;;  %477 = vmatpush.bf16.msra.mxu1 %v366_v34 }
  0x1b   :  { %478 = vmatpush.bf16.msra.mxu2 %v366_v34  ;;  %479 = vmatpush.bf16.msra.mxu3 %v366_v34 }
  0x1e   :  { %187 = vmatpush.bf16.msra.mxu0 %v365_v45  ;;  %480 = vmatpush.bf16.msra.mxu1 %v365_v45 }
  0x1f   :  { %481 = vmatpush.bf16.msra.mxu2 %v365_v45  ;;  %482 = vmatpush.bf16.msra.mxu3 %v365_v45 }
  0x21   :  { %188 = vmatmul.bf16.vlgmr.msra.gmra.mxu0 %v108_v50  ;;  %198 = vmatmul.bf16.vlgmr.msra.gmra.mxu1 %v110_v54 }
  0x22   :  { %208 = vmatmul.bf16.vlgmr.msra.gmra.mxu2 %v112_v55  ;;  %218 = vmatmul.bf16.vlgmr.msra.gmra.mxu3 %v114_v58 }
  0x31   :  { %193 = vmatmul.bf16.gmra.mxu0 %v109_v23  ;;  %203 = vmatmul.bf16.gmra.mxu1 %v111_v24 }
  0x32   :  { %213 = vmatmul.bf16.gmra.mxu2 %v113_v25  ;;  %223 = vmatmul.bf16.gmra.mxu3 %v115_v26 }
  0x9e   :  { %v189_v27 = vpop.f32.mrf.mxu0  ;;  %v199_v28 = vpop.f32.mrf.mxu1 }
  0x9f   :  { %v283_v41 = vmul.f32 %v189_v27, %v189_v27  ;;  %v287_v55 = vmul.f32 %v199_v28, %v199_v28 }
  0xa5   :  { %v209_v29 = vpop.f32.mrf.mxu2  ;;  %v610_v20 = vpop.f32.mrf.mxu3 }
  0xa6   :  { %v191_v30 = vpop.f32.mrf.mxu0  ;;  %v201_v31 = vpop.f32.mrf.mxu1  ;;  %v291_v7 = vmul.f32 %v209_v29, %v209_v29  ;;  %v295_v19 = vmul.f32 %v610_v20, %v610_v20 }
  0xa7   :  { %v408_v32 = vpack.c.bf16 %v191_v30, %v189_v27  ;;  %v418_v33 = vpack.c.bf16 %v201_v31, %v199_v28  ;;  %v284_v40 = vmul.f32 %v191_v30, %v191_v30  ;;  %v261_v43 = vadd.f32 %v191_v30, %v189_v27 }
  0xa8   :  { %v288_v58 = vmul.f32 %v201_v31, %v201_v31 }
  0xa9   :  { %409 = vst [vmem:[%s650_s4] sm:$0xff] %v408_v32   ;;  %v299_v44 = vadd.f32 %v284_v40, %v283_v41 }
  0xaa   :  { %453 = vst [vmem:[%s650_s4 + $0x10] sm:$0xff] %v418_v33  }
  0xad   :  { %v211_v34 = vpop.f32.mrf.mxu2  ;;  %v221_v35 = vpop.f32.mrf.mxu3 }
  0xae   :  { %v194_v36 = vpop.f32.mrf.mxu0  ;;  %v204_v37 = vpop.f32.mrf.mxu1  ;;  %v428_v38 = vpack.c.bf16 %v211_v34, %v209_v29  ;;  %v438_v39 = vpack.c.bf16 %v221_v35, %v610_v20  ;;  %v292_v11 = vmul.f32 %v211_v34, %v211_v34  ;;  %v296_v23 = vmul.f32 %v221_v35, %v221_v35 }
  0xaf   :  { %v285_v42 = vmul.f32 %v194_v36, %v194_v36  ;;  %v262_v45 = vadd.f32 %v261_v43, %v194_v36  ;;  %v289_v61 = vmul.f32 %v204_v37, %v204_v37 }
  0xb0   :  { %455 = vst [vmem:[%s650_s4 + $0x20] sm:$0xff] %v428_v38  }
  0xb1   :  { %457 = vst [vmem:[%s650_s4 + $0x30] sm:$0xff] %v438_v39   ;;  %v300_v48 = vadd.f32 %v299_v44, %v285_v42 }
  0xb5   :  { %v214_v46 = vpop.f32.mrf.mxu2  ;;  %v224_v47 = vpop.f32.mrf.mxu3 }
  0xb6   :  { %v196_v49 = vpop.f32.mrf.mxu0  ;;  %v206_v50 = vpop.f32.mrf.mxu1  ;;  %v293_v15 = vmul.f32 %v214_v46, %v214_v46  ;;  %v297_v27 = vmul.f32 %v224_v47, %v224_v47 }
  0xb7   :  { %v413_v51 = vpack.c.bf16 %v196_v49, %v194_v36  ;;  %v263_v52 = vadd.f32 %v262_v45, %v196_v49  ;;  %v286_v53 = vmul.f32 %v196_v49, %v196_v49  ;;  %v423_v54 = vpack.c.bf16 %v206_v50, %v204_v37 }
  0xb8   :  { %v290_v5 = vmul.f32 %v206_v50, %v206_v50 }
  0xb9   :  { %452 = vst [vmem:[%s650_s4 + $0x8] sm:$0xff] %v413_v51   ;;  %v264_v56 = vadd.f32 %v263_v52, %v199_v28  ;;  %v301_v57 = vadd.f32 %v300_v48, %v286_v53 }
  0xba   :  { %454 = vst [vmem:[%s650_s4 + $0x18] sm:$0xff] %v423_v54  }
  0xbb   :  { %v302_v59 = vadd.f32 %v301_v57, %v287_v55  ;;  %v265_v60 = vadd.f32 %v264_v56, %v201_v31 }
  0xbd   :  { %v266_v62 = vadd.f32 %v265_v60, %v204_v37  ;;  %v303_v63 = vadd.f32 %v302_v59, %v288_v58  ;;  %v216_v0 = vpop.f32.mrf.mxu2  ;;  %v226_v1 = vpop.f32.mrf.mxu3 }
  0xbe   :  { %v433_v2 = vpack.c.bf16 %v216_v0, %v214_v46  ;;  %v443_v3 = vpack.c.bf16 %v226_v1, %v224_v47  ;;  %v294_v18 = vmul.f32 %v216_v0, %v216_v0  ;;  %v298_v31 = vmul.f32 %v226_v1, %v226_v1 }
  0xbf   :  { %v267_v4 = vadd.f32 %v266_v62, %v206_v50  ;;  %v304_v6 = vadd.f32 %v303_v63, %v289_v61 }
  0xc0   :  { %456 = vst [vmem:[%s650_s4 + $0x28] sm:$0xff] %v433_v2  }
  0xc1   :  { %v268_v8 = vadd.f32 %v267_v4, %v209_v29  ;;  %v305_v9 = vadd.f32 %v304_v6, %v290_v5  ;;  %458 = vst [vmem:[%s650_s4 + $0x38] sm:$0xff] %v443_v3  }
  0xc3   :  { %v306_v12 = vadd.f32 %v305_v9, %v291_v7  ;;  %v269_v13 = vadd.f32 %v268_v8, %v211_v34 }
  0xc5   :  { %v270_v14 = vadd.f32 %v269_v13, %v214_v46  ;;  %v307_v16 = vadd.f32 %v306_v12, %v292_v11 }
  0xc7   :  { %v308_v17 = vadd.f32 %v307_v16, %v293_v15  ;;  %v271_v10 = vadd.f32 %v270_v14, %v216_v0 }
  0xc9   :  { %v272_v21 = vadd.f32 %v271_v10, %v610_v20  ;;  %v309_v22 = vadd.f32 %v308_v17, %v294_v18 }
  0xcb   :  { %v310_v24 = vadd.f32 %v309_v22, %v295_v19  ;;  %v273_v25 = vadd.f32 %v272_v21, %v221_v35 }
  0xcd   :  { %v274_v26 = vadd.f32 %v273_v25, %v224_v47  ;;  %v311_v28 = vadd.f32 %v310_v24, %v296_v23 }
  0xcf   :  { %v312_v29 = vadd.f32 %v311_v28, %v297_v27  ;;  %v275_v30 = vadd.f32 %v274_v26, %v226_v1 }
  0xd1   :  { %v276_v32 = vrot.slane %v275_v30, 4  ;;  %v313_v33 = vadd.f32 %v312_v29, %v298_v31 }
  0xd3   :  { %v277_v34 = vadd.f32 %v276_v32, %v275_v30  ;;  %v314_v36 = vrot.slane %v313_v33, 4 }
  0xd5   :  { %v278_v37 = vrot.slane %v277_v34, 2  ;;  %v315_v38 = vadd.f32 %v314_v36, %v313_v33 }
  0xd7   :  { %v279_v39 = vadd.f32 %v278_v37, %v277_v34  ;;  %v316_v40 = vrot.slane %v315_v38, 2 }
  0xd9   :  { %v280_v41 = vrot.slane %v279_v39, 1  ;;  %v317_v20 = vadd.f32 %v316_v40, %v315_v38 }
  0xdb   :  { %v281_v42 = vadd.f32 %v280_v41, %v279_v39  ;;  %v318_v43 = vrot.slane %v317_v20, 1 }
  0xdd   :  { %282 = vst [vmem:[%s651_s5] sm:$0x1] %v281_v42  ;;  %v319_v35 = vadd.f32 %v318_v43, %v317_v20 }
  0xdf   :  { %320 = vst [vmem:[%s652_s6] sm:$0x1] %v319_v35 }

// kernel: mobilenet_forward.10
= control target key start
LH: loop header
LB: loop body
LE: loop exit
PB: predicated region body
PF: predicated region fallthrough
CT: control target
= control target key end

     0   :  { %s1381_s21 = smov 0   ;;  %s1383_s22 = smov 0   ;;  %s1735_s0 = inlined_call_operand.vmem [shape: bf16[2,10,10,128], index: 0, kind: input, shape index: {}]   ;;  %s1736_s1 = inlined_call_operand.vmem [shape: f32[1,128], index: 1, kind: input, shape index: {}]   ;;  %s1737_s2 = inlined_call_operand.vmem [shape: f32[1,128], index: 2, kind: input, shape index: {}]   ;;  %s1738_s3 = inlined_call_operand.vmem [shape: f32[9,128], index: 3, kind: input, shape index: {}]   ;;  %s1739_s4 = inlined_call_operand.vmem [shape: bf16[2,8,8,128], index: 4, kind: output, shape index: {0}]   ;;  %s1740_s5 = inlined_call_operand.vmem [shape: f32[2,1,128], index: 5, kind: output, shape index: {1}]   ;;  %s1741_s6 = inlined_call_operand.vmem [shape: f32[2,1,128], index: 6, kind: output, shape index: {2}]  }
   0x1   :  { %s1385_s23 = smov 0  }
   0x2 LB: > { %s29_s24 = sadd.s32 1, %s1340_s22  ;;  %p1256_p0 = scmp.ge.s32.totalorder %s1344_s23, 1  ;;  %s1344_s23 = sphi %s1385_s23, %s17_s23   ;;  %s1340_s22 = sphi %s1383_s22, %s1743_s22   ;;  %s1336_s21 = sphi %s1381_s21, %s1742_s21  }
   0x3   : > { %p31_p1 = scmp.ge.s32.totalorder %s29_s24, 2  ;;  %p235_p2 = scmp.lt.s32.totalorder %s1344_s23, 3 }
   0x5   : > { %s1745_s24 = smov (%p31_p1, %s29_s24), 0  ;;  %p236_p3 = pnand %p1256_p0, %p235_p2 }
   0x6   : > { %p277_p4 = scmp.lt.s32.totalorder (!%p236_p3), %s1336_s21, 1 }
   0x7   : > { %239 = sbr.rel (%p236_p3) target bundleno = 146 (0x92), region = 36 }
   0xc   : > { %v414_v0 = vlaneseq  ;;  %s1747_s21 = smov (!%p277_p4, %s1336_s21), 1  ;;  %v1406_v2 = vld [vmem:[%s1738_s3] ss:$0 sm:$0xff]  ;;  %v1411_v3 = vld [vmem:[%s1738_s3 + $0x1] ss:$0 sm:$0xff]  ;;  %vm613_vm2 = vcmask 1046528  }
   0xd   : > { %s1286_s29 = smul.u32 80, %s1747_s21  ;;  %v1311_v4 = vld [vmem:[%s1736_s1] ss:$0 sm:$0xff]  ;;  %v1426_v6 = vmul.f32 0.0, %v1406_v2  ;;  %v1429_v7 = vmul.f32 0.0, %v1411_v3  ;;  %vm688_vm3 = vcmask 1045504   ;;  %s295_s13 = scalar_lea.vmem %s1740_s5, %s1747_s21 }
   0xe   : > { %v1401_v1 = vshrl.u32 %v414_v0, 7  ;;  %v1312_v30 = vld [vmem:[%s1737_s2] ss:$0 sm:$0xff]  ;;  %s1262_s7 = sshll.u32 %s1747_s21, 5  ;;  %s300_s16 = scalar_lea.vmem %s1741_s6, %s1747_s21 }
   0xf   : > { %s1423_s10 = scalar_lea.vmem %s1735_s0, %s1286_s29 }
  0x10   : > { %v1418_v5 = vadd.s32 8, %v1401_v1  ;;  %v308_v8 = vld [vmem:[%s1423_s10 + $0x8] sm:$0xf]  ;;  %v309_v9 = vld [vmem:[%s1423_s10 + $0xc] sm:$0x1]  ;;  %vm457_vm0 = vcmp.ge.s32.totalorder %v1401_v1, 1 }
  0x11   : > { %v310_v10 = vld [vmem:[%s1423_s10 + $0x10] sm:$0xf]  ;;  %v311_v11 = vld [vmem:[%s1423_s10 + $0x14] sm:$0x1]  ;;  %v312_v12 = vld [vmem:[%s1423_s10 + $0x18] sm:$0xf]  ;;  %v328_v14 = vunpack.c.l.bf16 %v308_v8  ;;  %v329_v15 = vunpack.c.l.bf16 %v309_v9 }
  0x12   : > { %v313_v13 = vld [vmem:[%s1423_s10 + $0x1c] sm:$0x1]  ;;  %v330_v16 = vunpack.c.l.bf16 %v310_v10  ;;  %v314_v17 = vld [vmem:[%s1423_s10 + $0x20] sm:$0xf]  ;;  %v315_v18 = vld [vmem:[%s1423_s10 + $0x24] sm:$0x1]  ;;  %v331_v20 = vunpack.c.l.bf16 %v311_v11  ;;  %v332_v21 = vunpack.c.l.bf16 %v312_v12 }
  0x13   : > { %v316_v19 = vld [vmem:[%s1423_s10 + $0x28] sm:$0xf]  ;;  %v333_v22 = vunpack.c.l.bf16 %v313_v13  ;;  %v317_v23 = vld [vmem:[%s1423_s10 + $0x2c] sm:$0x1]  ;;  %v318_v24 = vld [vmem:[%s1423_s10 + $0x30] sm:$0xf]  ;;  %v334_v26 = vunpack.c.l.bf16 %v314_v17  ;;  %v335_v27 = vunpack.c.l.bf16 %v315_v18  ;;  %v352_v29 = vmul.f32 %v1311_v4, %v328_v14 }
  0x14   : > { %v319_v25 = vld [vmem:[%s1423_s10 + $0x34] sm:$0x1]  ;;  %v336_v28 = vunpack.c.l.bf16 %v316_v19  ;;  %v320_v31 = vld [vmem:[%s1423_s10 + $0x38] sm:$0xf]  ;;  %v321_v32 = vld [vmem:[%s1423_s10 + $0x3c] sm:$0x1]  ;;  %v337_v34 = vunpack.c.l.bf16 %v317_v23  ;;  %v338_v35 = vunpack.c.l.bf16 %v318_v24  ;;  %v353_v37 = vmul.f32 %v1311_v4, %v329_v15 }
  0x15   : > { %v322_v33 = vld [vmem:[%s1423_s10 + $0x40] sm:$0xf]  ;;  %v339_v36 = vunpack.c.l.bf16 %v319_v25  ;;  %v323_v38 = vld [vmem:[%s1423_s10 + $0x44] sm:$0x1]  ;;  %v340_v39 = vunpack.c.l.bf16 %v320_v31  ;;  %v341_v40 = vunpack.c.l.bf16 %v321_v32  ;;  %v354_v42 = vmul.f32 %v1311_v4, %v330_v16  ;;  %s290_s10 = scalar_lea.vmem %s1739_s4, %s1262_s7 }
  0x16   : > { %v342_v41 = vunpack.c.l.bf16 %v322_v33  ;;  %v343_v43 = vunpack.c.l.bf16 %v323_v38  ;;  %v355_v44 = vmul.f32 %v1311_v4, %v331_v20  ;;  %v356_v45 = vmul.f32 %v1311_v4, %v332_v21 }
  0x17   : > { %v357_v46 = vmul.f32 %v1311_v4, %v333_v22  ;;  %vm480_vm1 = vcmp.lt.s32.totalorder %v1418_v5, 9  ;;  %v358_v47 = vmul.f32 %v1311_v4, %v334_v26  ;;  %v359_v48 = vmul.f32 %v1311_v4, %v335_v27 }
  0x18   : > { %v360_v49 = vmul.f32 %v1311_v4, %v336_v28  ;;  %v361_v50 = vmul.f32 %v1311_v4, %v337_v34  ;;  %v362_v51 = vmul.f32 %v1311_v4, %v338_v35  ;;  %v363_v52 = vmul.f32 %v1311_v4, %v339_v36 }
  0x19   : > { %v364_v53 = vmul.f32 %v1311_v4, %v340_v39  ;;  %v365_v54 = vmul.f32 %v1311_v4, %v341_v40  ;;  %v366_v55 = vmul.f32 %v1311_v4, %v342_v41  ;;  %v367_v56 = vmul.f32 %v1311_v4, %v343_v43 }
  0x1a   : > { %v376_v57 = vadd.f32 %v1312_v30, %v352_v29  ;;  %v377_v58 = vadd.f32 %v1312_v30, %v353_v37  ;;  %v378_v59 = vadd.f32 %v1312_v30, %v354_v42  ;;  %v379_v60 = vadd.f32 %v1312_v30, %v355_v44 }
  0x1b   : > { %v380_v61 = vadd.f32 %v1312_v30, %v356_v45  ;;  %v381_v62 = vadd.f32 %v1312_v30, %v357_v46  ;;  %v382_v63 = vadd.f32 %v1312_v30, %v358_v47  ;;  %v383_v0 = vadd.f32 %v1312_v30, %v359_v48 }
  0x1c   : > { %v384_v8 = vadd.f32 %v1312_v30, %v360_v49  ;;  %v385_v9 = vadd.f32 %v1312_v30, %v361_v50  ;;  %v386_v10 = vadd.f32 %v1312_v30, %v362_v51  ;;  %v387_v11 = vadd.f32 %v1312_v30, %v363_v52 }
  0x1d   : > { %v388_v12 = vadd.f32 %v1312_v30, %v364_v53  ;;  %v389_v13 = vadd.f32 %v1312_v30, %v365_v54  ;;  %v390_v14 = vadd.f32 %v1312_v30, %v366_v55  ;;  %v391_v15 = vadd.f32 %v1312_v30, %v367_v56 }
  0x1e   : > { %v396_v16 = vmax.f32 %v376_v57, 0.0  ;;  %v397_v17 = vmax.f32 %v377_v58, 0.0  ;;  %v398_v18 = vmax.f32 %v378_v59, 0.0  ;;  %v399_v4 = vmax.f32 %v379_v60, 0.0 }
  0x1f   : > { %v400_v19 = vmax.f32 %v380_v61, 0.0  ;;  %v401_v20 = vmax.f32 %v381_v62, 0.0  ;;  %v402_v21 = vmax.f32 %v382_v63, 0.0  ;;  %v403_v22 = vmax.f32 %v383_v0, 0.0 }
  0x20   : > { %v404_v23 = vmax.f32 %v384_v8, 0.0  ;;  %v405_v24 = vmax.f32 %v385_v9, 0.0  ;;  %v406_v25 = vmax.f32 %v386_v10, 0.0  ;;  %v407_v26 = vmax.f32 %v387_v11, 0.0 }
  0x21   : > { %v408_v27 = vmax.f32 %v388_v12, 0.0  ;;  %v409_v28 = vmax.f32 %v389_v13, 0.0  ;;  %v410_v29 = vmax.f32 %v390_v14, 0.0  ;;  %v411_v31 = vmax.f32 %v391_v15, 0.0 }
  0x22   : > { %v1454_v32 = vsel %vm457_vm0, %v396_v16, 0.0  ;;  %v1458_v30 = vsel %vm480_vm1, %v397_v17, 0.0  ;;  %v1462_v33 = vsel %vm457_vm0, %v398_v18, 0.0  ;;  %v1466_v34 = vsel %vm480_vm1, %v399_v4, 0.0 }
  0x23   : > { %v1470_v35 = vsel %vm457_vm0, %v400_v19, 0.0  ;;  %v1474_v36 = vsel %vm480_vm1, %v401_v20, 0.0  ;;  %v1478_v37 = vsel %vm457_vm0, %v402_v21, 0.0  ;;  %v1482_v38 = vsel %vm480_vm1, %v403_v22, 0.0  ;;  %v1315_v22 = vld [vmem:[%s1738_s3 + $0x2] ss:$0 sm:$0xff] }
  0x24   : > { %v1486_v39 = vsel %vm457_vm0, %v404_v23, 0.0  ;;  %v1490_v40 = vsel %vm480_vm1, %v405_v24, 0.0  ;;  %v1494_v41 = vsel %vm457_vm0, %v406_v25, 0.0  ;;  %v1498_v42 = vsel %vm480_vm1, %v407_v26, 0.0 }
  0x25   : > { %v1502_v43 = vsel %vm457_vm0, %v408_v27, 0.0  ;;  %v1506_v44 = vsel %vm480_vm1, %v409_v28, 0.0  ;;  %v1510_v45 = vsel %vm457_vm0, %v410_v29, 0.0  ;;  %v1514_v46 = vsel %vm480_vm1, %v411_v31, 0.0 }
  0x26   : > { %v564_v47 = vmul.f32 %v1406_v2, %v1454_v32  ;;  %v565_v48 = vmul.f32 %v1406_v2, %v1462_v33  ;;  %v566_v49 = vmul.f32 %v1406_v2, %v1470_v35  ;;  %v567_v50 = vmul.f32 %v1406_v2, %v1478_v37 }
  0x27   : > { %v568_v1 = vmul.f32 %v1406_v2, %v1486_v39  ;;  %v569_v5 = vmul.f32 %v1406_v2, %v1494_v41  ;;  %v570_v51 = vmul.f32 %v1406_v2, %v1502_v43  ;;  %v583_v52 = vmul.f32 %v1411_v3, %v1454_v32 }
  0x28   : > { %v584_v53 = vmul.f32 %v1411_v3, %v1458_v30  ;;  %v585_v54 = vmul.f32 %v1411_v3, %v1462_v33  ;;  %v586_v55 = vmul.f32 %v1411_v3, %v1466_v34  ;;  %v587_v56 = vmul.f32 %v1411_v3, %v1470_v35 }
  0x29   : > { %v588_v57 = vmul.f32 %v1411_v3, %v1474_v36  ;;  %v589_v2 = vmul.f32 %v1411_v3, %v1478_v37  ;;  %v590_v58 = vmul.f32 %v1411_v3, %v1482_v38  ;;  %v591_v59 = vmul.f32 %v1411_v3, %v1486_v39 }
  0x2a   : > { %v592_v60 = vmul.f32 %v1411_v3, %v1490_v40  ;;  %v593_v61 = vmul.f32 %v1411_v3, %v1494_v41  ;;  %v594_v62 = vmul.f32 %v1411_v3, %v1498_v42  ;;  %v595_v63 = vmul.f32 %v1411_v3, %v1502_v43 }
  0x2b   : > { %v596_v0 = vmul.f32 %v1411_v3, %v1506_v44  ;;  %v614_v8 = vrot.slane %v1429_v7, 1  ;;  %v617_v9 = vrot.slane %v583_v52, 1  ;;  %v618_v10 = vrot.slane %v584_v53, 1 }
  0x2c   : > { %v620_v11 = vrot.slane %v585_v54, 1  ;;  %v621_v12 = vrot.slane %v586_v55, 1  ;;  %v623_v13 = vrot.slane %v587_v56, 1  ;;  %v624_v14 = vrot.slane %v588_v57, 1 }
  0x2d   : > { %v626_v15 = vrot.slane %v589_v2, 1  ;;  %v627_v16 = vrot.slane %v590_v58, 1  ;;  %v619_v17 = vsel %vm613_vm2, %v617_v9, %v618_v10  ;;  %v629_v4 = vrot.slane %v591_v59, 1 }
  0x2e   : > { %v622_v18 = vsel %vm613_vm2, %v620_v11, %v621_v12  ;;  %v630_v19 = vrot.slane %v592_v60, 1  ;;  %v625_v20 = vsel %vm613_vm2, %v623_v13, %v624_v14  ;;  %v632_v21 = vrot.slane %v593_v61, 1 }
  0x2f   : > { %v628_v3 = vsel %vm613_vm2, %v626_v15, %v627_v16  ;;  %v633_v7 = vrot.slane %v594_v62, 1  ;;  %v635_v24 = vrot.slane %v595_v63, 1  ;;  %v636_v25 = vrot.slane %v596_v0, 1 }
  0x30   : > { %v631_v23 = vsel %vm613_vm2, %v629_v4, %v630_v19  ;;  %v646_v26 = vadd.f32 %v614_v8, %v1426_v6  ;;  %v647_v28 = vadd.f32 %v619_v17, %v564_v47  ;;  %v648_v29 = vadd.f32 %v622_v18, %v565_v48 }
  0x31   : > { %v634_v27 = vsel %vm613_vm2, %v632_v21, %v633_v7  ;;  %v649_v31 = vadd.f32 %v625_v20, %v566_v49  ;;  %v637_v52 = vsel %vm613_vm2, %v635_v24, %v636_v25  ;;  %v650_v53 = vadd.f32 %v628_v3, %v567_v50  ;;  %v1316_v20 = vld [vmem:[%s1738_s3 + $0x3] ss:$0 sm:$0xff] }
  0x32   : > { %v651_v54 = vadd.f32 %v631_v23, %v568_v1  ;;  %v652_v55 = vadd.f32 %v634_v27, %v569_v5  ;;  %v653_v56 = vadd.f32 %v637_v52, %v570_v51  ;;  %v656_v57 = vmul.f32 0.0, %v1315_v22 }
  0x33   : > { %v658_v2 = vmul.f32 %v1315_v22, %v1454_v32  ;;  %v659_v58 = vmul.f32 %v1315_v22, %v1458_v30  ;;  %v660_v59 = vmul.f32 %v1315_v22, %v1462_v33  ;;  %v661_v6 = vmul.f32 %v1315_v22, %v1466_v34 }
  0x34   : > { %v662_v60 = vmul.f32 %v1315_v22, %v1470_v35  ;;  %v663_v47 = vmul.f32 %v1315_v22, %v1474_v36  ;;  %v664_v48 = vmul.f32 %v1315_v22, %v1478_v37  ;;  %v665_v49 = vmul.f32 %v1315_v22, %v1482_v38 }
  0x35   : > { %v666_v50 = vmul.f32 %v1315_v22, %v1486_v39  ;;  %v667_v1 = vmul.f32 %v1315_v22, %v1490_v40  ;;  %v668_v5 = vmul.f32 %v1315_v22, %v1494_v41  ;;  %v669_v51 = vmul.f32 %v1315_v22, %v1498_v42 }
  0x36   : > { %v670_v61 = vmul.f32 %v1315_v22, %v1502_v43  ;;  %v671_v62 = vmul.f32 %v1315_v22, %v1506_v44  ;;  %v689_v63 = vrot.slane %v656_v57, 2  ;;  %v692_v0 = vrot.slane %v658_v2, 2 }
  0x37   : > { %v693_v8 = vrot.slane %v659_v58, 2  ;;  %v695_v9 = vrot.slane %v660_v59, 2  ;;  %v696_v10 = vrot.slane %v661_v6, 2  ;;  %v698_v11 = vrot.slane %v662_v60, 2 }
  0x38   : > { %v699_v12 = vrot.slane %v663_v47, 2  ;;  %v701_v14 = vrot.slane %v664_v48, 2  ;;  %v702_v15 = vrot.slane %v665_v49, 2  ;;  %v704_v16 = vrot.slane %v666_v50, 2  ;;  %v1317_v48 = vld [vmem:[%s1738_s3 + $0x4] ss:$0 sm:$0xff] }
  0x39   : > { %v694_v13 = vsel %vm688_vm3, %v692_v0, %v693_v8  ;;  %v697_v17 = vsel %vm688_vm3, %v695_v9, %v696_v10  ;;  %v705_v4 = vrot.slane %v667_v1, 2  ;;  %v707_v19 = vrot.slane %v668_v5, 2 }
  0x3a   : > { %v700_v18 = vsel %vm688_vm3, %v698_v11, %v699_v12  ;;  %v703_v3 = vsel %vm688_vm3, %v701_v14, %v702_v15  ;;  %v708_v21 = vrot.slane %v669_v51, 2  ;;  %v710_v7 = vrot.slane %v670_v61, 2 }
  0x3b   : > { %v711_v22 = vrot.slane %v671_v62, 2  ;;  %v706_v23 = vsel %vm688_vm3, %v704_v16, %v705_v4  ;;  %v721_v24 = vadd.f32 %v689_v63, %v646_v26  ;;  %v722_v25 = vadd.f32 %v694_v13, %v647_v28 }
  0x3c   : > { %v723_v27 = vadd.f32 %v697_v17, %v648_v29  ;;  %v709_v52 = vsel %vm688_vm3, %v707_v19, %v708_v21  ;;  %v724_v2 = vadd.f32 %v700_v18, %v649_v31  ;;  %v725_v58 = vadd.f32 %v703_v3, %v650_v53 }
  0x3d   : > { %v712_v57 = vsel %vm688_vm3, %v710_v7, %v711_v22  ;;  %v726_v59 = vadd.f32 %v706_v23, %v651_v54  ;;  %v727_v6 = vadd.f32 %v709_v52, %v652_v55  ;;  %v731_v47 = vmul.f32 %v1316_v20, %v1454_v32 }
  0x3e   : > { %v728_v60 = vadd.f32 %v712_v57, %v653_v56  ;;  %v732_v49 = vmul.f32 %v1316_v20, %v1462_v33  ;;  %v733_v26 = vmul.f32 %v1316_v20, %v1470_v35  ;;  %v734_v28 = vmul.f32 %v1316_v20, %v1478_v37 }
  0x3f   : > { %v735_v29 = vmul.f32 %v1316_v20, %v1486_v39  ;;  %v736_v31 = vmul.f32 %v1316_v20, %v1494_v41  ;;  %v737_v53 = vmul.f32 %v1316_v20, %v1502_v43  ;;  %v738_v54 = vmul.f32 %v1316_v20, %v1510_v45 }
  0x40   : > { %v739_v55 = vadd.f32 %v731_v47, %v721_v24  ;;  %v740_v56 = vadd.f32 %v732_v49, %v722_v25  ;;  %v741_v50 = vadd.f32 %v733_v26, %v723_v27  ;;  %v742_v1 = vadd.f32 %v734_v28, %v724_v2  ;;  %v1318_v49 = vld [vmem:[%s1738_s3 + $0x5] ss:$0 sm:$0xff] }
  0x41   : > { %v743_v5 = vadd.f32 %v735_v29, %v725_v58  ;;  %v744_v51 = vadd.f32 %v736_v31, %v726_v59  ;;  %v745_v61 = vadd.f32 %v737_v53, %v727_v6  ;;  %v746_v62 = vadd.f32 %v738_v54, %v728_v60 }
  0x42   : > { %v749_v63 = vmul.f32 %v1317_v48, %v1454_v32  ;;  %v750_v0 = vmul.f32 %v1317_v48, %v1458_v30  ;;  %v751_v8 = vmul.f32 %v1317_v48, %v1462_v33  ;;  %v752_v9 = vmul.f32 %v1317_v48, %v1466_v34 }
  0x43   : > { %v753_v10 = vmul.f32 %v1317_v48, %v1470_v35  ;;  %v754_v11 = vmul.f32 %v1317_v48, %v1474_v36  ;;  %v755_v12 = vmul.f32 %v1317_v48, %v1478_v37  ;;  %v756_v13 = vmul.f32 %v1317_v48, %v1482_v38 }
  0x44   : > { %v757_v14 = vmul.f32 %v1317_v48, %v1486_v39  ;;  %v758_v15 = vmul.f32 %v1317_v48, %v1490_v40  ;;  %v759_v16 = vmul.f32 %v1317_v48, %v1494_v41  ;;  %v760_v17 = vmul.f32 %v1317_v48, %v1498_v42 }
  0x45   : > { %v761_v18 = vmul.f32 %v1317_v48, %v1502_v43  ;;  %v762_v4 = vmul.f32 %v1317_v48, %v1506_v44  ;;  %v763_v19 = vmul.f32 %v1317_v48, %v1510_v45  ;;  %v764_v20 = vmul.f32 %v1317_v48, %v1514_v46 }
  0x46   : > { %v781_v3 = vrot.slane %v749_v63, 1  ;;  %v782_v21 = vrot.slane %v750_v0, 1  ;;  %v784_v7 = vrot.slane %v751_v8, 1  ;;  %v785_v22 = vrot.slane %v752_v9, 1 }
  0x47   : > { %v787_v23 = vrot.slane %v753_v10, 1  ;;  %v788_v24 = vrot.slane %v754_v11, 1  ;;  %v790_v25 = vrot.slane %v755_v12, 1  ;;  %v791_v27 = vrot.slane %v756_v13, 1 }
  0x48   : > { %v793_v52 = vrot.slane %v757_v14, 1  ;;  %v783_v57 = vsel %vm613_vm2, %v781_v3, %v782_v21  ;;  %v786_v2 = vsel %vm613_vm2, %v784_v7, %v785_v22  ;;  %v794_v58 = vrot.slane %v758_v15, 1 }
  0x49   : > { %v796_v59 = vrot.slane %v759_v16, 1  ;;  %v789_v6 = vsel %vm613_vm2, %v787_v23, %v788_v24  ;;  %v792_v60 = vsel %vm613_vm2, %v790_v25, %v791_v27  ;;  %v797_v47 = vrot.slane %v760_v17, 1 }
  0x4a   : > { %v799_v48 = vrot.slane %v761_v18, 1  ;;  %v795_v26 = vsel %vm613_vm2, %v793_v52, %v794_v58  ;;  %v800_v28 = vrot.slane %v762_v4, 1  ;;  %v802_v29 = vrot.slane %v763_v19, 1 }
  0x4b   : > { %v803_v31 = vrot.slane %v764_v20, 1  ;;  %v798_v53 = vsel %vm613_vm2, %v796_v59, %v797_v47  ;;  %v813_v54 = vadd.f32 %v783_v57, %v739_v55  ;;  %v814_v63 = vadd.f32 %v786_v2, %v740_v56 }
  0x4c   : > { %v815_v0 = vadd.f32 %v789_v6, %v741_v50  ;;  %v801_v8 = vsel %vm613_vm2, %v799_v48, %v800_v28  ;;  %v816_v10 = vadd.f32 %v792_v60, %v742_v1  ;;  %v817_v11 = vadd.f32 %v795_v26, %v743_v5  ;;  %v1319_v48 = vld [vmem:[%s1738_s3 + $0x6] ss:$0 sm:$0xff] }
  0x4d   : > { %v804_v9 = vsel %vm613_vm2, %v802_v29, %v803_v31  ;;  %v818_v12 = vadd.f32 %v798_v53, %v744_v51  ;;  %v819_v13 = vadd.f32 %v801_v8, %v745_v61  ;;  %v823_v15 = vmul.f32 %v1318_v49, %v1454_v32 }
  0x4e   : > { %v820_v14 = vadd.f32 %v804_v9, %v746_v62  ;;  %v824_v16 = vmul.f32 %v1318_v49, %v1458_v30  ;;  %v825_v17 = vmul.f32 %v1318_v49, %v1462_v33  ;;  %v826_v18 = vmul.f32 %v1318_v49, %v1466_v34 }
  0x4f   : > { %v827_v55 = vmul.f32 %v1318_v49, %v1470_v35  ;;  %v828_v56 = vmul.f32 %v1318_v49, %v1474_v36  ;;  %v829_v50 = vmul.f32 %v1318_v49, %v1478_v37  ;;  %v830_v1 = vmul.f32 %v1318_v49, %v1482_v38 }
  0x50   : > { %v831_v5 = vmul.f32 %v1318_v49, %v1486_v39  ;;  %v832_v51 = vmul.f32 %v1318_v49, %v1490_v40  ;;  %v833_v32 = vmul.f32 %v1318_v49, %v1494_v41  ;;  %v834_v30 = vmul.f32 %v1318_v49, %v1498_v42 }
  0x51   : > { %v835_v61 = vmul.f32 %v1318_v49, %v1502_v43  ;;  %v836_v62 = vmul.f32 %v1318_v49, %v1506_v44  ;;  %v837_v4 = vmul.f32 %v1318_v49, %v1510_v45  ;;  %v838_v19 = vmul.f32 %v1318_v49, %v1514_v46 }
  0x52   : > { %v855_v20 = vrot.slane %v823_v15, 2  ;;  %v856_v3 = vrot.slane %v824_v16, 2  ;;  %v858_v21 = vrot.slane %v825_v17, 2  ;;  %v859_v7 = vrot.slane %v826_v18, 2 }
  0x53   : > { %v861_v22 = vrot.slane %v827_v55, 2  ;;  %v862_v23 = vrot.slane %v828_v56, 2  ;;  %v864_v24 = vrot.slane %v829_v50, 2  ;;  %v865_v25 = vrot.slane %v830_v1, 2 }
  0x54   : > { %v867_v27 = vrot.slane %v831_v5, 2  ;;  %v857_v52 = vsel %vm688_vm3, %v855_v20, %v856_v3  ;;  %v860_v57 = vsel %vm688_vm3, %v858_v21, %v859_v7  ;;  %v868_v2 = vrot.slane %v832_v51, 2  ;;  %v1320_v5 = vld [vmem:[%s1738_s3 + $0x7] ss:$0 sm:$0xff] }
  0x55   : > { %v870_v58 = vrot.slane %v833_v32, 2  ;;  %v863_v59 = vsel %vm688_vm3, %v861_v22, %v862_v23  ;;  %v866_v6 = vsel %vm688_vm3, %v864_v24, %v865_v25  ;;  %v871_v60 = vrot.slane %v834_v30, 2 }
  0x56   : > { %v873_v47 = vrot.slane %v835_v61, 2  ;;  %v869_v49 = vsel %vm688_vm3, %v867_v27, %v868_v2  ;;  %v874_v26 = vrot.slane %v836_v62, 2  ;;  %v876_v28 = vrot.slane %v837_v4, 2 }
  0x57   : > { %v877_v29 = vrot.slane %v838_v19, 2  ;;  %v872_v31 = vsel %vm688_vm3, %v870_v58, %v871_v60  ;;  %v887_v53 = vadd.f32 %v857_v52, %v813_v54  ;;  %v888_v8 = vadd.f32 %v860_v57, %v814_v63 }
  0x58   : > { %v889_v9 = vadd.f32 %v863_v59, %v815_v0  ;;  %v875_v15 = vsel %vm688_vm3, %v873_v47, %v874_v26  ;;  %v890_v17 = vadd.f32 %v866_v6, %v816_v10  ;;  %v891_v18 = vadd.f32 %v869_v49, %v817_v11 }
  0x59   : > { %v878_v16 = vsel %vm688_vm3, %v876_v28, %v877_v29  ;;  %v892_v55 = vadd.f32 %v872_v31, %v818_v12  ;;  %v893_v56 = vadd.f32 %v875_v15, %v819_v13  ;;  %v897_v1 = vmul.f32 %v1319_v48, %v1462_v33 }
  0x5a   : > { %v894_v50 = vadd.f32 %v878_v16, %v820_v14  ;;  %v898_v51 = vmul.f32 %v1319_v48, %v1470_v35  ;;  %v899_v54 = vmul.f32 %v1319_v48, %v1478_v37  ;;  %v900_v63 = vmul.f32 %v1319_v48, %v1486_v39 }
  0x5b   : > { %v901_v0 = vmul.f32 %v1319_v48, %v1494_v41  ;;  %v902_v10 = vmul.f32 %v1319_v48, %v1502_v43  ;;  %v903_v11 = vmul.f32 %v1319_v48, %v1510_v45  ;;  %v904_v12 = vmul.f32 0.0, %v1319_v48 }
  0x5c   : > { %v905_v13 = vadd.f32 %v897_v1, %v887_v53  ;;  %v906_v14 = vadd.f32 %v898_v51, %v888_v8  ;;  %v907_v32 = vadd.f32 %v899_v54, %v889_v9  ;;  %v908_v30 = vadd.f32 %v900_v63, %v890_v17  ;;  %v1321_v1 = vld [vmem:[%s1738_s3 + $0x8] ss:$0 sm:$0xff] }
  0x5d   : > { %v909_v61 = vadd.f32 %v901_v0, %v891_v18  ;;  %v910_v62 = vadd.f32 %v902_v10, %v892_v55  ;;  %v911_v4 = vadd.f32 %v903_v11, %v893_v56  ;;  %v912_v19 = vadd.f32 %v904_v12, %v894_v50 }
  0x5e   : > { %v915_v20 = vmul.f32 %v1320_v5, %v1462_v33  ;;  %v916_v3 = vmul.f32 %v1320_v5, %v1466_v34  ;;  %v917_v21 = vmul.f32 %v1320_v5, %v1470_v35  ;;  %v918_v7 = vmul.f32 %v1320_v5, %v1474_v36 }
  0x5f   : > { %v919_v22 = vmul.f32 %v1320_v5, %v1478_v37  ;;  %v920_v23 = vmul.f32 %v1320_v5, %v1482_v38  ;;  %v921_v24 = vmul.f32 %v1320_v5, %v1486_v39  ;;  %v922_v25 = vmul.f32 %v1320_v5, %v1490_v40 }
  0x60   : > { %v923_v27 = vmul.f32 %v1320_v5, %v1494_v41  ;;  %v924_v52 = vmul.f32 %v1320_v5, %v1498_v42  ;;  %v925_v57 = vmul.f32 %v1320_v5, %v1502_v43  ;;  %v926_v2 = vmul.f32 %v1320_v5, %v1506_v44 }
  0x61   : > { %v927_v58 = vmul.f32 %v1320_v5, %v1510_v45  ;;  %v928_v59 = vmul.f32 %v1320_v5, %v1514_v46  ;;  %v929_v6 = vmul.f32 0.0, %v1320_v5  ;;  %v947_v60 = vrot.slane %v915_v20, 1 }
  0x62   : > { %v948_v47 = vrot.slane %v916_v3, 1  ;;  %v950_v48 = vrot.slane %v917_v21, 1  ;;  %v951_v49 = vrot.slane %v918_v7, 1  ;;  %v953_v26 = vrot.slane %v919_v22, 1 }
  0x63   : > { %v954_v28 = vrot.slane %v920_v23, 1  ;;  %v956_v31 = vrot.slane %v921_v24, 1  ;;  %v957_v53 = vrot.slane %v922_v25, 1  ;;  %v959_v8 = vrot.slane %v923_v27, 1 }
  0x64   : > { %v949_v29 = vsel %vm613_vm2, %v947_v60, %v948_v47  ;;  %v952_v9 = vsel %vm613_vm2, %v950_v48, %v951_v49  ;;  %v960_v16 = vrot.slane %v924_v52, 1  ;;  %v962_v17 = vrot.slane %v925_v57, 1 }
  0x65   : > { %v955_v15 = vsel %vm613_vm2, %v953_v26, %v954_v28  ;;  %v958_v18 = vsel %vm613_vm2, %v956_v31, %v957_v53  ;;  %v963_v55 = vrot.slane %v926_v2, 1  ;;  %v965_v56 = vrot.slane %v927_v58, 1 }
  0x66   : > { %v966_v50 = vrot.slane %v928_v59, 1  ;;  %v961_v5 = vsel %vm613_vm2, %v959_v8, %v960_v16  ;;  %v968_v51 = vrot.slane %v929_v6, 1  ;;  %v979_v54 = vadd.f32 %v949_v29, %v905_v13 }
  0x67   : > { %v980_v63 = vadd.f32 %v952_v9, %v906_v14  ;;  %v964_v0 = vsel %vm613_vm2, %v962_v17, %v963_v55  ;;  %v981_v11 = vadd.f32 %v955_v15, %v907_v32  ;;  %v982_v12 = vadd.f32 %v958_v18, %v908_v30 }
  0x68   : > { %v967_v10 = vsel %vm613_vm2, %v965_v56, %v966_v50  ;;  %v983_v20 = vadd.f32 %v961_v5, %v909_v61  ;;  %v984_v3 = vadd.f32 %v964_v0, %v910_v62  ;;  %v986_v7 = vadd.f32 %v968_v51, %v912_v19 }
  0x69   : > { %v985_v21 = vadd.f32 %v967_v10, %v911_v4  ;;  %v989_v22 = vmul.f32 %v1321_v1, %v1462_v33  ;;  %v990_v23 = vmul.f32 %v1321_v1, %v1466_v34  ;;  %v991_v24 = vmul.f32 %v1321_v1, %v1470_v35 }
  0x6a   : > { %v992_v25 = vmul.f32 %v1321_v1, %v1474_v36  ;;  %v993_v13 = vmul.f32 %v1321_v1, %v1478_v37  ;;  %v994_v14 = vmul.f32 %v1321_v1, %v1482_v38  ;;  %v995_v27 = vmul.f32 %v1321_v1, %v1486_v39 }
  0x6b   : > { %v996_v32 = vmul.f32 %v1321_v1, %v1490_v40  ;;  %v997_v30 = vmul.f32 %v1321_v1, %v1494_v41  ;;  %v998_v61 = vmul.f32 %v1321_v1, %v1498_v42  ;;  %v999_v33 = vmul.f32 %v1321_v1, %v1502_v43 }
  0x6c   : > { %v1000_v34 = vmul.f32 %v1321_v1, %v1506_v44  ;;  %v1001_v35 = vmul.f32 %v1321_v1, %v1510_v45  ;;  %v1002_v36 = vmul.f32 %v1321_v1, %v1514_v46  ;;  %v1003_v37 = vmul.f32 0.0, %v1321_v1 }
  0x6d   : > { %v1021_v62 = vrot.slane %v989_v22, 2  ;;  %v1022_v38 = vrot.slane %v990_v23, 2  ;;  %v1024_v4 = vrot.slane %v991_v24, 2  ;;  %v1025_v39 = vrot.slane %v992_v25, 2 }
  0x6e   : > { %v1027_v19 = vrot.slane %v993_v13, 2  ;;  %v1028_v40 = vrot.slane %v994_v14, 2  ;;  %v1030_v52 = vrot.slane %v995_v27, 2  ;;  %v1031_v41 = vrot.slane %v996_v32, 2 }
  0x6f   : > { %v1033_v57 = vrot.slane %v997_v30, 2  ;;  %v1023_v42 = vsel %vm688_vm3, %v1021_v62, %v1022_v38  ;;  %v1026_v43 = vsel %vm688_vm3, %v1024_v4, %v1025_v39  ;;  %v1034_v44 = vrot.slane %v998_v61, 2 }
  0x70   : > { %v1036_v2 = vrot.slane %v999_v33, 2  ;;  %v1029_v45 = vsel %vm688_vm3, %v1027_v19, %v1028_v40  ;;  %v1032_v46 = vsel %vm688_vm3, %v1030_v52, %v1031_v41  ;;  %v1037_v58 = vrot.slane %v1000_v34, 2 }
  0x71   : > { %v1039_v59 = vrot.slane %v1001_v35, 2  ;;  %v1035_v6 = vsel %vm688_vm3, %v1033_v57, %v1034_v44  ;;  %v1040_v60 = vrot.slane %v1002_v36, 2  ;;  %v1042_v47 = vrot.slane %v1003_v37, 2 }
  0x72   : > { %v1053_v48 = vadd.f32 %v1023_v42, %v979_v54  ;;  %v1038_v49 = vsel %vm688_vm3, %v1036_v2, %v1037_v58  ;;  %v1054_v26 = vadd.f32 %v1026_v43, %v980_v63  ;;  %v1055_v28 = vadd.f32 %v1029_v45, %v981_v11 }
  0x73   : > { %v1056_v29 = vadd.f32 %v1032_v46, %v982_v12  ;;  %v1041_v31 = vsel %vm688_vm3, %v1039_v59, %v1040_v60  ;;  %v1057_v53 = vadd.f32 %v1035_v6, %v983_v20  ;;  %v1058_v8 = vadd.f32 %v1038_v49, %v984_v3 }
  0x74   : > { %v1060_v9 = vadd.f32 %v1042_v47, %v986_v7  ;;  %v1059_v15 = vadd.f32 %v1041_v31, %v985_v21  ;;  %v1266_v16 = vpack.c.bf16 %v1054_v26, %v1053_v48  ;;  %v1077_v18 = vadd.f32 %v1054_v26, %v1053_v48 }
  0x75   : > { %v1271_v17 = vpack.c.bf16 %v1056_v29, %v1055_v28  ;;  %v1276_v55 = vpack.c.bf16 %v1058_v8, %v1057_v53  ;;  %v1091_v56 = vmul.f32 %v1053_v48, %v1053_v48  ;;  %v1092_v50 = vmul.f32 %v1054_v26, %v1054_v26 }
  0x76   : > { %v1093_v1 = vmul.f32 %v1055_v28, %v1055_v28  ;;  %1267 = vst [vmem:[%s290_s10] sm:$0xff] %v1266_v16   ;;  %v1281_v5 = vpack.c.bf16 %v1060_v9, %v1059_v15  ;;  %v1078_v51 = vadd.f32 %v1077_v18, %v1055_v28  ;;  %v1094_v54 = vmul.f32 %v1056_v29, %v1056_v29 }
  0x77   : > { %1283 = vst [vmem:[%s290_s10 + $0x8] sm:$0xff] %v1271_v17   ;;  %v1099_v63 = vadd.f32 %v1092_v50, %v1091_v56  ;;  %v1095_v10 = vmul.f32 %v1057_v53, %v1057_v53  ;;  %v1096_v20 = vmul.f32 %v1058_v8, %v1058_v8  ;;  %v1097_v7 = vmul.f32 %v1059_v15, %v1059_v15 }
  0x78   : > { %1284 = vst [vmem:[%s290_s10 + $0x10] sm:$0xff] %v1276_v55   ;;  %v1079_v0 = vadd.f32 %v1078_v51, %v1056_v29  ;;  %v1098_v24 = vmul.f32 %v1060_v9, %v1060_v9 }
  0x79   : > { %1285 = vst [vmem:[%s290_s10 + $0x18] sm:$0xff] %v1281_v5   ;;  %v1100_v11 = vadd.f32 %v1099_v63, %v1093_v1 }
  0x7a   : > { %v1080_v12 = vadd.f32 %v1079_v0, %v1057_v53 }
  0x7b   : > { %v1101_v3 = vadd.f32 %v1100_v11, %v1094_v54 }
  0x7c   : > { %v1081_v21 = vadd.f32 %v1080_v12, %v1058_v8 }
  0x7d   : > { %v1102_v22 = vadd.f32 %v1101_v3, %v1095_v10 }
  0x7e   : > { %v1082_v23 = vadd.f32 %v1081_v21, %v1059_v15 }
  0x7f   : > { %v1103_v25 = vadd.f32 %v1102_v22, %v1096_v20 }
  0x80   : > { %v1083_v13 = vadd.f32 %v1082_v23, %v1060_v9 }
  0x81   : > { %v1104_v14 = vadd.f32 %v1103_v25, %v1097_v7 }
  0x82   : > { %v1084_v27 = vrot.slane %v1083_v13, 4 }
  0x83   : > { %v1105_v32 = vadd.f32 %v1104_v14, %v1098_v24 }
  0x84   : > { %v1085_v30 = vadd.f32 %v1084_v27, %v1083_v13 }
  0x85   : > { %v1106_v61 = vrot.slane %v1105_v32, 4 }
  0x86   : > { %v1086_v33 = vrot.slane %v1085_v30, 2 }
  0x87   : > { %v1107_v34 = vadd.f32 %v1106_v61, %v1105_v32 }
  0x88   : > { %v1087_v35 = vadd.f32 %v1086_v33, %v1085_v30 }
  0x89   : > { %v1108_v36 = vrot.slane %v1107_v34, 2 }
  0x8a   : > { %v1088_v37 = vrot.slane %v1087_v35, 1 }
  0x8b   : > { %v1109_v62 = vadd.f32 %v1108_v36, %v1107_v34 }
  0x8c   : > { %v1089_v38 = vadd.f32 %v1088_v37, %v1087_v35 }
  0x8d   : > { %v1110_v4 = vrot.slane %v1109_v62, 1 }
  0x8e   : > { %1090 = vst [vmem:[%s295_s13] sm:$0x1] %v1089_v38 }
  0x8f   : > { %v1111_v39 = vadd.f32 %v1110_v4, %v1109_v62 }
  0x91   : > { %1112 = vst [vmem:[%s300_s16] sm:$0x1] %v1111_v39 }
  0x92 PF: > { %s17_s23 = sadd.s32 1, %s1344_s23   ;;  %s1742_s21 = smov %s1340_s22 }
  0x93   : > { %p14_p5 = scmp.ge.s32.totalorder %s17_s23, 4   ;;  %s1743_s22 = smov %s1745_s24 }
  0x95   :  { %16 = sbr.rel (!%p14_p5) target bundleno = 2 (0x2), region = 91 }

// kernel: mobilenet_forward.12
= control target key start
LH: loop header
LB: loop body
LE: loop exit
PB: predicated region body
PF: predicated region fallthrough
CT: control target
= control target key end

     0   :  { %s955_s21 = smov 0   ;;  %s957_s22 = smov 0   ;;  %s1203_s0 = inlined_call_operand.vmem [shape: bf16[2,5,5,512], index: 0, kind: input, shape index: {}]   ;;  %s1204_s1 = inlined_call_operand.vmem [shape: f32[1,128], index: 1, kind: input, shape index: {}]   ;;  %s1205_s2 = inlined_call_operand.vmem [shape: f32[1,128], index: 2, kind: input, shape index: {}]   ;;  %s1206_s3 = inlined_call_operand.vmem [shape: f32[9,128], index: 3, kind: input, shape index: {}]   ;;  %s1207_s4 = inlined_call_operand.vmem [shape: bf16[2,4,4,128], index: 4, kind: output, shape index: {0}]   ;;  %s1208_s5 = inlined_call_operand.vmem [shape: f32[2,1,128], index: 5, kind: output, shape index: {1}]   ;;  %s1209_s6 = inlined_call_operand.vmem [shape: f32[2,1,128], index: 6, kind: output, shape index: {2}]  }
   0x1   :  { %s959_s23 = smov 0  }
   0x2 LB: > { %s29_s24 = sadd.s32 1, %s914_s22  ;;  %p853_p0 = scmp.ge.s32.totalorder %s918_s23, 1  ;;  %s918_s23 = sphi %s959_s23, %s17_s23   ;;  %s914_s22 = sphi %s957_s22, %s1215_s22   ;;  %s910_s21 = sphi %s955_s21, %s1214_s21  }
   0x3   : > { %p31_p1 = scmp.ge.s32.totalorder %s29_s24, 2  ;;  %p235_p2 = scmp.lt.s32.totalorder %s918_s23, 3 }
   0x5   : > { %s1217_s24 = smov (%p31_p1, %s29_s24), 0  ;;  %p236_p3 = pnand %p853_p0, %p235_p2 }
   0x6   : > { %p277_p4 = scmp.lt.s32.totalorder (!%p236_p3), %s910_s21, 1 }
   0x7   : > { %239 = sbr.rel (%p236_p3) target bundleno = 87 (0x57), region = 36 }
   0xc   : > { %v339_v0 = vlaneseq  ;;  %s1219_s21 = smov (!%p277_p4, %s910_s21), 1  ;;  %v978_v2 = vld [vmem:[%s1206_s3] ss:$0 sm:$0xff]  ;;  %v983_v3 = vld [vmem:[%s1206_s3 + $0x1] ss:$0 sm:$0xff]  ;;  %vm677_vm6 = vcmask 1043456  }
   0xd   : > { %v988_v4 = vld [vmem:[%s1206_s3 + $0x2] ss:$0 sm:$0xff]  ;;  %s860_s7 = smul.u32 80, %s1219_s21  ;;  %v545_v6 = vmul.f32 0.0, %v978_v2  ;;  %v555_v7 = vmul.f32 0.0, %v983_v3  ;;  %s295_s13 = scalar_lea.vmem %s1208_s5, %s1219_s21 }
   0xe   : > { %v340_v1 = vshrl.u32 %v339_v0, 7  ;;  %v565_v8 = vmul.f32 0.0, %v988_v4  ;;  %v1002_v9 = vld [vmem:[%s1204_s1] ss:$0 sm:$0xff]  ;;  %v1036_v36 = vld [vmem:[%s1206_s3 + $0x3] ss:$0 sm:$0xff]  ;;  %s300_s16 = scalar_lea.vmem %s1209_s6, %s1219_s21 }
   0xf   : > { %s997_s10 = scalar_lea.vmem %s1203_s0, %s860_s7  ;;  %v1007_v10 = vld [vmem:[%s1205_s2] ss:$0 sm:$0xff]  ;;  %v559_v18 = vadd.f32 %v555_v7, %v545_v6  ;;  %v1042_v42 = vld [vmem:[%s1206_s3 + $0x4] ss:$0 sm:$0xff]  ;;  %v1047_v43 = vld [vmem:[%s1206_s3 + $0x5] ss:$0 sm:$0xff] }
  0x10   : > { %v351_v5 = vmul.u32 2, %v340_v1  ;;  %v307_v12 = vld [vmem:[%s997_s10 + $0x10] sm:$0x7]  ;;  %v395_v13 = vld [vmem:[%s997_s10 + $0x14] sm:$0x7]  ;;  %v573_v19 = vrot.slane %v565_v8, 1 }
  0x11   : > { %v312_v14 = vunpack.c.l.bf16 %v307_v12  ;;  %v400_v15 = vunpack.c.l.bf16 %v395_v13  ;;  %v447_v16 = vld [vmem:[%s997_s10 + $0x8] sm:$0x7]  ;;  %v503_v17 = vld [vmem:[%s997_s10 + $0xc] sm:$0x7]  ;;  %v308_v30 = vld [vmem:[%s997_s10 + $0x20] sm:$0x7] }
  0x12   : > { %v419_v11 = vadd.s32 1, %v351_v5  ;;  %vm367_vm0 = vcmp.ge.s32.totalorder %v351_v5, 1  ;;  %vm373_vm1 = vcmp.lt.s32.totalorder %v351_v5, 9  ;;  %v451_v20 = vunpack.c.l.bf16 %v447_v16  ;;  %v396_v31 = vld [vmem:[%s997_s10 + $0x24] sm:$0x7]  ;;  %s859_s7 = sshll.u32 %s1219_s21, 3 }
  0x13   : > { %v507_v21 = vunpack.c.l.bf16 %v503_v17  ;;  %v321_v22 = vmul.f32 %v1002_v9, %v312_v14  ;;  %v405_v23 = vmul.f32 %v1002_v9, %v400_v15  ;;  %vm1016_vm4 = vmand %vm367_vm0, %vm373_vm1  ;;  %v581_v29 = vadd.f32 %v573_v19, %v559_v18  ;;  %v448_v32 = vld [vmem:[%s997_s10 + $0x18] sm:$0x7]  ;;  %v504_v39 = vld [vmem:[%s997_s10 + $0x1c] sm:$0x7]  ;;  %s1119_s11 = scalar_lea.vmem %s1207_s4, %s859_s7 }
  0x14   : > { %vm420_vm2 = vcmp.ge.s32.totalorder %v419_v11, 1  ;;  %vm426_vm3 = vcmp.lt.s32.totalorder %v419_v11, 9  ;;  %v455_v25 = vmul.f32 %v1002_v9, %v451_v20  ;;  %v313_v37 = vunpack.c.l.bf16 %v308_v30  ;;  %v1066_v58 = vld [vmem:[%s1206_s3 + $0x6] ss:$0 sm:$0xff]  ;;  %v1075_v63 = vld [vmem:[%s1206_s3 + $0x8] ss:$0 sm:$0xff] }
  0x15   : > { %v511_v26 = vmul.f32 %v1002_v9, %v507_v21  ;;  %v330_v27 = vadd.f32 %v1007_v10, %v321_v22  ;;  %v410_v28 = vadd.f32 %v1007_v10, %v405_v23  ;;  %vm1027_vm5 = vmand %vm420_vm2, %vm426_vm3  ;;  %v401_v38 = vunpack.c.l.bf16 %v396_v31  ;;  %v1080_v1 = vld [vmem:[%s1206_s3 + $0x7] ss:$0 sm:$0xff]  ;;  %v309_v5 = vld [vmem:[%s997_s10 + $0x30] sm:$0x7] }
  0x16   : > { %v459_v34 = vadd.f32 %v1007_v10, %v455_v25  ;;  %v452_v44 = vunpack.c.l.bf16 %v448_v32  ;;  %v508_v45 = vunpack.c.l.bf16 %v504_v39  ;;  %v322_v48 = vmul.f32 %v1002_v9, %v313_v37  ;;  %v397_v16 = vld [vmem:[%s997_s10 + $0x34] sm:$0x7] }
  0x17   : > { %v515_v35 = vadd.f32 %v1007_v10, %v511_v26  ;;  %v335_v40 = vmax.f32 %v330_v27, 0.0  ;;  %v415_v41 = vmax.f32 %v410_v28, 0.0  ;;  %v406_v49 = vmul.f32 %v1002_v9, %v401_v38  ;;  %v449_v26 = vld [vmem:[%s997_s10 + $0x28] sm:$0x7] }
  0x18   : > { %v463_v46 = vmax.f32 %v459_v34, 0.0  ;;  %v456_v52 = vmul.f32 %v1002_v9, %v452_v44  ;;  %v512_v53 = vmul.f32 %v1002_v9, %v508_v45  ;;  %v331_v11 = vadd.f32 %v1007_v10, %v322_v48 }
  0x19   : > { %v519_v47 = vmax.f32 %v515_v35, 0.0  ;;  %v390_v50 = vsel %vm1016_vm4, %v335_v40, 0.0  ;;  %v443_v51 = vsel %vm1027_vm5, %v415_v41, 0.0  ;;  %v411_v13 = vadd.f32 %v1007_v10, %v406_v49 }
  0x1a   : > { %v499_v54 = vsel %vm1016_vm4, %v463_v46, 0.0  ;;  %v546_v56 = vmul.f32 %v978_v2, %v390_v50  ;;  %v556_v57 = vmul.f32 %v983_v3, %v443_v51  ;;  %v566_v59 = vmul.f32 %v988_v4, %v390_v50 }
  0x1b   : > { %v539_v55 = vsel %vm1027_vm5, %v519_v47, 0.0  ;;  %v587_v60 = vmul.f32 %v1036_v36, %v499_v54  ;;  %v607_v62 = vmul.f32 %v1047_v43, %v499_v54  ;;  %v629_v12 = vmul.f32 %v1066_v58, %v390_v50 }
  0x1c   : > { %v597_v61 = vmul.f32 %v1042_v42, %v539_v55  ;;  %v560_v0 = vadd.f32 %v556_v57, %v546_v56  ;;  %v574_v6 = vrot.slane %v566_v59, 1  ;;  %v460_v14 = vadd.f32 %v1007_v10, %v456_v52 }
  0x1d   : > { %v591_v7 = vadd.f32 %v587_v60, %v581_v29  ;;  %v615_v8 = vrot.slane %v607_v62, 1  ;;  %v516_v15 = vadd.f32 %v1007_v10, %v512_v53  ;;  %v649_v18 = vmul.f32 %v1075_v63, %v390_v50  ;;  %v505_v50 = vld [vmem:[%s997_s10 + $0x2c] sm:$0x7] }
  0x1e   : > { %v336_v19 = vmax.f32 %v331_v11, 0.0  ;;  %v314_v20 = vunpack.c.l.bf16 %v309_v5  ;;  %v639_v21 = vmul.f32 %v1080_v1, %v443_v51  ;;  %v416_v22 = vmax.f32 %v411_v13, 0.0 }
  0x1f   : > { %v601_v17 = vadd.f32 %v597_v61, %v591_v7  ;;  %v464_v23 = vmax.f32 %v460_v14, 0.0  ;;  %v520_v25 = vmax.f32 %v516_v15, 0.0  ;;  %v582_v27 = vadd.f32 %v574_v6, %v560_v0 }
  0x20   : > { %v391_v29 = vsel %vm1016_vm4, %v336_v19, 0.0  ;;  %v402_v30 = vunpack.c.l.bf16 %v397_v16  ;;  %v444_v31 = vsel %vm1027_vm5, %v416_v22, 0.0  ;;  %v323_v35 = vmul.f32 %v1002_v9, %v314_v20 }
  0x21   : > { %v623_v28 = vadd.f32 %v615_v8, %v601_v17  ;;  %v500_v32 = vsel %vm1016_vm4, %v464_v23, 0.0  ;;  %v540_v34 = vsel %vm1027_vm5, %v520_v25, 0.0  ;;  %v657_v38 = vrot.slane %v649_v18, 1  ;;  %v310_v17 = vld [vmem:[%s997_s10 + $0x40] sm:$0x7] }
  0x22   : > { %v588_v39 = vmul.f32 %v1036_v36, %v500_v32  ;;  %v453_v40 = vunpack.c.l.bf16 %v449_v26  ;;  %v547_v41 = vmul.f32 %v978_v2, %v391_v29  ;;  %v598_v44 = vmul.f32 %v1042_v42, %v540_v34  ;;  %v398_v25 = vld [vmem:[%s997_s10 + $0x44] sm:$0x7]  ;;  %v450_v26 = vld [vmem:[%s997_s10 + $0x38] sm:$0x7] }
  0x23   : > { %v633_v37 = vadd.f32 %v629_v12, %v623_v28  ;;  %v608_v45 = vmul.f32 %v1047_v43, %v500_v32  ;;  %v557_v47 = vmul.f32 %v983_v3, %v444_v31  ;;  %v567_v48 = vmul.f32 %v988_v4, %v391_v29 }
  0x24   : > { %v592_v49 = vadd.f32 %v588_v39, %v582_v27  ;;  %v630_v52 = vmul.f32 %v1066_v58, %v391_v29  ;;  %v332_v53 = vadd.f32 %v1007_v10, %v323_v35  ;;  %v407_v54 = vmul.f32 %v1002_v9, %v402_v30 }
  0x25   : > { %v643_v46 = vadd.f32 %v639_v21, %v633_v37  ;;  %v616_v51 = vrot.slane %v608_v45, 1  ;;  %v650_v57 = vmul.f32 %v1075_v63, %v391_v29  ;;  %v457_v59 = vmul.f32 %v1002_v9, %v453_v40  ;;  %v506_v40 = vld [vmem:[%s997_s10 + $0x3c] sm:$0x7] }
  0x26   : > { %v602_v56 = vadd.f32 %v598_v44, %v592_v49  ;;  %v640_v60 = vmul.f32 %v1080_v1, %v444_v31  ;;  %v337_v61 = vmax.f32 %v332_v53, 0.0  ;;  %v412_v62 = vadd.f32 %v1007_v10, %v407_v54 }
  0x27   : > { %v1112_v55 = vadd.f32 %v657_v38, %v643_v46  ;;  %v509_v0 = vunpack.c.l.bf16 %v505_v50  ;;  %v561_v6 = vadd.f32 %v557_v47, %v547_v41  ;;  %v575_v7 = vrot.slane %v567_v48, 1 }
  0x28   : > { %v624_v8 = vadd.f32 %v616_v51, %v602_v56  ;;  %v392_v11 = vsel %vm1016_vm4, %v337_v61, 0.0  ;;  %v417_v12 = vmax.f32 %v412_v62, 0.0  ;;  %v461_v13 = vadd.f32 %v1007_v10, %v457_v59 }
  0x29   : > { %v669_v5 = vpack.c.bf16 %v1112_v55, %v1112_v55  ;;  %v513_v14 = vmul.f32 %v1002_v9, %v509_v0  ;;  %v658_v16 = vrot.slane %v650_v57, 1  ;;  %v583_v21 = vadd.f32 %v575_v7, %v561_v6 }
  0x2a   : > { %v634_v15 = vadd.f32 %v630_v52, %v624_v8  ;;  %v445_v18 = vsel %vm1027_vm5, %v417_v12, 0.0  ;;  %v465_v19 = vmax.f32 %v461_v13, 0.0  ;;  %v548_v23 = vmul.f32 %v978_v2, %v392_v11 }
  0x2b   : > { %673 = vst [vmem:[%s1119_s11] sm:$0x3] %v669_v5  ;;  %v517_v20 = vadd.f32 %v1007_v10, %v513_v14  ;;  %v568_v29 = vmul.f32 %v988_v4, %v392_v11  ;;  %v315_v30 = vunpack.c.l.bf16 %v310_v17  ;;  %v558_v32 = vmul.f32 %v983_v3, %v445_v18 }
  0x2c   : > { %v644_v22 = vadd.f32 %v640_v60, %v634_v15  ;;  %v501_v27 = vsel %vm1016_vm4, %v465_v19, 0.0  ;;  %v403_v38 = vunpack.c.l.bf16 %v398_v25  ;;  %v454_v39 = vunpack.c.l.bf16 %v450_v26 }
  0x2d   : > { %v521_v28 = vmax.f32 %v517_v20, 0.0  ;;  %v589_v34 = vmul.f32 %v1036_v36, %v501_v27  ;;  %v609_v35 = vmul.f32 %v1047_v43, %v501_v27  ;;  %v324_v37 = vmul.f32 %v1002_v9, %v315_v30 }
  0x2e   : > { %v666_v31 = vadd.f32 %v658_v16, %v644_v22  ;;  %v631_v46 = vmul.f32 %v1066_v58, %v392_v11  ;;  %v408_v47 = vmul.f32 %v1002_v9, %v403_v38  ;;  %v458_v48 = vmul.f32 %v1002_v9, %v454_v39 }
  0x2f   : > { %v541_v2 = vsel %vm1027_vm5, %v521_v28, 0.0  ;;  %v593_v44 = vadd.f32 %v589_v34, %v583_v21  ;;  %v617_v45 = vrot.slane %v609_v35, 1  ;;  %v333_v3 = vadd.f32 %v1007_v10, %v324_v37 }
  0x30   : > { %v670_v41 = vpack.c.bf16 %v666_v31, %v666_v31  ;;  %v599_v4 = vmul.f32 %v1042_v42, %v541_v2  ;;  %v510_v49 = vunpack.c.l.bf16 %v506_v40  ;;  %v562_v50 = vadd.f32 %v558_v32, %v548_v23 }
  0x31   : > { %v576_v51 = vrot.slane %v568_v29, 1  ;;  %v651_v53 = vmul.f32 %v1075_v63, %v392_v11  ;;  %v413_v54 = vadd.f32 %v1007_v10, %v408_v47  ;;  %v462_v56 = vadd.f32 %v1007_v10, %v458_v48 }
  0x32   : > { %674 = vst [vmem:[%s1119_s11 + $0x2] sm:$0x3] %v670_v41  ;;  %v603_v52 = vadd.f32 %v599_v4, %v593_v44  ;;  %v514_v57 = vmul.f32 %v1002_v9, %v510_v49  ;;  %v641_v60 = vmul.f32 %v1080_v1, %v445_v18  ;;  %v338_v61 = vmax.f32 %v333_v3, 0.0 }
  0x33   : > { %v466_v62 = vmax.f32 %v462_v56, 0.0  ;;  %v584_v5 = vadd.f32 %v576_v51, %v562_v50  ;;  %v659_v7 = vrot.slane %v651_v53, 1  ;;  %v418_v8 = vmax.f32 %v413_v54, 0.0 }
  0x34   : > { %v625_v59 = vadd.f32 %v617_v45, %v603_v52  ;;  %v518_v0 = vadd.f32 %v1007_v10, %v514_v57  ;;  %v692_v15 = vmul.f32 %v1112_v55, %v1112_v55  ;;  %v693_v16 = vmul.f32 %v666_v31, %v666_v31 }
  0x35   : > { %v502_v11 = vsel %vm1016_vm4, %v466_v62, 0.0  ;;  %v393_v10 = vsel %vm1016_vm4, %v338_v61, 0.0  ;;  %v446_v22 = vsel %vm1027_vm5, %v418_v8, 0.0 }
  0x36   : > { %v635_v6 = vadd.f32 %v631_v46, %v625_v59  ;;  %v522_v12 = vmax.f32 %v518_v0, 0.0  ;;  %v590_v14 = vmul.f32 %v1036_v36, %v502_v11  ;;  %v610_v9 = vmul.f32 %v1047_v43, %v502_v11 }
  0x37   : > { %v678_v36 = vsel %vm677_vm6, %v1112_v55, 0.0  ;;  %v679_v43 = vsel %vm677_vm6, %v666_v31, 0.0  ;;  %v632_v24 = vmul.f32 %v1066_v58, %v393_v10  ;;  %v652_v26 = vmul.f32 %v1075_v63, %v393_v10 }
  0x38   : > { %v645_v13 = vadd.f32 %v641_v60, %v635_v6  ;;  %v542_v17 = vsel %vm1027_vm5, %v522_v12, 0.0  ;;  %v594_v19 = vadd.f32 %v590_v14, %v584_v5  ;;  %v618_v21 = vrot.slane %v610_v9, 1 }
  0x39   : > { %v600_v20 = vmul.f32 %v1042_v42, %v542_v17  ;;  %v696_v27 = vsel %vm677_vm6, %v692_v15, 0.0  ;;  %v642_v29 = vmul.f32 %v1080_v1, %v446_v22  ;;  %v697_v55 = vsel %vm677_vm6, %v693_v16, 0.0 }
  0x3a   : > { %v667_v18 = vadd.f32 %v659_v7, %v645_v13  ;;  %v680_v30 = vadd.f32 %v679_v43, %v678_v36  ;;  %v660_v33 = vrot.slane %v652_v26, 1  ;;  %v698_v34 = vadd.f32 %v697_v55, %v696_v27 }
  0x3b   : > { %v604_v25 = vadd.f32 %v600_v20, %v594_v19 }
  0x3c   : > { %v671_v23 = vpack.c.bf16 %v667_v18, %v667_v18  ;;  %v694_v28 = vmul.f32 %v667_v18, %v667_v18  ;;  %v681_v32 = vsel %vm677_vm6, %v667_v18, 0.0 }
  0x3d   : > { %v626_v42 = vadd.f32 %v618_v21, %v604_v25  ;;  %v682_v63 = vadd.f32 %v681_v32, %v680_v30 }
  0x3e   : > { %675 = vst [vmem:[%s1119_s11 + $0x4] sm:$0x3] %v671_v23  ;;  %v699_v58 = vsel %vm677_vm6, %v694_v28, 0.0 }
  0x3f   : > { %v636_v31 = vadd.f32 %v632_v24, %v626_v42  ;;  %v700_v37 = vadd.f32 %v699_v58, %v698_v34 }
  0x41   : > { %v646_v35 = vadd.f32 %v642_v29, %v636_v31 }
  0x43   : > { %v668_v2 = vadd.f32 %v660_v33, %v646_v35 }
  0x45   : > { %v672_v38 = vpack.c.bf16 %v668_v2, %v668_v2  ;;  %v683_v39 = vsel %vm677_vm6, %v668_v2, 0.0  ;;  %v695_v1 = vmul.f32 %v668_v2, %v668_v2 }
  0x46   : > { %v684_v40 = vadd.f32 %v683_v39, %v682_v63 }
  0x47   : > { %676 = vst [vmem:[%s1119_s11 + $0x6] sm:$0x3] %v672_v38  ;;  %v701_v41 = vsel %vm677_vm6, %v695_v1, 0.0 }
  0x48   : > { %v685_v44 = vrot.slane %v684_v40, 4  ;;  %v702_v4 = vadd.f32 %v701_v41, %v700_v37 }
  0x4a   : > { %v686_v45 = vadd.f32 %v685_v44, %v684_v40  ;;  %v703_v46 = vrot.slane %v702_v4, 4 }
  0x4c   : > { %v687_v3 = vrot.slane %v686_v45, 2  ;;  %v704_v47 = vadd.f32 %v703_v46, %v702_v4 }
  0x4e   : > { %v688_v48 = vadd.f32 %v687_v3, %v686_v45  ;;  %v705_v49 = vrot.slane %v704_v47, 2 }
  0x50   : > { %v689_v50 = vrot.slane %v688_v48, 1  ;;  %v706_v51 = vadd.f32 %v705_v49, %v704_v47 }
  0x52   : > { %v690_v52 = vadd.f32 %v689_v50, %v688_v48  ;;  %v707_v53 = vrot.slane %v706_v51, 1 }
  0x54   : > { %691 = vst [vmem:[%s295_s13] sm:$0x1] %v690_v52  ;;  %v708_v54 = vadd.f32 %v707_v53, %v706_v51 }
  0x56   : > { %709 = vst [vmem:[%s300_s16] sm:$0x1] %v708_v54 }
  0x57 PF: > { %s17_s23 = sadd.s32 1, %s918_s23   ;;  %s1214_s21 = smov %s914_s22 }
  0x58   : > { %p14_p5 = scmp.ge.s32.totalorder %s17_s23, 4   ;;  %s1215_s22 = smov %s1217_s24 }
  0x5a   :  { %16 = sbr.rel (!%p14_p5) target bundleno = 2 (0x2), region = 91 }

// kernel: mobilenet_forward.13
= control target key start
LH: loop header
LB: loop body
LE: loop exit
PB: predicated region body
PF: predicated region fallthrough
CT: control target
= control target key end

     0   :  { %s330_s3 = inlined_call_operand.vmem [shape: bf16[128,128], index: 3, kind: input, shape index: {}]   ;;  %s331_s1 = inlined_call_operand.vmem [shape: f32[1,128], index: 1, kind: input, shape index: {}]   ;;  %s332_s2 = inlined_call_operand.vmem [shape: f32[1,128], index: 2, kind: input, shape index: {}]   ;;  %s333_s0 = inlined_call_operand.vmem [shape: bf16[32,128], index: 0, kind: input, shape index: {}]   ;;  %s334_s4 = inlined_call_operand.vmem [shape: bf16[32,128], index: 4, kind: output, shape index: {0}]   ;;  %s335_s5 = inlined_call_operand.vmem [shape: f32[1,1,128], index: 5, kind: output, shape index: {1}]   ;;  %s336_s6 = inlined_call_operand.vmem [shape: f32[1,1,128], index: 6, kind: output, shape index: {2}]  }
   0x1   :  { %v216_v0 = vld [vmem:[%s330_s3 + $0x38] sm:$0xff]  ;;  %v215_v1 = vld [vmem:[%s330_s3 + $0x30] sm:$0xff]  ;;  %v214_v2 = vld [vmem:[%s330_s3 + $0x28] sm:$0xff] }
   0x2   :  { %114 = vmatpush.bf16.msra.mxu0 %v216_v0  ;;  %237 = vmatpush.bf16.msra.mxu1 %v216_v0  ;;  %v213_v3 = vld [vmem:[%s330_s3 + $0x20] sm:$0xff]  ;;  %v235_v5 = vld [vmem:[%s333_s0 + $0x8] sm:$0xff]   ;;  %v212_v11 = vld [vmem:[%s330_s3 + $0x18] sm:$0xff] }
   0x3   :  { %v218_v4 = vld [vmem:[%s333_s0] sm:$0xff]   ;;  %v223_v9 = vunpack.c.l.bf16 %v235_v5  ;;  %v224_v10 = vunpack.c.h.bf16 %v235_v5  ;;  %v211_v17 = vld [vmem:[%s330_s3 + $0x10] sm:$0xff]  ;;  %v210_v22 = vld [vmem:[%s330_s3 + $0x8] sm:$0xff] }
   0x4   :  { %v219_v6 = vunpack.c.l.bf16 %v218_v4  ;;  %v220_v7 = vunpack.c.h.bf16 %v218_v4  ;;  %v245_v8 = vld [vmem:[%s331_s1] ss:$0 sm:$0xff] }
   0x5   :  { %v246_v14 = vld [vmem:[%s332_s2] ss:$0 sm:$0xff]  ;;  %v34_v15 = vmul.f32 %v245_v8, %v223_v9  ;;  %v35_v16 = vmul.f32 %v245_v8, %v224_v10 }
   0x6   :  { %115 = vmatpush.bf16.msra.mxu0 %v215_v1  ;;  %238 = vmatpush.bf16.msra.mxu1 %v215_v1  ;;  %v32_v12 = vmul.f32 %v245_v8, %v219_v6  ;;  %v33_v13 = vmul.f32 %v245_v8, %v220_v7  ;;  %v209_v27 = vld [vmem:[%s330_s3] sm:$0xff] }
   0x7   :  { %v42_v20 = vadd.f32 %v246_v14, %v34_v15  ;;  %v43_v21 = vadd.f32 %v246_v14, %v35_v16 }
   0x8   :  { %v40_v18 = vadd.f32 %v246_v14, %v32_v12  ;;  %v41_v19 = vadd.f32 %v246_v14, %v33_v13 }
   0x9   :  { %v46_v25 = vmax.f32 %v42_v20, 0.0  ;;  %v47_v26 = vmax.f32 %v43_v21, 0.0 }
   0xa   :  { %116 = vmatpush.bf16.msra.mxu0 %v214_v2  ;;  %239 = vmatpush.bf16.msra.mxu1 %v214_v2  ;;  %v44_v23 = vmax.f32 %v40_v18, 0.0  ;;  %v45_v24 = vmax.f32 %v41_v19, 0.0 }
   0xb   :  { %v49_v29 = vpack.c.bf16 %v47_v26, %v46_v25 }
   0xc   :  { %v48_v28 = vpack.c.bf16 %v45_v24, %v44_v23 }
   0xe   :  { %117 = vmatpush.bf16.msra.mxu0 %v213_v3  ;;  %240 = vmatpush.bf16.msra.mxu1 %v213_v3 }
  0x12   :  { %118 = vmatpush.bf16.msra.mxu0 %v212_v11  ;;  %241 = vmatpush.bf16.msra.mxu1 %v212_v11 }
  0x16   :  { %119 = vmatpush.bf16.msra.mxu0 %v211_v17  ;;  %242 = vmatpush.bf16.msra.mxu1 %v211_v17 }
  0x1a   :  { %120 = vmatpush.bf16.msra.mxu0 %v210_v22  ;;  %243 = vmatpush.bf16.msra.mxu1 %v210_v22 }
  0x1e   :  { %121 = vmatpush.bf16.msra.mxu0 %v209_v27  ;;  %244 = vmatpush.bf16.msra.mxu1 %v209_v27 }
  0x21   :  { %122 = vmatmul.bf16.vlgmr.msra.gmra.mxu0 %v48_v28  ;;  %127 = vmatmul.bf16.vlgmr.msra.gmra.mxu1 %v49_v29 }
  0x9e   :  { %v123_v30 = vpop.f32.mrf.mxu0  ;;  %v128_v31 = vpop.f32.mrf.mxu1 }
  0x9f   :  { %v151_v32 = vmul.f32 %v123_v30, %v123_v30  ;;  %v153_v39 = vmul.f32 %v128_v31, %v128_v31 }
  0xa6   :  { %v125_v33 = vpop.f32.mrf.mxu0  ;;  %v130_v34 = vpop.f32.mrf.mxu1 }
  0xa7   :  { %v228_v35 = vpack.c.bf16 %v125_v33, %v123_v30  ;;  %v141_v36 = vadd.f32 %v125_v33, %v123_v30  ;;  %v152_v37 = vmul.f32 %v125_v33, %v125_v33  ;;  %v233_v38 = vpack.c.bf16 %v130_v34, %v128_v31 }
  0xa8   :  { %v154_v43 = vmul.f32 %v130_v34, %v130_v34 }
  0xa9   :  { %229 = vst [vmem:[%s334_s4] sm:$0xff] %v228_v35   ;;  %v155_v40 = vadd.f32 %v152_v37, %v151_v32  ;;  %v142_v41 = vadd.f32 %v141_v36, %v128_v31 }
  0xaa   :  { %236 = vst [vmem:[%s334_s4 + $0x8] sm:$0xff] %v233_v38  }
  0xab   :  { %v143_v42 = vadd.f32 %v142_v41, %v130_v34  ;;  %v156_v44 = vadd.f32 %v155_v40, %v153_v39 }
  0xad   :  { %v144_v45 = vrot.slane %v143_v42, 4  ;;  %v157_v46 = vadd.f32 %v156_v44, %v154_v43 }
  0xaf   :  { %v145_v47 = vadd.f32 %v144_v45, %v143_v42  ;;  %v158_v48 = vrot.slane %v157_v46, 4 }
  0xb1   :  { %v146_v49 = vrot.slane %v145_v47, 2  ;;  %v159_v50 = vadd.f32 %v158_v48, %v157_v46 }
  0xb3   :  { %v147_v51 = vadd.f32 %v146_v49, %v145_v47  ;;  %v160_v52 = vrot.slane %v159_v50, 2 }
  0xb5   :  { %v148_v53 = vrot.slane %v147_v51, 1  ;;  %v161_v54 = vadd.f32 %v160_v52, %v159_v50 }
  0xb7   :  { %v149_v55 = vadd.f32 %v148_v53, %v147_v51  ;;  %v162_v56 = vrot.slane %v161_v54, 1 }
  0xb9   :  { %150 = vst [vmem:[%s335_s5] sm:$0x1] %v149_v55  ;;  %v163_v57 = vadd.f32 %v162_v56, %v161_v54 }
  0xbb   :  { %164 = vst [vmem:[%s336_s6] sm:$0x1] %v163_v57 }

// kernel: mobilenet_forward.16
= control target key start
LH: loop header
LB: loop body
LE: loop exit
PB: predicated region body
PF: predicated region fallthrough
CT: control target
= control target key end

     0   :  { %vm62_vm0 = vcmask 1043456   ;;  %v113_v18 = vmov 16.0   ;;  %vm100_vm2 = vcmask 1041409   ;;  %s175_s0 = inlined_call_operand.vmem [shape: bf16[2,4,4,128], index: 0, kind: input, shape index: {}]   ;;  %s176_s1 = inlined_call_operand.vmem [shape: f32[1,1,1,128], index: 1, kind: input, shape index: {}]   ;;  %s177_s2 = inlined_call_operand.vmem [shape: f32[1,1,1,128], index: 2, kind: input, shape index: {}]   ;;  %s178_s3 = inlined_call_operand.vmem [shape: f32[2,128], index: 3, kind: output, shape index: {}]  }
   0x1   :  { %v14_v0 = vld [vmem:[%s175_s0] sm:$0x3]  ;;  %v15_v1 = vld [vmem:[%s175_s0 + $0x2] sm:$0x3]  ;;  %v16_v2 = vld [vmem:[%s175_s0 + $0x4] sm:$0x3]  ;;  %111 = vrcp.f32 %v113_v18 }
   0x2   :  { %v17_v3 = vld [vmem:[%s175_s0 + $0x6] sm:$0x3]  ;;  %v18_v4 = vld [vmem:[%s175_s0 + $0x8] sm:$0x3]  ;;  %v19_v5 = vld [vmem:[%s175_s0 + $0xa] sm:$0x3]  ;;  %v22_v6 = vunpack.c.l.bf16 %v14_v0  ;;  %v23_v7 = vunpack.c.l.bf16 %v15_v1  ;;  %v24_v8 = vunpack.c.l.bf16 %v16_v2 }
   0x3   :  { %v20_v9 = vld [vmem:[%s175_s0 + $0xc] sm:$0x3]  ;;  %v21_v10 = vld [vmem:[%s175_s0 + $0xe] sm:$0x3]  ;;  %v25_v11 = vunpack.c.l.bf16 %v17_v3  ;;  %v26_v12 = vunpack.c.l.bf16 %v18_v4  ;;  %v27_v13 = vunpack.c.l.bf16 %v19_v5  ;;  %v109_v16 = vld [vmem:[%s176_s1] ss:$0 sm:$0xff] }
   0x4   :  { %v28_v14 = vunpack.c.l.bf16 %v20_v9  ;;  %v29_v15 = vunpack.c.l.bf16 %v21_v10  ;;  %v110_v17 = vld [vmem:[%s177_s2] ss:$0 sm:$0xff]  ;;  %v34_v19 = vmul.f32 %v109_v16, %v22_v6  ;;  %v35_v20 = vmul.f32 %v109_v16, %v23_v7 }
   0x5   :  { %v36_v21 = vmul.f32 %v109_v16, %v24_v8  ;;  %v37_v22 = vmul.f32 %v109_v16, %v25_v11  ;;  %v38_v23 = vmul.f32 %v109_v16, %v26_v12  ;;  %v39_v24 = vmul.f32 %v109_v16, %v27_v13 }
   0x6   :  { %v40_v25 = vmul.f32 %v109_v16, %v28_v14  ;;  %v41_v26 = vmul.f32 %v109_v16, %v29_v15  ;;  %v46_v27 = vadd.f32 %v110_v17, %v34_v19  ;;  %v47_v28 = vadd.f32 %v110_v17, %v35_v20 }
   0x7   :  { %v48_v29 = vadd.f32 %v110_v17, %v36_v21  ;;  %v49_v30 = vadd.f32 %v110_v17, %v37_v22  ;;  %v50_v31 = vadd.f32 %v110_v17, %v38_v23  ;;  %v51_v32 = vadd.f32 %v110_v17, %v39_v24  ;;  %v112_v39 = vpop.eup %111 }
   0x8   :  { %v52_v33 = vadd.f32 %v110_v17, %v40_v25  ;;  %v53_v34 = vadd.f32 %v110_v17, %v41_v26  ;;  %v54_v35 = vmax.f32 %v46_v27, 0.0  ;;  %v55_v36 = vmax.f32 %v47_v28, 0.0 }
   0x9   :  { %v56_v37 = vmax.f32 %v48_v29, 0.0  ;;  %v57_v38 = vmax.f32 %v49_v30, 0.0  ;;  %v58_v40 = vmax.f32 %v50_v31, 0.0  ;;  %v59_v41 = vmax.f32 %v51_v32, 0.0 }
   0xa   :  { %v60_v42 = vmax.f32 %v52_v33, 0.0  ;;  %v61_v43 = vmax.f32 %v53_v34, 0.0  ;;  %v63_v44 = vsel %vm62_vm0, %v54_v35, 0.0  ;;  %v64_v45 = vsel %vm62_vm0, %v55_v36, 0.0 }
   0xb   :  { %v66_v46 = vsel %vm62_vm0, %v56_v37, 0.0  ;;  %v65_v47 = vadd.f32 %v64_v45, %v63_v44  ;;  %v76_v48 = vsel %vm62_vm0, %v58_v40, 0.0  ;;  %v77_v49 = vsel %vm62_vm0, %v59_v41, 0.0 }
   0xc   :  { %v79_v50 = vsel %vm62_vm0, %v60_v42, 0.0  ;;  %v68_v51 = vsel %vm62_vm0, %v57_v38, 0.0  ;;  %v78_v52 = vadd.f32 %v77_v49, %v76_v48  ;;  %v90_v53 = vmul.f32 16.0, %v112_v39 }
   0xd   :  { %v67_v54 = vadd.f32 %v66_v46, %v65_v47  ;;  %v81_v55 = vsel %vm62_vm0, %v61_v43, 0.0  ;;  %vm94_vm1 = vweird.f32 %v112_v39 }
   0xe   :  { %v80_v56 = vadd.f32 %v79_v50, %v78_v52  ;;  %v91_v57 = vsub.f32 1.0, %v90_v53 }
   0xf   :  { %v69_v58 = vadd.f32 %v68_v51, %v67_v54 }
  0x10   :  { %v82_v59 = vadd.f32 %v81_v55, %v80_v56  ;;  %v92_v62 = vmul.f32 %v112_v39, %v91_v57 }
  0x11   :  { %v70_v60 = vrot.slane %v69_v58, 4 }
  0x12   :  { %v83_v61 = vrot.slane %v82_v59, 4  ;;  %v93_v3 = vadd.f32 %v112_v39, %v92_v62 }
  0x13   :  { %v71_v63 = vadd.f32 %v70_v60, %v69_v58 }
  0x14   :  { %v84_v0 = vadd.f32 %v83_v61, %v82_v59  ;;  %v95_v8 = vsel %vm94_vm1, %v112_v39, %v93_v3 }
  0x15   :  { %v72_v1 = vrot.slane %v71_v63, 2 }
  0x16   :  { %v85_v2 = vrot.slane %v84_v0, 2 }
  0x17   :  { %v73_v4 = vadd.f32 %v72_v1, %v71_v63 }
  0x18   :  { %v86_v5 = vadd.f32 %v85_v2, %v84_v0 }
  0x19   :  { %v74_v6 = vrot.slane %v73_v4, 1 }
  0x1a   :  { %v87_v7 = vrot.slane %v86_v5, 1 }
  0x1b   :  { %v75_v9 = vadd.f32 %v74_v6, %v73_v4 }
  0x1c   :  { %v88_v10 = vadd.f32 %v87_v7, %v86_v5 }
  0x1d   :  { %v96_v11 = vmul.f32 %v95_v8, %v75_v9 }
  0x1e   :  { %v97_v12 = vmul.f32 %v95_v8, %v88_v10 }
  0x20   :  { %v101_v13 = vsel %vm100_vm2, %v97_v12, %v96_v11 }
  0x21   :  { %103 = vst [vmem:[%s178_s3] sm:$0x3] %v101_v13 }

// kernel: mobilenet_forward.14
= control target key start
LH: loop header
LB: loop body
LE: loop exit
PB: predicated region body
PF: predicated region fallthrough
CT: control target
= control target key end

     0   :  { %s849_s21 = smov 0   ;;  %s851_s22 = smov 0   ;;  %s1007_s0 = inlined_call_operand.vmem [shape: bf16[2,6,6,128], index: 0, kind: input, shape index: {}]   ;;  %s1008_s1 = inlined_call_operand.vmem [shape: f32[1,128], index: 1, kind: input, shape index: {}]   ;;  %s1009_s2 = inlined_call_operand.vmem [shape: f32[1,128], index: 2, kind: input, shape index: {}]   ;;  %s1010_s3 = inlined_call_operand.vmem [shape: f32[9,128], index: 3, kind: input, shape index: {}]   ;;  %s1011_s4 = inlined_call_operand.vmem [shape: bf16[2,4,4,128], index: 4, kind: output, shape index: {0}]   ;;  %s1012_s5 = inlined_call_operand.vmem [shape: f32[2,1,128], index: 5, kind: output, shape index: {1}]   ;;  %s1013_s6 = inlined_call_operand.vmem [shape: f32[2,1,128], index: 6, kind: output, shape index: {2}]  }
   0x1   :  { %s853_s23 = smov 0  }
   0x2 LB: > { %s29_s24 = sadd.s32 1, %s808_s22  ;;  %p747_p0 = scmp.ge.s32.totalorder %s812_s23, 1  ;;  %s812_s23 = sphi %s853_s23, %s17_s23   ;;  %s808_s22 = sphi %s851_s22, %s1017_s22   ;;  %s804_s21 = sphi %s849_s21, %s1016_s21  }
   0x3   : > { %p31_p1 = scmp.ge.s32.totalorder %s29_s24, 2  ;;  %p235_p2 = scmp.lt.s32.totalorder %s812_s23, 3 }
   0x5   : > { %s1019_s24 = smov (%p31_p1, %s29_s24), 0  ;;  %p236_p3 = pnand %p747_p0, %p235_p2 }
   0x6   : > { %p277_p4 = scmp.lt.s32.totalorder (!%p236_p3), %s804_s21, 1 }
   0x7   : > { %239 = sbr.rel (%p236_p3) target bundleno = 74 (0x4a), region = 36 }
   0xc   : > { %v343_v0 = vlaneseq  ;;  %s1021_s21 = smov (!%p277_p4, %s804_s21), 1  ;;  %v872_v1 = vld [vmem:[%s1010_s3] ss:$0 sm:$0xff]  ;;  %v877_v2 = vld [vmem:[%s1010_s3 + $0x1] ss:$0 sm:$0xff]  ;;  %vm571_vm3 = vcmask 1043456  }
   0xd   : > { %v882_v3 = vld [vmem:[%s1010_s3 + $0x2] ss:$0 sm:$0xff]  ;;  %s754_s7 = smul.u32 24, %s1021_s21  ;;  %v779_v4 = vld [vmem:[%s1008_s1] ss:$0 sm:$0xff]  ;;  %v413_v6 = vmul.f32 0.0, %v877_v2  ;;  %s295_s13 = scalar_lea.vmem %s1012_s5, %s1021_s21 }
   0xe   : > { %v344_v5 = vshrl.u32 %v343_v0, 7  ;;  %v403_v7 = vmul.f32 0.0, %v872_v1  ;;  %v435_v8 = vmul.f32 0.0, %v882_v3  ;;  %v780_v15 = vld [vmem:[%s1009_s2] ss:$0 sm:$0xff]  ;;  %s300_s16 = scalar_lea.vmem %s1013_s6, %s1021_s21 }
   0xf   : > { %s281_s12 = scalar_lea.vmem %s1007_s0, %s754_s7  ;;  %v421_v16 = vrot.slane %v413_v6, 1  ;;  %v904_v27 = vld [vmem:[%s1010_s3 + $0x3] ss:$0 sm:$0xff]  ;;  %v909_v28 = vld [vmem:[%s1010_s3 + $0x4] ss:$0 sm:$0xff]  ;;  %s753_s7 = sshll.u32 %s1021_s21, 3 }
  0x10   : > { %v306_v9 = vld [vmem:[%s281_s12 + $0x4] sm:$0x7]  ;;  %v307_v10 = vld [vmem:[%s281_s12 + $0x8] sm:$0x7]  ;;  %v308_v11 = vld [vmem:[%s281_s12 + $0xc] sm:$0x7]  ;;  %s964_s10 = scalar_lea.vmem %s1011_s4, %s753_s7 }
  0x11   : > { %v312_v12 = vunpack.c.l.bf16 %v306_v9  ;;  %v313_v13 = vunpack.c.l.bf16 %v307_v10  ;;  %v314_v14 = vunpack.c.l.bf16 %v308_v11  ;;  %vm369_vm0 = vcmp.ge.s32.totalorder %v344_v5, 1  ;;  %v309_v22 = vld [vmem:[%s281_s12 + $0x10] sm:$0x7]  ;;  %v914_v29 = vld [vmem:[%s1010_s3 + $0x5] ss:$0 sm:$0xff] }
  0x12   : > { %vm376_vm1 = vcmp.lt.s32.totalorder %v344_v5, 5  ;;  %v429_v20 = vadd.f32 %v421_v16, %v403_v7  ;;  %v443_v21 = vrot.slane %v435_v8, 2  ;;  %v315_v30 = vunpack.c.l.bf16 %v309_v22  ;;  %v919_v33 = vld [vmem:[%s1010_s3 + $0x7] ss:$0 sm:$0xff]  ;;  %v924_v34 = vld [vmem:[%s1010_s3 + $0x8] ss:$0 sm:$0xff] }
  0x13   : > { %v322_v17 = vmul.f32 %v779_v4, %v312_v12  ;;  %v323_v18 = vmul.f32 %v779_v4, %v313_v13  ;;  %v324_v19 = vmul.f32 %v779_v4, %v314_v14  ;;  %vm897_vm2 = vmand %vm369_vm0, %vm376_vm1  ;;  %v936_v43 = vld [vmem:[%s1010_s3 + $0x6] ss:$0 sm:$0xff] }
  0x14   : > { %v451_v35 = vadd.f32 %v443_v21, %v429_v20  ;;  %v325_v38 = vmul.f32 %v779_v4, %v315_v30 }
  0x15   : > { %v332_v23 = vadd.f32 %v780_v15, %v322_v17  ;;  %v333_v24 = vadd.f32 %v780_v15, %v323_v18  ;;  %v334_v25 = vadd.f32 %v780_v15, %v324_v19 }
  0x16   : > { %v335_v0 = vadd.f32 %v780_v15, %v325_v38 }
  0x17   : > { %v338_v31 = vmax.f32 %v332_v23, 0.0  ;;  %v339_v32 = vmax.f32 %v333_v24, 0.0  ;;  %v340_v36 = vmax.f32 %v334_v25, 0.0 }
  0x18   : > { %v341_v9 = vmax.f32 %v335_v0, 0.0 }
  0x19   : > { %v396_v37 = vsel %vm897_vm2, %v338_v31, 0.0  ;;  %v397_v39 = vsel %vm897_vm2, %v339_v32, 0.0  ;;  %v398_v57 = vsel %vm897_vm2, %v340_v36, 0.0 }
  0x1a   : > { %v457_v40 = vmul.f32 %v904_v27, %v396_v37  ;;  %v467_v41 = vmul.f32 %v909_v28, %v396_v37  ;;  %v489_v42 = vmul.f32 %v914_v29, %v396_v37  ;;  %v521_v44 = vmul.f32 %v919_v33, %v397_v39 }
  0x1b   : > { %v543_v45 = vmul.f32 %v924_v34, %v397_v39  ;;  %v404_v46 = vmul.f32 %v872_v1, %v396_v37  ;;  %v414_v47 = vmul.f32 %v877_v2, %v396_v37  ;;  %v436_v51 = vmul.f32 %v882_v3, %v396_v37 }
  0x1c   : > { %v461_v48 = vadd.f32 %v457_v40, %v451_v35  ;;  %v475_v49 = vrot.slane %v467_v41, 1  ;;  %v497_v50 = vrot.slane %v489_v42, 2  ;;  %v511_v54 = vmul.f32 %v936_v43, %v397_v39 }
  0x1d   : > { %v422_v52 = vrot.slane %v414_v47, 1  ;;  %v444_v55 = vrot.slane %v436_v51, 2  ;;  %v468_v56 = vmul.f32 %v909_v28, %v397_v39  ;;  %v458_v59 = vmul.f32 %v904_v27, %v397_v39 }
  0x1e   : > { %v483_v53 = vadd.f32 %v475_v49, %v461_v48  ;;  %v490_v60 = vmul.f32 %v914_v29, %v397_v39  ;;  %v529_v62 = vrot.slane %v521_v44, 1  ;;  %v551_v63 = vrot.slane %v543_v45, 2 }
  0x1f   : > { %v430_v58 = vadd.f32 %v422_v52, %v404_v46  ;;  %v476_v5 = vrot.slane %v468_v56, 1  ;;  %v522_v6 = vmul.f32 %v919_v33, %v398_v57  ;;  %v405_v7 = vmul.f32 %v872_v1, %v397_v39 }
  0x20   : > { %v505_v61 = vadd.f32 %v497_v50, %v483_v53  ;;  %v415_v10 = vmul.f32 %v877_v2, %v397_v39  ;;  %v437_v11 = vmul.f32 %v882_v3, %v397_v39  ;;  %v498_v13 = vrot.slane %v490_v60, 2 }
  0x21   : > { %v452_v4 = vadd.f32 %v444_v55, %v430_v58  ;;  %v512_v14 = vmul.f32 %v936_v43, %v398_v57  ;;  %v469_v18 = vmul.f32 %v909_v28, %v398_v57  ;;  %v530_v20 = vrot.slane %v522_v6, 1 }
  0x22   : > { %v515_v8 = vadd.f32 %v511_v54, %v505_v61  ;;  %v423_v17 = vrot.slane %v415_v10, 1  ;;  %v445_v15 = vrot.slane %v437_v11, 2  ;;  %v544_v21 = vmul.f32 %v924_v34, %v398_v57 }
  0x23   : > { %v462_v12 = vadd.f32 %v458_v59, %v452_v4  ;;  %v491_v22 = vmul.f32 %v914_v29, %v398_v57  ;;  %v399_v24 = vsel %vm897_vm2, %v341_v9, 0.0  ;;  %v459_v30 = vmul.f32 %v904_v27, %v398_v57 }
  0x24   : > { %v537_v16 = vadd.f32 %v529_v62, %v515_v8  ;;  %v431_v25 = vadd.f32 %v423_v17, %v405_v7  ;;  %v406_v32 = vmul.f32 %v872_v1, %v398_v57  ;;  %v416_v35 = vmul.f32 %v877_v2, %v398_v57 }
  0x25   : > { %v484_v19 = vadd.f32 %v476_v5, %v462_v12  ;;  %v438_v36 = vmul.f32 %v882_v3, %v398_v57  ;;  %v477_v26 = vrot.slane %v469_v18, 1  ;;  %v552_v40 = vrot.slane %v544_v21, 2 }
  0x26   : > { %v559_v23 = vadd.f32 %v551_v63, %v537_v16  ;;  %v453_v38 = vadd.f32 %v445_v15, %v431_v25  ;;  %v499_v41 = vrot.slane %v491_v22, 2  ;;  %v424_v42 = vrot.slane %v416_v35, 1 }
  0x27   : > { %v506_v31 = vadd.f32 %v498_v13, %v484_v19  ;;  %v523_v45 = vmul.f32 %v919_v33, %v399_v24  ;;  %v446_v46 = vrot.slane %v438_v36, 2  ;;  %v470_v47 = vmul.f32 %v909_v28, %v399_v24 }
  0x28   : > { %v563_v37 = vpack.c.bf16 %v559_v23, %v559_v23  ;;  %v463_v44 = vadd.f32 %v459_v30, %v453_v38  ;;  %v432_v1 = vadd.f32 %v424_v42, %v406_v32  ;;  %v460_v2 = vmul.f32 %v904_v27, %v399_v24 }
  0x29   : > { %v516_v39 = vadd.f32 %v512_v14, %v506_v31  ;;  %v492_v3 = vmul.f32 %v914_v29, %v399_v24  ;;  %v513_v50 = vmul.f32 %v936_v43, %v399_v24  ;;  %v545_v51 = vmul.f32 %v924_v34, %v399_v24 }
  0x2a   : > { %567 = vst [vmem:[%s964_s10] sm:$0x3] %v563_v37  ;;  %v485_v49 = vadd.f32 %v477_v26, %v463_v44  ;;  %v454_v53 = vadd.f32 %v446_v46, %v432_v1  ;;  %v478_v54 = vrot.slane %v470_v47, 1  ;;  %v586_v55 = vmul.f32 %v559_v23, %v559_v23 }
  0x2b   : > { %v538_v48 = vadd.f32 %v530_v20, %v516_v39  ;;  %v531_v57 = vrot.slane %v523_v45, 1  ;;  %v524_v28 = vmul.f32 0.0, %v919_v33  ;;  %v500_v60 = vrot.slane %v492_v3, 2 }
  0x2c   : > { %v507_v56 = vadd.f32 %v499_v41, %v485_v49  ;;  %v464_v27 = vadd.f32 %v460_v2, %v454_v53  ;;  %v553_v61 = vrot.slane %v545_v51, 2  ;;  %v514_v62 = vmul.f32 0.0, %v936_v43 }
  0x2d   : > { %v560_v52 = vadd.f32 %v552_v40, %v538_v48  ;;  %v572_v63 = vsel %vm571_vm3, %v559_v23, 0.0  ;;  %v546_v5 = vmul.f32 0.0, %v924_v34  ;;  %v532_v33 = vrot.slane %v524_v28, 1 }
  0x2e   : > { %v517_v29 = vadd.f32 %v513_v50, %v507_v56  ;;  %v486_v4 = vadd.f32 %v478_v54, %v464_v27  ;;  %v590_v8 = vsel %vm571_vm3, %v586_v55, 0.0 }
  0x2f   : > { %v564_v58 = vpack.c.bf16 %v560_v52, %v560_v52  ;;  %v587_v59 = vmul.f32 %v560_v52, %v560_v52  ;;  %v573_v0 = vsel %vm571_vm3, %v560_v52, 0.0  ;;  %v554_v43 = vrot.slane %v546_v5, 2 }
  0x30   : > { %v539_v6 = vadd.f32 %v531_v57, %v517_v29  ;;  %v508_v7 = vadd.f32 %v500_v60, %v486_v4  ;;  %v574_v11 = vadd.f32 %v573_v0, %v572_v63 }
  0x31   : > { %568 = vst [vmem:[%s964_s10 + $0x2] sm:$0x3] %v564_v58  ;;  %v591_v9 = vsel %vm571_vm3, %v587_v59, 0.0 }
  0x32   : > { %v561_v10 = vadd.f32 %v553_v61, %v539_v6  ;;  %v518_v12 = vadd.f32 %v514_v62, %v508_v7  ;;  %v592_v17 = vadd.f32 %v591_v9, %v590_v8 }
  0x34   : > { %v565_v13 = vpack.c.bf16 %v561_v10, %v561_v10  ;;  %v588_v14 = vmul.f32 %v561_v10, %v561_v10  ;;  %v575_v16 = vsel %vm571_vm3, %v561_v10, 0.0  ;;  %v540_v15 = vadd.f32 %v532_v33, %v518_v12 }
  0x35   : > { %v576_v34 = vadd.f32 %v575_v16, %v574_v11 }
  0x36   : > { %569 = vst [vmem:[%s964_s10 + $0x4] sm:$0x3] %v565_v13  ;;  %v593_v18 = vsel %vm571_vm3, %v588_v14, 0.0  ;;  %v562_v19 = vadd.f32 %v554_v43, %v540_v15 }
  0x37   : > { %v594_v20 = vadd.f32 %v593_v18, %v592_v17 }
  0x38   : > { %v566_v21 = vpack.c.bf16 %v562_v19, %v562_v19  ;;  %v577_v22 = vsel %vm571_vm3, %v562_v19, 0.0  ;;  %v589_v23 = vmul.f32 %v562_v19, %v562_v19 }
  0x39   : > { %v578_v24 = vadd.f32 %v577_v22, %v576_v34 }
  0x3a   : > { %570 = vst [vmem:[%s964_s10 + $0x6] sm:$0x3] %v566_v21  ;;  %v595_v25 = vsel %vm571_vm3, %v589_v23, 0.0 }
  0x3b   : > { %v579_v30 = vrot.slane %v578_v24, 4  ;;  %v596_v31 = vadd.f32 %v595_v25, %v594_v20 }
  0x3d   : > { %v580_v32 = vadd.f32 %v579_v30, %v578_v24  ;;  %v597_v35 = vrot.slane %v596_v31, 4 }
  0x3f   : > { %v581_v36 = vrot.slane %v580_v32, 2  ;;  %v598_v37 = vadd.f32 %v597_v35, %v596_v31 }
  0x41   : > { %v582_v38 = vadd.f32 %v581_v36, %v580_v32  ;;  %v599_v26 = vrot.slane %v598_v37, 2 }
  0x43   : > { %v583_v39 = vrot.slane %v582_v38, 1  ;;  %v600_v40 = vadd.f32 %v599_v26, %v598_v37 }
  0x45   : > { %v584_v41 = vadd.f32 %v583_v39, %v582_v38  ;;  %v601_v42 = vrot.slane %v600_v40, 1 }
  0x47   : > { %585 = vst [vmem:[%s295_s13] sm:$0x1] %v584_v41  ;;  %v602_v44 = vadd.f32 %v601_v42, %v600_v40 }
  0x49   : > { %603 = vst [vmem:[%s300_s16] sm:$0x1] %v602_v44 }
  0x4a PF: > { %s17_s23 = sadd.s32 1, %s812_s23   ;;  %s1016_s21 = smov %s808_s22 }
  0x4b   : > { %p14_p5 = scmp.ge.s32.totalorder %s17_s23, 4   ;;  %s1017_s22 = smov %s1019_s24 }
  0x4d   :  { %16 = sbr.rel (!%p14_p5) target bundleno = 2 (0x2), region = 91 }

// kernel: mobilenet_forward.17
= control target key start
LH: loop header
LB: loop body
LE: loop exit
PB: predicated region body
PF: predicated region fallthrough
CT: control target
= control target key end

     0   :  { %s179_s0 = inlined_call_operand.vmem [shape: f32[2,128], index: 0, kind: input, shape index: {}]   ;;  %s180_s1 = inlined_call_operand.vmem [shape: f32[128,128], index: 1, kind: input, shape index: {}]   ;;  %s181_s2 = inlined_call_operand.vmem [shape: f32[1,128], index: 2, kind: input, shape index: {}]   ;;  %s182_s3 = inlined_call_operand.hbm [shape: f32[2,128], index: 3, kind: output, shape index: {}]  }
   0x1   :  { %v31_v0 = vld [vmem:[%s180_s1 + $0x78] sm:$0xff]  ;;  %v30_v1 = vld [vmem:[%s180_s1 + $0x70] sm:$0xff]  ;;  %v29_v2 = vld [vmem:[%s180_s1 + $0x68] sm:$0xff] }
   0x2   :  { %36 = vmatpush.msra.mxu0 %v31_v0  ;;  %v28_v3 = vld [vmem:[%s180_s1 + $0x60] sm:$0xff]  ;;  %v27_v4 = vld [vmem:[%s180_s1 + $0x58] sm:$0xff] }
   0x4   :  { %37 = vmatpush.msra.mxu0 %v30_v1 }
   0x6   :  { %38 = vmatpush.msra.mxu0 %v29_v2 }
   0x7   :  { %8 = vsyncpa [#allocation3], 0  ;;  %v26_v5 = vld [vmem:[%s180_s1 + $0x50] sm:$0xff]  ;;  %v25_v6 = vld [vmem:[%s180_s1 + $0x48] sm:$0xff]  ;;  %s101_s21 = smov [#allocation2]   ;;  %s64_s25 = sshll.u32 %s182_s3, 4  ;;  %s65_s25 = int_to_ptr.hbm [resolvable:$true] %s64_s25 }
   0x8   :  { %39 = vmatpush.msra.mxu0 %v28_v3  ;;  %v24_v7 = vld [vmem:[%s180_s1 + $0x40] sm:$0xff]  ;;  %v23_v8 = vld [vmem:[%s180_s1 + $0x38] sm:$0xff]  ;;  %v22_v9 = vld [vmem:[%s180_s1 + $0x30] sm:$0xff]  ;;  %s62_s22 = sshll.u32 %s101_s21, 4  ;;  %s63_s22 = int_to_ptr.vmem [resolvable:$true] %s62_s22 }
   0x9   :  { %v21_v10 = vld [vmem:[%s180_s1 + $0x28] sm:$0xff]  ;;  %v20_v11 = vld [vmem:[%s180_s1 + $0x20] sm:$0xff]  ;;  %v19_v12 = vld [vmem:[%s180_s1 + $0x18] sm:$0xff] }
   0xa   :  { %40 = vmatpush.msra.mxu0 %v27_v4  ;;  %v18_v13 = vld [vmem:[%s180_s1 + $0x10] sm:$0xff]  ;;  %v17_v14 = vld [vmem:[%s180_s1 + $0x8] sm:$0xff]  ;;  %v16_v15 = vld [vmem:[%s180_s1] sm:$0xff] }
   0xb   :  { %v15_v16 = vld [vmem:[%s179_s0] sm:$0x3] }
   0xc   :  { %41 = vmatpush.msra.mxu0 %v26_v5  ;;  %v74_v17 = vld [vmem:[%s181_s2] ss:$0 sm:$0xff] }
   0xe   :  { %42 = vmatpush.msra.mxu0 %v25_v6 }
  0x10   :  { %43 = vmatpush.msra.mxu0 %v24_v7 }
  0x12   :  { %44 = vmatpush.msra.mxu0 %v23_v8 }
  0x14   :  { %45 = vmatpush.msra.mxu0 %v22_v9 }
  0x16   :  { %46 = vmatpush.msra.mxu0 %v21_v10 }
  0x18   :  { %47 = vmatpush.msra.mxu0 %v20_v11 }
  0x1a   :  { %48 = vmatpush.msra.mxu0 %v19_v12 }
  0x1c   :  { %49 = vmatpush.msra.mxu0 %v18_v13 }
  0x1e   :  { %50 = vmatpush.msra.mxu0 %v17_v14 }
  0x20   :  { %51 = vmatpush.msra.mxu0 %v16_v15 }
  0x21   :  { %52 = vmatmul.f32.vlgmr.msra.gmra.mxu0 %v15_v16 }
  0x9e   :  { %v53_v18 = vpop.f32.mrf.mxu0 }
  0x9f   :  { %v54_v19 = vadd.f32 %v74_v17, %v53_v18 }
  0xa1   :  { %56 = vst [vmem:[#allocation2] sm:$0x3] %v54_v19 }
  0xa2   :  { %67 = dma.vmem_to_hbm [thread:$0]  %s63_s22, 32, %s65_s25, [#allocation3]  }
  0xa3   :  { %99 = dma.done.wait [#allocation3], 32  }
  0xa4   :  { %100 = vsyncadd [#allocation3], 4294967264 }
  0xa5   :  { %72 = vsyncpa [#allocation3], 1 }

</bundles_post_ra>
